<compile_context>
chip_gen: v7x
topology: tpu7x:2x2x1
jax: 0.10.0
libtpu: 0.0.40
codegen_flags: <defaults>
</compile_context>

<pallas_src>
import functools

import jax
import jax.numpy as jnp
import numpy as np
from jax.experimental import pallas as pl
from jax.experimental.pallas import tpu as pltpu

# ---- model hyperparameters (from the PyTorch module) ----
INPUT_SIZE = 18
HIDDEN_SIZE = 128
NUM_LAYERS = 2          # hard-coded as two stacked LSTM cells in the kernel
OUTPUT_SIZE = 1
SPECIAL_INDICES = [13, 14, 15, 16, 17]
SPECIAL_WEIGHT = 10.0


# -----------------------------------------------------------------------------
# Pallas kernel: full forward pass for one batch tile.
#   xproj_ref : (S, TB, 4H) hoisted layer-0 input projection (f32, incl. bias)
#   whh0_ref  : (H, 4H)     layer-0 recurrent weight (transposed, bf16)
#   w1s_ref   : (2H, 4H)    layer-1 stacked [Wih1^T ; Whh1^T] (bf16)
#   b1_ref    : (1, 4H)     layer-1 bias (bih + bhh, f32)
#   wattn_ref : (H, H)      attention Linear weight (transposed, bf16)
#   battn_ref : (1, H)      attention Linear bias (f32)
#   ctxcol_ref: (H, 1)      context_vector weight (transposed, f32)
#   spcol_ref : (H, 1)      SPECIAL_WEIGHT * one-hot(special indices) (f32)
#   fcw_ref   : (H, 1)      output Linear weight (transposed, f32)
#   fcb_ref   : (1, 1)      output Linear bias (f32)
#   out_ref   : (TB, 1)     model output
#   attw_ref  : (TB, S)     softmax attention weights (lane-dense)
#   lo_ref    : (S*TB, H)   VMEM scratch, layer-1 hidden states (f32)
#   h01_ref   : (TB, 2H)    VMEM scratch, fused layer-1 LHS [h0_t | h1_{t-1}] (bf16)
# -----------------------------------------------------------------------------
def lstm_attn_kernel(xproj_ref, whh0_ref, w1s_ref, b1_ref, wattn_ref,
                     battn_ref, ctxcol_ref, spcol_ref, fcw_ref, fcb_ref,
                     out_ref, attw_ref, lo_ref, h01_ref):
    TB, S = attw_ref.shape
    H = whh0_ref.shape[0]
    f32 = jnp.float32
    bf16 = jnp.bfloat16

    # hoist weight loads out of the unrolled loop
    whh0 = whh0_ref[...]                                  # (H, 4H)  bf16
    w1s = w1s_ref[...]                                    # (2H, 4H) bf16
    b1 = b1_ref[...]                                      # (1, 4H)  f32

    def gate_math(gates, c_prev):
        i_g = jax.nn.sigmoid(gates[:, 0 * H:1 * H])
        f_g = jax.nn.sigmoid(gates[:, 1 * H:2 * H])
        g_g = jnp.tanh(gates[:, 2 * H:3 * H])
        o_g = jax.nn.sigmoid(gates[:, 3 * H:4 * H])
        c_new = f_g * c_prev + i_g * g_g
        h_new = o_g * jnp.tanh(c_new)
        return h_new, c_new

    # zero initial state
    h01_ref[...] = jnp.zeros((TB, 2 * H), bf16)
    c0 = jnp.zeros((TB, H), f32)
    c1 = jnp.zeros((TB, H), f32)

    # ---- fully unrolled recurrence (S is small & static) ----
    for t in range(S):
        # layer 0: hoisted input projection + recurrent matmul (bf16 MXU, f32 acc)
        g0 = xproj_ref[t] + jnp.dot(h01_ref[:, :H], whh0,
                                    preferred_element_type=f32)
        h0, c0 = gate_math(g0, c0)
        h01_ref[:, :H] = h0.astype(bf16)
        # layer 1: fused [Wih1 ; Whh1] matmul, K = 2H, LHS from scratch (no concat)
        g1 = jnp.dot(h01_ref[...], w1s, preferred_element_type=f32) + b1
        h1, c1 = gate_math(g1, c1)
        h01_ref[:, H:] = h1.astype(bf16)
        lo_ref[t * TB:(t + 1) * TB, :] = h1               # f32 outputs for attention

    # ---- batched attention on the collected LSTM outputs ----
    lo = lo_ref[...]                                      # (S*TB, H) f32
    att = jnp.tanh(
        jnp.dot(lo.astype(bf16), wattn_ref[...], preferred_element_type=f32)
        + battn_ref[...]
    )                                                     # (S*TB, H) f32
    # split score: att @ ctx_col + lo @ (SPECIAL_WEIGHT * mask) — no [att|lo] concat
    sc = (jnp.dot(att, ctxcol_ref[...], preferred_element_type=f32)
          + jnp.dot(lo, spcol_ref[...], preferred_element_type=f32))  # (S*TB, 1)

    # ---- softmax over time per batch row (static per-timestep slices) ----
    sc_t = [sc[t * TB:(t + 1) * TB, :] for t in range(S)]
    m = functools.reduce(jnp.maximum, sc_t)               # (TB, 1)
    e_t = [jnp.exp(s - m) for s in sc_t]
    denom = functools.reduce(lambda a, b: a + b, e_t)     # (TB, 1)
    inv = pl.reciprocal(denom, approx=True)               # EUP slot
    w_t = [e * inv for e in e_t]                          # each (TB, 1)

    # ---- context vector + fc head ----
    ctx = functools.reduce(
        lambda a, b: a + b,
        [w_t[t] * lo_ref[t * TB:(t + 1) * TB, :] for t in range(S)]
    )                                                     # (TB, H) f32

    attw_ref[...] = jnp.concatenate(w_t, axis=1)          # (TB, S)
    out_ref[...] = (
        jnp.dot(ctx, fcw_ref[...], preferred_element_type=f32) + fcb_ref[...]
    )


# -----------------------------------------------------------------------------
# Batch-tile selection: largest multiple-of-8 divisor of the padded batch,
# capped at 256 (fills the MXU M dim), preferring >= 2 grid tiles (v7x: 2 TCs).
# -----------------------------------------------------------------------------
def _choose_batch_tile(b_pad):
    divisors = [d for d in range(8, min(b_pad, 256) + 1, 8) if b_pad % d == 0]
    two_plus = [d for d in divisors if b_pad // d >= 2]
    return max(two_plus) if two_plus else max(divisors)


# -----------------------------------------------------------------------------
# Wrapper
# -----------------------------------------------------------------------------
@jax.jit
def lstm_model_with_attention(x, params):
    """x: (B, S, I) like PyTorch batch_first. Returns (output (B,), attn (B, S))."""
    B, S, _ = x.shape
    H = HIDDEN_SIZE

    # pad batch to a multiple of 8 (sublane alignment), slice off at the end
    B_pad = ((B + 7) // 8) * 8
    if B_pad != B:
        x = jnp.pad(x, ((0, B_pad - B), (0, 0), (0, 0)))

    TB = _choose_batch_tile(B_pad)
    n_tiles = B_pad // TB

    # hoisted layer-0 input projection (K=18 matmul done once in XLA),
    # produced directly time-major — no extra transpose/reshape HBM copy of x.
    xproj = jnp.einsum("bsi,ih->sbh", x, params["wih0T"],
                       preferred_element_type=jnp.float32) + params["b0"]
    # xproj: (S, B_pad, 4H) f32, lane-dense (4H = 512)

    vmem = pl.BlockSpec(memory_space=pltpu.MemorySpace.VMEM)  # full array in VMEM

    out, attw = pl.pallas_call(
        lstm_attn_kernel,
        out_shape=(
            jax.ShapeDtypeStruct((B_pad, 1), jnp.float32),
            jax.ShapeDtypeStruct((B_pad, S), jnp.float32),
        ),
        grid=(n_tiles,),
        in_specs=[
            pl.BlockSpec((S, TB, 4 * H), lambda g: (0, g, 0)),  # xproj tile
            vmem,  # whh0T (bf16)
            vmem,  # w1s   (bf16)
            vmem,  # b1
            vmem,  # wattnT (bf16)
            vmem,  # battn
            vmem,  # ctx_col
            vmem,  # sp_col
            vmem,  # fcwT
            vmem,  # fcb
        ],
        out_specs=(
            pl.BlockSpec((TB, 1), lambda g: (g, 0)),
            pl.BlockSpec((TB, S), lambda g: (g, 0)),
        ),
        scratch_shapes=[
            pltpu.VMEM((S * TB, H), jnp.float32),     # lo: layer-1 hidden states
            pltpu.VMEM((TB, 2 * H), jnp.bfloat16),    # fused layer-1 LHS
        ],
        compiler_params=pltpu.CompilerParams(
            dimension_semantics=("parallel",)),
    )(
        xproj,
        params["whh0T"], params["w1s"], params["b1"],
        params["wattnT"], params["battn"],
        params["ctx_col"], params["sp_col"],
        params["fcwT"], params["fcb"],
    )

    return out[:B, 0], attw[:B]


# -----------------------------------------------------------------------------
# Deterministic parameter init (PyTorch-style uniform(-1/sqrt(H), 1/sqrt(H)))
# -----------------------------------------------------------------------------
def init_params(key):
    H, I = HIDDEN_SIZE, INPUT_SIZE
    k = 1.0 / np.sqrt(H)
    keys = jax.random.split(key, 13)
    u = lambda kk, shape: jax.random.uniform(
        kk, shape, jnp.float32, minval=-k, maxval=k)

    # LSTM layer 0 (PyTorch gate order i, f, g, o)
    wih0 = u(keys[0], (4 * H, I))
    whh0 = u(keys[1], (4 * H, H))
    bih0 = u(keys[2], (4 * H,))
    bhh0 = u(keys[3], (4 * H,))
    # LSTM layer 1
    wih1 = u(keys[4], (4 * H, H))
    whh1 = u(keys[5], (4 * H, H))
    bih1 = u(keys[6], (4 * H,))
    bhh1 = u(keys[7], (4 * H,))
    # attention
    wattn = u(keys[8], (H, H))
    battn = u(keys[9], (H,))
    ctxw = u(keys[10], (1, H))        # context_vector: Linear(H, 1, bias=False)
    # fc head
    fcw = u(keys[11], (OUTPUT_SIZE, H))
    fcb = u(keys[12], (OUTPUT_SIZE,))

    mask = np.zeros((H, 1), np.float32)
    mask[np.array(SPECIAL_INDICES), 0] = 1.0

    bf16 = jnp.bfloat16
    return {
        # hoisted layer-0 input projection runs in XLA (f32)
        "wih0T": wih0.T,                                        # (I, 4H)
        "b0": (bih0 + bhh0).reshape(1, 4 * H),
        # recurrence / attention matmul weights in bf16 (f32 accumulation)
        "whh0T": whh0.T.astype(bf16),                           # (H, 4H)
        "w1s": jnp.concatenate([wih1.T, whh1.T], axis=0).astype(bf16),  # (2H, 4H)
        "b1": (bih1 + bhh1).reshape(1, 4 * H),
        "wattnT": wattn.T.astype(bf16),                         # (H, H)
        "battn": battn.reshape(1, H),
        # score columns (f32): context vector + SPECIAL_WEIGHT * mask on hidden dims
        "ctx_col": ctxw.T,                                      # (H, 1)
        "sp_col": SPECIAL_WEIGHT * jnp.asarray(mask),           # (H, 1)
        "fcwT": fcw.T,                                          # (H, 1)
        "fcb": fcb.reshape(1, 1),
    }


# -----------------------------------------------------------------------------
# Pure-JAX reference with the SAME dtype policy (bf16 matmul operands, f32
# accumulation / gate math / softmax / context), mirroring the kernel.
# -----------------------------------------------------------------------------
def reference_forward(x, params):
    B, S, _ = x.shape
    H = HIDDEN_SIZE
    f32, bf16 = jnp.float32, jnp.bfloat16

    xproj = jnp.einsum("bsi,ih->sbh", x, params["wih0T"],
                       preferred_element_type=f32) + params["b0"]   # (S, B, 4H)

    def gate_math(gates, c_prev):
        i_g = jax.nn.sigmoid(gates[:, 0 * H:1 * H])
        f_g = jax.nn.sigmoid(gates[:, 1 * H:2 * H])
        g_g = jnp.tanh(gates[:, 2 * H:3 * H])
        o_g = jax.nn.sigmoid(gates[:, 3 * H:4 * H])
        c_new = f_g * c_prev + i_g * g_g
        return o_g * jnp.tanh(c_new), c_new

    h0b = jnp.zeros((B, H), bf16)
    h1b = jnp.zeros((B, H), bf16)
    c0 = jnp.zeros((B, H), f32)
    c1 = jnp.zeros((B, H), f32)
    outs = []
    for t in range(S):
        g0 = xproj[t] + jnp.dot(h0b, params["whh0T"], preferred_element_type=f32)
        h0, c0 = gate_math(g0, c0)
        h0b = h0.astype(bf16)
        g1 = jnp.dot(jnp.concatenate([h0b, h1b], axis=1), params["w1s"],
                     preferred_element_type=f32) + params["b1"]
        h1, c1 = gate_math(g1, c1)
        h1b = h1.astype(bf16)
        outs.append(h1)

    lo = jnp.stack(outs, axis=1)                                    # (B, S, H) f32
    att = jnp.tanh(
        jnp.einsum("bsh,hk->bsk", lo.astype(bf16), params["wattnT"],
                   preferred_element_type=f32) + params["battn"])
    scores = (jnp.einsum("bsh,hk->bsk", att, params["ctx_col"])[..., 0]
              + jnp.einsum("bsh,hk->bsk", lo, params["sp_col"])[..., 0])  # (B, S)
    w = jax.nn.softmax(scores, axis=1)
    ctx = jnp.sum(w[..., None] * lo, axis=1)                        # (B, H)
    out = (ctx @ params["fcwT"] + params["fcb"])[:, 0]
    return out, w


# -----------------------------------------------------------------------------
if __name__ == "__main__":
    B, S = 16, 8   # 2 batch tiles of 8 → exercises the "parallel" grid (v7x: 2 TCs)
    key = jax.random.PRNGKey(0)
    kx, kp = jax.random.split(key)

    x = jax.random.normal(kx, (B, S, INPUT_SIZE), jnp.float32)
    params = init_params(kp)

    out, attn = lstm_model_with_attention(x, params)
    out = jax.block_until_ready(out)
    attn = jax.block_until_ready(attn)

    # sanity check against a dtype-matched pure-JAX reference
    # (2e-3 tolerance: pl.reciprocal(approx=True) contributes ~1e-4..1e-3 rel.)
    ref_out, ref_attn = reference_forward(x, params)
    np.testing.assert_allclose(np.asarray(out), np.asarray(ref_out),
                               rtol=2e-3, atol=2e-3)
    np.testing.assert_allclose(np.asarray(attn), np.asarray(ref_attn),
                               rtol=2e-3, atol=2e-3)

    print("KERNEL_OK")
</pallas_src>

<mosaic_0001>
module attributes {stable_mosaic.version = 11 : i64} {
  func.func @lstm_attn_kernel(%arg0: i32, %arg1: memref<8x8x512xf32, #tpu.memory_space<vmem>>, %arg2: memref<128x512xbf16, #tpu.memory_space<vmem>>, %arg3: memref<256x512xbf16, #tpu.memory_space<vmem>>, %arg4: memref<1x512xf32, #tpu.memory_space<vmem>>, %arg5: memref<128x128xbf16, #tpu.memory_space<vmem>>, %arg6: memref<1x128xf32, #tpu.memory_space<vmem>>, %arg7: memref<128x1xf32, #tpu.memory_space<vmem>>, %arg8: memref<128x1xf32, #tpu.memory_space<vmem>>, %arg9: memref<128x1xf32, #tpu.memory_space<vmem>>, %arg10: memref<1x1xf32, #tpu.memory_space<vmem>>, %arg11: memref<8x1xf32, #tpu.memory_space<vmem>>, %arg12: memref<8x8xf32, #tpu.memory_space<vmem>>, %arg13: memref<64x128xf32, #tpu.memory_space<vmem>>, %arg14: memref<8x256xbf16, #tpu.memory_space<vmem>>) attributes {dimension_semantics = [#tpu.dimension_semantics<parallel>], iteration_bounds = array<i64: 2>, scalar_prefetch = 0 : i64, scratch_operands = 2 : i64, tpu.core_type = #tpu.core_type<tc>, window_params = [{transform_indices = @transform_0, window_bounds = array<i64: 8, 8, 512>}, {pipeline_mode = #tpu.pipeline_mode<synchronous>, transform_indices = @transform_1, window_bounds = array<i64: 128, 512>}, {pipeline_mode = #tpu.pipeline_mode<synchronous>, transform_indices = @transform_2, window_bounds = array<i64: 256, 512>}, {pipeline_mode = #tpu.pipeline_mode<synchronous>, transform_indices = @transform_3, window_bounds = array<i64: 1, 512>}, {pipeline_mode = #tpu.pipeline_mode<synchronous>, transform_indices = @transform_4, window_bounds = array<i64: 128, 128>}, {pipeline_mode = #tpu.pipeline_mode<synchronous>, transform_indices = @transform_5, window_bounds = array<i64: 1, 128>}, {pipeline_mode = #tpu.pipeline_mode<synchronous>, transform_indices = @transform_6, window_bounds = array<i64: 128, 1>}, {pipeline_mode = #tpu.pipeline_mode<synchronous>, transform_indices = @transform_7, window_bounds = array<i64: 128, 1>}, {pipeline_mode = #tpu.pipeline_mode<synchronous>, transform_indices = @transform_8, window_bounds = array<i64: 128, 1>}, {pipeline_mode = #tpu.pipeline_mode<synchronous>, transform_indices = @transform_9, window_bounds = array<i64: 1, 1>}, {transform_indices = @transform_10, window_bounds = array<i64: 8, 1>}, {transform_indices = @transform_11, window_bounds = array<i64: 8, 8>}]} {
    %c0 = arith.constant 0 : index
    %c0_0 = arith.constant 0 : index
    %0 = vector.load %arg2[%c0, %c0_0] : memref<128x512xbf16, #tpu.memory_space<vmem>>, vector<128x512xbf16>
    %c0_1 = arith.constant 0 : index
    %c0_2 = arith.constant 0 : index
    %1 = vector.load %arg3[%c0_1, %c0_2] : memref<256x512xbf16, #tpu.memory_space<vmem>>, vector<256x512xbf16>
    %c0_3 = arith.constant 0 : index
    %c0_4 = arith.constant 0 : index
    %2 = vector.load %arg4[%c0_3, %c0_4] : memref<1x512xf32, #tpu.memory_space<vmem>>, vector<1x512xf32>
    %cst = arith.constant 0.000000e+00 : bf16
    %3 = vector.broadcast %cst : bf16 to vector<8x256xbf16>
    %c0_5 = arith.constant 0 : index
    %c0_6 = arith.constant 0 : index
    %4 = vector.load %arg14[%c0_5, %c0_6] : memref<8x256xbf16, #tpu.memory_space<vmem>>, vector<8x256xbf16>
    tpu.vector_store %arg14[%c0_5, %c0_6], %3 {strides = array<i32>} : memref<8x256xbf16, #tpu.memory_space<vmem>>, vector<8x256xbf16>,
    %cst_7 = arith.constant 0.000000e+00 : f32
    %5 = vector.broadcast %cst_7 : f32 to vector<8x128xf32>
    %cst_8 = arith.constant 0.000000e+00 : f32
    %6 = vector.broadcast %cst_8 : f32 to vector<8x128xf32>
    %c0_9 = arith.constant 0 : index
    %c0_10 = arith.constant 0 : index
    %c0_11 = arith.constant 0 : index
    %7 = vector.load %arg1[%c0_9, %c0_10, %c0_11] : memref<8x8x512xf32, #tpu.memory_space<vmem>>, vector<1x8x512xf32>
    %8 = vector.shape_cast %7 : vector<1x8x512xf32> to vector<8x512xf32>
    %c0_12 = arith.constant 0 : index
    %c0_13 = arith.constant 0 : index
    %9 = vector.load %arg14[%c0_12, %c0_13] : memref<8x256xbf16, #tpu.memory_space<vmem>>, vector<8x128xbf16>
    %cst_14 = arith.constant dense<0.000000e+00> : vector<8x512xf32>
    %10 = tpu.matmul %9, %0, %cst_14 {dimension_numbers = #tpu.dot_dimension_numbers<[1], [0], [0], [1], [0, 0, 1, 1], [], []>} : vector<8x128xbf16>, vector<128x512xbf16>, vector<8x512xf32> -> vector<8x512xf32>
    %11 = arith.addf %8, %10 : vector<8x512xf32>
    %12 = vector.extract_strided_slice %11 {offsets = [0, 0], sizes = [8, 128], strides = [1, 1]} : vector<8x512xf32> to vector<8x128xf32>
    %13 = arith.negf %12 : vector<8x128xf32>
    %14 = math.exp %13 : vector<8x128xf32>
    %cst_15 = arith.constant 1.000000e+00 : f32
    %15 = vector.broadcast %cst_15 : f32 to vector<8x128xf32>
    %16 = arith.addf %15, %14 : vector<8x128xf32>
    %17 = arith.divf %15, %16 : vector<8x128xf32>
    %18 = vector.extract_strided_slice %11 {offsets = [0, 128], sizes = [8, 128], strides = [1, 1]} : vector<8x512xf32> to vector<8x128xf32>
    %19 = arith.negf %18 : vector<8x128xf32>
    %20 = math.exp %19 : vector<8x128xf32>
    %cst_16 = arith.constant 1.000000e+00 : f32
    %21 = vector.broadcast %cst_16 : f32 to vector<8x128xf32>
    %22 = arith.addf %21, %20 : vector<8x128xf32>
    %23 = arith.divf %21, %22 : vector<8x128xf32>
    %24 = vector.extract_strided_slice %11 {offsets = [0, 256], sizes = [8, 128], strides = [1, 1]} : vector<8x512xf32> to vector<8x128xf32>
    %25 = math.tanh %24 : vector<8x128xf32>
    %26 = vector.extract_strided_slice %11 {offsets = [0, 384], sizes = [8, 128], strides = [1, 1]} : vector<8x512xf32> to vector<8x128xf32>
    %27 = arith.negf %26 : vector<8x128xf32>
    %28 = math.exp %27 : vector<8x128xf32>
    %cst_17 = arith.constant 1.000000e+00 : f32
    %29 = vector.broadcast %cst_17 : f32 to vector<8x128xf32>
    %30 = arith.addf %29, %28 : vector<8x128xf32>
    %31 = arith.divf %29, %30 : vector<8x128xf32>
    %32 = arith.mulf %23, %5 : vector<8x128xf32>
    %33 = arith.mulf %17, %25 : vector<8x128xf32>
    %34 = arith.addf %32, %33 : vector<8x128xf32>
    %35 = math.tanh %34 : vector<8x128xf32>
    %36 = arith.mulf %31, %35 : vector<8x128xf32>
    %37 = arith.truncf %36 : vector<8x128xf32> to vector<8x128xbf16>
    %c0_18 = arith.constant 0 : index
    %c0_19 = arith.constant 0 : index
    %38 = vector.load %arg14[%c0_18, %c0_19] : memref<8x256xbf16, #tpu.memory_space<vmem>>, vector<8x128xbf16>
    tpu.vector_store %arg14[%c0_18, %c0_19], %37 {strides = array<i32>} : memref<8x256xbf16, #tpu.memory_space<vmem>>, vector<8x128xbf16>,
    %c0_20 = arith.constant 0 : index
    %c0_21 = arith.constant 0 : index
    %39 = vector.load %arg14[%c0_20, %c0_21] : memref<8x256xbf16, #tpu.memory_space<vmem>>, vector<8x256xbf16>
    %cst_22 = arith.constant dense<0.000000e+00> : vector<8x512xf32>
    %40 = tpu.matmul %39, %1, %cst_22 {dimension_numbers = #tpu.dot_dimension_numbers<[1], [0], [0], [1], [0, 0, 1, 1], [], []>} : vector<8x256xbf16>, vector<256x512xbf16>, vector<8x512xf32> -> vector<8x512xf32>
    %41 = vector.broadcast %2 : vector<1x512xf32> to vector<8x512xf32>
    %42 = arith.addf %40, %41 : vector<8x512xf32>
    %43 = vector.extract_strided_slice %42 {offsets = [0, 0], sizes = [8, 128], strides = [1, 1]} : vector<8x512xf32> to vector<8x128xf32>
    %44 = arith.negf %43 : vector<8x128xf32>
    %45 = math.exp %44 : vector<8x128xf32>
    %cst_23 = arith.constant 1.000000e+00 : f32
    %46 = vector.broadcast %cst_23 : f32 to vector<8x128xf32>
    %47 = arith.addf %46, %45 : vector<8x128xf32>
    %48 = arith.divf %46, %47 : vector<8x128xf32>
    %49 = vector.extract_strided_slice %42 {offsets = [0, 128], sizes = [8, 128], strides = [1, 1]} : vector<8x512xf32> to vector<8x128xf32>
    %50 = arith.negf %49 : vector<8x128xf32>
    %51 = math.exp %50 : vector<8x128xf32>
    %cst_24 = arith.constant 1.000000e+00 : f32
    %52 = vector.broadcast %cst_24 : f32 to vector<8x128xf32>
    %53 = arith.addf %52, %51 : vector<8x128xf32>
    %54 = arith.divf %52, %53 : vector<8x128xf32>
    %55 = vector.extract_strided_slice %42 {offsets = [0, 256], sizes = [8, 128], strides = [1, 1]} : vector<8x512xf32> to vector<8x128xf32>
    %56 = math.tanh %55 : vector<8x128xf32>
    %57 = vector.extract_strided_slice %42 {offsets = [0, 384], sizes = [8, 128], strides = [1, 1]} : vector<8x512xf32> to vector<8x128xf32>
    %58 = arith.negf %57 : vector<8x128xf32>
    %59 = math.exp %58 : vector<8x128xf32>
    %cst_25 = arith.constant 1.000000e+00 : f32
    %60 = vector.broadcast %cst_25 : f32 to vector<8x128xf32>
    %61 = arith.addf %60, %59 : vector<8x128xf32>
    %62 = arith.divf %60, %61 : vector<8x128xf32>
    %63 = arith.mulf %54, %6 : vector<8x128xf32>
    %64 = arith.mulf %48, %56 : vector<8x128xf32>
    %65 = arith.addf %63, %64 : vector<8x128xf32>
    %66 = math.tanh %65 : vector<8x128xf32>
    %67 = arith.mulf %62, %66 : vector<8x128xf32>
    %68 = arith.truncf %67 : vector<8x128xf32> to vector<8x128xbf16>
    %c0_26 = arith.constant 0 : index
    %c128 = arith.constant 128 : index
    %69 = vector.load %arg14[%c0_26, %c128] : memref<8x256xbf16, #tpu.memory_space<vmem>>, vector<8x128xbf16>
    tpu.vector_store %arg14[%c0_26, %c128], %68 {strides = array<i32>} : memref<8x256xbf16, #tpu.memory_space<vmem>>, vector<8x128xbf16>,
    %c0_27 = arith.constant 0 : index
    %c0_28 = arith.constant 0 : index
    %70 = vector.load %arg13[%c0_27, %c0_28] : memref<64x128xf32, #tpu.memory_space<vmem>>, vector<8x128xf32>
    tpu.vector_store %arg13[%c0_27, %c0_28], %67 {strides = array<i32>} : memref<64x128xf32, #tpu.memory_space<vmem>>, vector<8x128xf32>,
    %c1 = arith.constant 1 : index
    %c0_29 = arith.constant 0 : index
    %c0_30 = arith.constant 0 : index
    %71 = vector.load %arg1[%c1, %c0_29, %c0_30] : memref<8x8x512xf32, #tpu.memory_space<vmem>>, vector<1x8x512xf32>
    %72 = vector.shape_cast %71 : vector<1x8x512xf32> to vector<8x512xf32>
    %c0_31 = arith.constant 0 : index
    %c0_32 = arith.constant 0 : index
    %73 = vector.load %arg14[%c0_31, %c0_32] : memref<8x256xbf16, #tpu.memory_space<vmem>>, vector<8x128xbf16>
    %cst_33 = arith.constant dense<0.000000e+00> : vector<8x512xf32>
    %74 = tpu.matmul %73, %0, %cst_33 {dimension_numbers = #tpu.dot_dimension_numbers<[1], [0], [0], [1], [0, 0, 1, 1], [], []>} : vector<8x128xbf16>, vector<128x512xbf16>, vector<8x512xf32> -> vector<8x512xf32>
    %75 = arith.addf %72, %74 : vector<8x512xf32>
    %76 = vector.extract_strided_slice %75 {offsets = [0, 0], sizes = [8, 128], strides = [1, 1]} : vector<8x512xf32> to vector<8x128xf32>
    %77 = arith.negf %76 : vector<8x128xf32>
    %78 = math.exp %77 : vector<8x128xf32>
    %cst_34 = arith.constant 1.000000e+00 : f32
    %79 = vector.broadcast %cst_34 : f32 to vector<8x128xf32>
    %80 = arith.addf %79, %78 : vector<8x128xf32>
    %81 = arith.divf %79, %80 : vector<8x128xf32>
    %82 = vector.extract_strided_slice %75 {offsets = [0, 128], sizes = [8, 128], strides = [1, 1]} : vector<8x512xf32> to vector<8x128xf32>
    %83 = arith.negf %82 : vector<8x128xf32>
    %84 = math.exp %83 : vector<8x128xf32>
    %cst_35 = arith.constant 1.000000e+00 : f32
    %85 = vector.broadcast %cst_35 : f32 to vector<8x128xf32>
    %86 = arith.addf %85, %84 : vector<8x128xf32>
    %87 = arith.divf %85, %86 : vector<8x128xf32>
    %88 = vector.extract_strided_slice %75 {offsets = [0, 256], sizes = [8, 128], strides = [1, 1]} : vector<8x512xf32> to vector<8x128xf32>
    %89 = math.tanh %88 : vector<8x128xf32>
    %90 = vector.extract_strided_slice %75 {offsets = [0, 384], sizes = [8, 128], strides = [1, 1]} : vector<8x512xf32> to vector<8x128xf32>
    %91 = arith.negf %90 : vector<8x128xf32>
    %92 = math.exp %91 : vector<8x128xf32>
    %cst_36 = arith.constant 1.000000e+00 : f32
    %93 = vector.broadcast %cst_36 : f32 to vector<8x128xf32>
    %94 = arith.addf %93, %92 : vector<8x128xf32>
    %95 = arith.divf %93, %94 : vector<8x128xf32>
    %96 = arith.mulf %87, %34 : vector<8x128xf32>
    %97 = arith.mulf %81, %89 : vector<8x128xf32>
    %98 = arith.addf %96, %97 : vector<8x128xf32>
    %99 = math.tanh %98 : vector<8x128xf32>
    %100 = arith.mulf %95, %99 : vector<8x128xf32>
    %101 = arith.truncf %100 : vector<8x128xf32> to vector<8x128xbf16>
    %c0_37 = arith.constant 0 : index
    %c0_38 = arith.constant 0 : index
    %102 = vector.load %arg14[%c0_37, %c0_38] : memref<8x256xbf16, #tpu.memory_space<vmem>>, vector<8x128xbf16>
    tpu.vector_store %arg14[%c0_37, %c0_38], %101 {strides = array<i32>} : memref<8x256xbf16, #tpu.memory_space<vmem>>, vector<8x128xbf16>,
    %c0_39 = arith.constant 0 : index
    %c0_40 = arith.constant 0 : index
    %103 = vector.load %arg14[%c0_39, %c0_40] : memref<8x256xbf16, #tpu.memory_space<vmem>>, vector<8x256xbf16>
    %cst_41 = arith.constant dense<0.000000e+00> : vector<8x512xf32>
    %104 = tpu.matmul %103, %1, %cst_41 {dimension_numbers = #tpu.dot_dimension_numbers<[1], [0], [0], [1], [0, 0, 1, 1], [], []>} : vector<8x256xbf16>, vector<256x512xbf16>, vector<8x512xf32> -> vector<8x512xf32>
    %105 = vector.broadcast %2 : vector<1x512xf32> to vector<8x512xf32>
    %106 = arith.addf %104, %105 : vector<8x512xf32>
    %107 = vector.extract_strided_slice %106 {offsets = [0, 0], sizes = [8, 128], strides = [1, 1]} : vector<8x512xf32> to vector<8x128xf32>
    %108 = arith.negf %107 : vector<8x128xf32>
    %109 = math.exp %108 : vector<8x128xf32>
    %cst_42 = arith.constant 1.000000e+00 : f32
    %110 = vector.broadcast %cst_42 : f32 to vector<8x128xf32>
    %111 = arith.addf %110, %109 : vector<8x128xf32>
    %112 = arith.divf %110, %111 : vector<8x128xf32>
    %113 = vector.extract_strided_slice %106 {offsets = [0, 128], sizes = [8, 128], strides = [1, 1]} : vector<8x512xf32> to vector<8x128xf32>
    %114 = arith.negf %113 : vector<8x128xf32>
    %115 = math.exp %114 : vector<8x128xf32>
    %cst_43 = arith.constant 1.000000e+00 : f32
    %116 = vector.broadcast %cst_43 : f32 to vector<8x128xf32>
    %117 = arith.addf %116, %115 : vector<8x128xf32>
    %118 = arith.divf %116, %117 : vector<8x128xf32>
    %119 = vector.extract_strided_slice %106 {offsets = [0, 256], sizes = [8, 128], strides = [1, 1]} : vector<8x512xf32> to vector<8x128xf32>
    %120 = math.tanh %119 : vector<8x128xf32>
    %121 = vector.extract_strided_slice %106 {offsets = [0, 384], sizes = [8, 128], strides = [1, 1]} : vector<8x512xf32> to vector<8x128xf32>
    %122 = arith.negf %121 : vector<8x128xf32>
    %123 = math.exp %122 : vector<8x128xf32>
    %cst_44 = arith.constant 1.000000e+00 : f32
    %124 = vector.broadcast %cst_44 : f32 to vector<8x128xf32>
    %125 = arith.addf %124, %123 : vector<8x128xf32>
    %126 = arith.divf %124, %125 : vector<8x128xf32>
    %127 = arith.mulf %118, %65 : vector<8x128xf32>
    %128 = arith.mulf %112, %120 : vector<8x128xf32>
    %129 = arith.addf %127, %128 : vector<8x128xf32>
    %130 = math.tanh %129 : vector<8x128xf32>
    %131 = arith.mulf %126, %130 : vector<8x128xf32>
    %132 = arith.truncf %131 : vector<8x128xf32> to vector<8x128xbf16>
    %c0_45 = arith.constant 0 : index
    %c128_46 = arith.constant 128 : index
    %133 = vector.load %arg14[%c0_45, %c128_46] : memref<8x256xbf16, #tpu.memory_space<vmem>>, vector<8x128xbf16>
    tpu.vector_store %arg14[%c0_45, %c128_46], %132 {strides = array<i32>} : memref<8x256xbf16, #tpu.memory_space<vmem>>, vector<8x128xbf16>,
    %c8 = arith.constant 8 : index
    %c0_47 = arith.constant 0 : index
    %134 = vector.load %arg13[%c8, %c0_47] : memref<64x128xf32, #tpu.memory_space<vmem>>, vector<8x128xf32>
    tpu.vector_store %arg13[%c8, %c0_47], %131 {strides = array<i32>} : memref<64x128xf32, #tpu.memory_space<vmem>>, vector<8x128xf32>,
    %c2 = arith.constant 2 : index
    %c0_48 = arith.constant 0 : index
    %c0_49 = arith.constant 0 : index
    %135 = vector.load %arg1[%c2, %c0_48, %c0_49] : memref<8x8x512xf32, #tpu.memory_space<vmem>>, vector<1x8x512xf32>
    %136 = vector.shape_cast %135 : vector<1x8x512xf32> to vector<8x512xf32>
    %c0_50 = arith.constant 0 : index
    %c0_51 = arith.constant 0 : index
    %137 = vector.load %arg14[%c0_50, %c0_51] : memref<8x256xbf16, #tpu.memory_space<vmem>>, vector<8x128xbf16>
    %cst_52 = arith.constant dense<0.000000e+00> : vector<8x512xf32>
    %138 = tpu.matmul %137, %0, %cst_52 {dimension_numbers = #tpu.dot_dimension_numbers<[1], [0], [0], [1], [0, 0, 1, 1], [], []>} : vector<8x128xbf16>, vector<128x512xbf16>, vector<8x512xf32> -> vector<8x512xf32>
    %139 = arith.addf %136, %138 : vector<8x512xf32>
    %140 = vector.extract_strided_slice %139 {offsets = [0, 0], sizes = [8, 128], strides = [1, 1]} : vector<8x512xf32> to vector<8x128xf32>
    %141 = arith.negf %140 : vector<8x128xf32>
    %142 = math.exp %141 : vector<8x128xf32>
    %cst_53 = arith.constant 1.000000e+00 : f32
    %143 = vector.broadcast %cst_53 : f32 to vector<8x128xf32>
    %144 = arith.addf %143, %142 : vector<8x128xf32>
    %145 = arith.divf %143, %144 : vector<8x128xf32>
    %146 = vector.extract_strided_slice %139 {offsets = [0, 128], sizes = [8, 128], strides = [1, 1]} : vector<8x512xf32> to vector<8x128xf32>
    %147 = arith.negf %146 : vector<8x128xf32>
    %148 = math.exp %147 : vector<8x128xf32>
    %cst_54 = arith.constant 1.000000e+00 : f32
    %149 = vector.broadcast %cst_54 : f32 to vector<8x128xf32>
    %150 = arith.addf %149, %148 : vector<8x128xf32>
    %151 = arith.divf %149, %150 : vector<8x128xf32>
    %152 = vector.extract_strided_slice %139 {offsets = [0, 256], sizes = [8, 128], strides = [1, 1]} : vector<8x512xf32> to vector<8x128xf32>
    %153 = math.tanh %152 : vector<8x128xf32>
    %154 = vector.extract_strided_slice %139 {offsets = [0, 384], sizes = [8, 128], strides = [1, 1]} : vector<8x512xf32> to vector<8x128xf32>
    %155 = arith.negf %154 : vector<8x128xf32>
    %156 = math.exp %155 : vector<8x128xf32>
    %cst_55 = arith.constant 1.000000e+00 : f32
    %157 = vector.broadcast %cst_55 : f32 to vector<8x128xf32>
    %158 = arith.addf %157, %156 : vector<8x128xf32>
    %159 = arith.divf %157, %158 : vector<8x128xf32>
    %160 = arith.mulf %151, %98 : vector<8x128xf32>
    %161 = arith.mulf %145, %153 : vector<8x128xf32>
    %162 = arith.addf %160, %161 : vector<8x128xf32>
    %163 = math.tanh %162 : vector<8x128xf32>
    %164 = arith.mulf %159, %163 : vector<8x128xf32>
    %165 = arith.truncf %164 : vector<8x128xf32> to vector<8x128xbf16>
    %c0_56 = arith.constant 0 : index
    %c0_57 = arith.constant 0 : index
    %166 = vector.load %arg14[%c0_56, %c0_57] : memref<8x256xbf16, #tpu.memory_space<vmem>>, vector<8x128xbf16>
    tpu.vector_store %arg14[%c0_56, %c0_57], %165 {strides = array<i32>} : memref<8x256xbf16, #tpu.memory_space<vmem>>, vector<8x128xbf16>,
    %c0_58 = arith.constant 0 : index
    %c0_59 = arith.constant 0 : index
    %167 = vector.load %arg14[%c0_58, %c0_59] : memref<8x256xbf16, #tpu.memory_space<vmem>>, vector<8x256xbf16>
    %cst_60 = arith.constant dense<0.000000e+00> : vector<8x512xf32>
    %168 = tpu.matmul %167, %1, %cst_60 {dimension_numbers = #tpu.dot_dimension_numbers<[1], [0], [0], [1], [0, 0, 1, 1], [], []>} : vector<8x256xbf16>, vector<256x512xbf16>, vector<8x512xf32> -> vector<8x512xf32>
    %169 = vector.broadcast %2 : vector<1x512xf32> to vector<8x512xf32>
    %170 = arith.addf %168, %169 : vector<8x512xf32>
    %171 = vector.extract_strided_slice %170 {offsets = [0, 0], sizes = [8, 128], strides = [1, 1]} : vector<8x512xf32> to vector<8x128xf32>
    %172 = arith.negf %171 : vector<8x128xf32>
    %173 = math.exp %172 : vector<8x128xf32>
    %cst_61 = arith.constant 1.000000e+00 : f32
    %174 = vector.broadcast %cst_61 : f32 to vector<8x128xf32>
    %175 = arith.addf %174, %173 : vector<8x128xf32>
    %176 = arith.divf %174, %175 : vector<8x128xf32>
    %177 = vector.extract_strided_slice %170 {offsets = [0, 128], sizes = [8, 128], strides = [1, 1]} : vector<8x512xf32> to vector<8x128xf32>
    %178 = arith.negf %177 : vector<8x128xf32>
    %179 = math.exp %178 : vector<8x128xf32>
    %cst_62 = arith.constant 1.000000e+00 : f32
    %180 = vector.broadcast %cst_62 : f32 to vector<8x128xf32>
    %181 = arith.addf %180, %179 : vector<8x128xf32>
    %182 = arith.divf %180, %181 : vector<8x128xf32>
    %183 = vector.extract_strided_slice %170 {offsets = [0, 256], sizes = [8, 128], strides = [1, 1]} : vector<8x512xf32> to vector<8x128xf32>
    %184 = math.tanh %183 : vector<8x128xf32>
    %185 = vector.extract_strided_slice %170 {offsets = [0, 384], sizes = [8, 128], strides = [1, 1]} : vector<8x512xf32> to vector<8x128xf32>
    %186 = arith.negf %185 : vector<8x128xf32>
    %187 = math.exp %186 : vector<8x128xf32>
    %cst_63 = arith.constant 1.000000e+00 : f32
    %188 = vector.broadcast %cst_63 : f32 to vector<8x128xf32>
    %189 = arith.addf %188, %187 : vector<8x128xf32>
    %190 = arith.divf %188, %189 : vector<8x128xf32>
    %191 = arith.mulf %182, %129 : vector<8x128xf32>
    %192 = arith.mulf %176, %184 : vector<8x128xf32>
    %193 = arith.addf %191, %192 : vector<8x128xf32>
    %194 = math.tanh %193 : vector<8x128xf32>
    %195 = arith.mulf %190, %194 : vector<8x128xf32>
    %196 = arith.truncf %195 : vector<8x128xf32> to vector<8x128xbf16>
    %c0_64 = arith.constant 0 : index
    %c128_65 = arith.constant 128 : index
    %197 = vector.load %arg14[%c0_64, %c128_65] : memref<8x256xbf16, #tpu.memory_space<vmem>>, vector<8x128xbf16>
    tpu.vector_store %arg14[%c0_64, %c128_65], %196 {strides = array<i32>} : memref<8x256xbf16, #tpu.memory_space<vmem>>, vector<8x128xbf16>,
    %c16 = arith.constant 16 : index
    %c0_66 = arith.constant 0 : index
    %198 = vector.load %arg13[%c16, %c0_66] : memref<64x128xf32, #tpu.memory_space<vmem>>, vector<8x128xf32>
    tpu.vector_store %arg13[%c16, %c0_66], %195 {strides = array<i32>} : memref<64x128xf32, #tpu.memory_space<vmem>>, vector<8x128xf32>,
    %c3 = arith.constant 3 : index
    %c0_67 = arith.constant 0 : index
    %c0_68 = arith.constant 0 : index
    %199 = vector.load %arg1[%c3, %c0_67, %c0_68] : memref<8x8x512xf32, #tpu.memory_space<vmem>>, vector<1x8x512xf32>
    %200 = vector.shape_cast %199 : vector<1x8x512xf32> to vector<8x512xf32>
    %c0_69 = arith.constant 0 : index
    %c0_70 = arith.constant 0 : index
    %201 = vector.load %arg14[%c0_69, %c0_70] : memref<8x256xbf16, #tpu.memory_space<vmem>>, vector<8x128xbf16>
    %cst_71 = arith.constant dense<0.000000e+00> : vector<8x512xf32>
    %202 = tpu.matmul %201, %0, %cst_71 {dimension_numbers = #tpu.dot_dimension_numbers<[1], [0], [0], [1], [0, 0, 1, 1], [], []>} : vector<8x128xbf16>, vector<128x512xbf16>, vector<8x512xf32> -> vector<8x512xf32>
    %203 = arith.addf %200, %202 : vector<8x512xf32>
    %204 = vector.extract_strided_slice %203 {offsets = [0, 0], sizes = [8, 128], strides = [1, 1]} : vector<8x512xf32> to vector<8x128xf32>
    %205 = arith.negf %204 : vector<8x128xf32>
    %206 = math.exp %205 : vector<8x128xf32>
    %cst_72 = arith.constant 1.000000e+00 : f32
    %207 = vector.broadcast %cst_72 : f32 to vector<8x128xf32>
    %208 = arith.addf %207, %206 : vector<8x128xf32>
    %209 = arith.divf %207, %208 : vector<8x128xf32>
    %210 = vector.extract_strided_slice %203 {offsets = [0, 128], sizes = [8, 128], strides = [1, 1]} : vector<8x512xf32> to vector<8x128xf32>
    %211 = arith.negf %210 : vector<8x128xf32>
    %212 = math.exp %211 : vector<8x128xf32>
    %cst_73 = arith.constant 1.000000e+00 : f32
    %213 = vector.broadcast %cst_73 : f32 to vector<8x128xf32>
    %214 = arith.addf %213, %212 : vector<8x128xf32>
    %215 = arith.divf %213, %214 : vector<8x128xf32>
    %216 = vector.extract_strided_slice %203 {offsets = [0, 256], sizes = [8, 128], strides = [1, 1]} : vector<8x512xf32> to vector<8x128xf32>
    %217 = math.tanh %216 : vector<8x128xf32>
    %218 = vector.extract_strided_slice %203 {offsets = [0, 384], sizes = [8, 128], strides = [1, 1]} : vector<8x512xf32> to vector<8x128xf32>
    %219 = arith.negf %218 : vector<8x128xf32>
    %220 = math.exp %219 : vector<8x128xf32>
    %cst_74 = arith.constant 1.000000e+00 : f32
    %221 = vector.broadcast %cst_74 : f32 to vector<8x128xf32>
    %222 = arith.addf %221, %220 : vector<8x128xf32>
    %223 = arith.divf %221, %222 : vector<8x128xf32>
    %224 = arith.mulf %215, %162 : vector<8x128xf32>
    %225 = arith.mulf %209, %217 : vector<8x128xf32>
    %226 = arith.addf %224, %225 : vector<8x128xf32>
    %227 = math.tanh %226 : vector<8x128xf32>
    %228 = arith.mulf %223, %227 : vector<8x128xf32>
    %229 = arith.truncf %228 : vector<8x128xf32> to vector<8x128xbf16>
    %c0_75 = arith.constant 0 : index
    %c0_76 = arith.constant 0 : index
    %230 = vector.load %arg14[%c0_75, %c0_76] : memref<8x256xbf16, #tpu.memory_space<vmem>>, vector<8x128xbf16>
    tpu.vector_store %arg14[%c0_75, %c0_76], %229 {strides = array<i32>} : memref<8x256xbf16, #tpu.memory_space<vmem>>, vector<8x128xbf16>,
    %c0_77 = arith.constant 0 : index
    %c0_78 = arith.constant 0 : index
    %231 = vector.load %arg14[%c0_77, %c0_78] : memref<8x256xbf16, #tpu.memory_space<vmem>>, vector<8x256xbf16>
    %cst_79 = arith.constant dense<0.000000e+00> : vector<8x512xf32>
    %232 = tpu.matmul %231, %1, %cst_79 {dimension_numbers = #tpu.dot_dimension_numbers<[1], [0], [0], [1], [0, 0, 1, 1], [], []>} : vector<8x256xbf16>, vector<256x512xbf16>, vector<8x512xf32> -> vector<8x512xf32>
    %233 = vector.broadcast %2 : vector<1x512xf32> to vector<8x512xf32>
    %234 = arith.addf %232, %233 : vector<8x512xf32>
    %235 = vector.extract_strided_slice %234 {offsets = [0, 0], sizes = [8, 128], strides = [1, 1]} : vector<8x512xf32> to vector<8x128xf32>
    %236 = arith.negf %235 : vector<8x128xf32>
    %237 = math.exp %236 : vector<8x128xf32>
    %cst_80 = arith.constant 1.000000e+00 : f32
    %238 = vector.broadcast %cst_80 : f32 to vector<8x128xf32>
    %239 = arith.addf %238, %237 : vector<8x128xf32>
    %240 = arith.divf %238, %239 : vector<8x128xf32>
    %241 = vector.extract_strided_slice %234 {offsets = [0, 128], sizes = [8, 128], strides = [1, 1]} : vector<8x512xf32> to vector<8x128xf32>
    %242 = arith.negf %241 : vector<8x128xf32>
    %243 = math.exp %242 : vector<8x128xf32>
    %cst_81 = arith.constant 1.000000e+00 : f32
    %244 = vector.broadcast %cst_81 : f32 to vector<8x128xf32>
    %245 = arith.addf %244, %243 : vector<8x128xf32>
    %246 = arith.divf %244, %245 : vector<8x128xf32>
    %247 = vector.extract_strided_slice %234 {offsets = [0, 256], sizes = [8, 128], strides = [1, 1]} : vector<8x512xf32> to vector<8x128xf32>
    %248 = math.tanh %247 : vector<8x128xf32>
    %249 = vector.extract_strided_slice %234 {offsets = [0, 384], sizes = [8, 128], strides = [1, 1]} : vector<8x512xf32> to vector<8x128xf32>
    %250 = arith.negf %249 : vector<8x128xf32>
    %251 = math.exp %250 : vector<8x128xf32>
    %cst_82 = arith.constant 1.000000e+00 : f32
    %252 = vector.broadcast %cst_82 : f32 to vector<8x128xf32>
    %253 = arith.addf %252, %251 : vector<8x128xf32>
    %254 = arith.divf %252, %253 : vector<8x128xf32>
    %255 = arith.mulf %246, %193 : vector<8x128xf32>
    %256 = arith.mulf %240, %248 : vector<8x128xf32>
    %257 = arith.addf %255, %256 : vector<8x128xf32>
    %258 = math.tanh %257 : vector<8x128xf32>
    %259 = arith.mulf %254, %258 : vector<8x128xf32>
    %260 = arith.truncf %259 : vector<8x128xf32> to vector<8x128xbf16>
    %c0_83 = arith.constant 0 : index
    %c128_84 = arith.constant 128 : index
    %261 = vector.load %arg14[%c0_83, %c128_84] : memref<8x256xbf16, #tpu.memory_space<vmem>>, vector<8x128xbf16>
    tpu.vector_store %arg14[%c0_83, %c128_84], %260 {strides = array<i32>} : memref<8x256xbf16, #tpu.memory_space<vmem>>, vector<8x128xbf16>,
    %c24 = arith.constant 24 : index
    %c0_85 = arith.constant 0 : index
    %262 = vector.load %arg13[%c24, %c0_85] : memref<64x128xf32, #tpu.memory_space<vmem>>, vector<8x128xf32>
    tpu.vector_store %arg13[%c24, %c0_85], %259 {strides = array<i32>} : memref<64x128xf32, #tpu.memory_space<vmem>>, vector<8x128xf32>,
    %c4 = arith.constant 4 : index
    %c0_86 = arith.constant 0 : index
    %c0_87 = arith.constant 0 : index
    %263 = vector.load %arg1[%c4, %c0_86, %c0_87] : memref<8x8x512xf32, #tpu.memory_space<vmem>>, vector<1x8x512xf32>
    %264 = vector.shape_cast %263 : vector<1x8x512xf32> to vector<8x512xf32>
    %c0_88 = arith.constant 0 : index
    %c0_89 = arith.constant 0 : index
    %265 = vector.load %arg14[%c0_88, %c0_89] : memref<8x256xbf16, #tpu.memory_space<vmem>>, vector<8x128xbf16>
    %cst_90 = arith.constant dense<0.000000e+00> : vector<8x512xf32>
    %266 = tpu.matmul %265, %0, %cst_90 {dimension_numbers = #tpu.dot_dimension_numbers<[1], [0], [0], [1], [0, 0, 1, 1], [], []>} : vector<8x128xbf16>, vector<128x512xbf16>, vector<8x512xf32> -> vector<8x512xf32>
    %267 = arith.addf %264, %266 : vector<8x512xf32>
    %268 = vector.extract_strided_slice %267 {offsets = [0, 0], sizes = [8, 128], strides = [1, 1]} : vector<8x512xf32> to vector<8x128xf32>
    %269 = arith.negf %268 : vector<8x128xf32>
    %270 = math.exp %269 : vector<8x128xf32>
    %cst_91 = arith.constant 1.000000e+00 : f32
    %271 = vector.broadcast %cst_91 : f32 to vector<8x128xf32>
    %272 = arith.addf %271, %270 : vector<8x128xf32>
    %273 = arith.divf %271, %272 : vector<8x128xf32>
    %274 = vector.extract_strided_slice %267 {offsets = [0, 128], sizes = [8, 128], strides = [1, 1]} : vector<8x512xf32> to vector<8x128xf32>
    %275 = arith.negf %274 : vector<8x128xf32>
    %276 = math.exp %275 : vector<8x128xf32>
    %cst_92 = arith.constant 1.000000e+00 : f32
    %277 = vector.broadcast %cst_92 : f32 to vector<8x128xf32>
    %278 = arith.addf %277, %276 : vector<8x128xf32>
    %279 = arith.divf %277, %278 : vector<8x128xf32>
    %280 = vector.extract_strided_slice %267 {offsets = [0, 256], sizes = [8, 128], strides = [1, 1]} : vector<8x512xf32> to vector<8x128xf32>
    %281 = math.tanh %280 : vector<8x128xf32>
    %282 = vector.extract_strided_slice %267 {offsets = [0, 384], sizes = [8, 128], strides = [1, 1]} : vector<8x512xf32> to vector<8x128xf32>
    %283 = arith.negf %282 : vector<8x128xf32>
    %284 = math.exp %283 : vector<8x128xf32>
    %cst_93 = arith.constant 1.000000e+00 : f32
    %285 = vector.broadcast %cst_93 : f32 to vector<8x128xf32>
    %286 = arith.addf %285, %284 : vector<8x128xf32>
    %287 = arith.divf %285, %286 : vector<8x128xf32>
    %288 = arith.mulf %279, %226 : vector<8x128xf32>
    %289 = arith.mulf %273, %281 : vector<8x128xf32>
    %290 = arith.addf %288, %289 : vector<8x128xf32>
    %291 = math.tanh %290 : vector<8x128xf32>
    %292 = arith.mulf %287, %291 : vector<8x128xf32>
    %293 = arith.truncf %292 : vector<8x128xf32> to vector<8x128xbf16>
    %c0_94 = arith.constant 0 : index
    %c0_95 = arith.constant 0 : index
    %294 = vector.load %arg14[%c0_94, %c0_95] : memref<8x256xbf16, #tpu.memory_space<vmem>>, vector<8x128xbf16>
    tpu.vector_store %arg14[%c0_94, %c0_95], %293 {strides = array<i32>} : memref<8x256xbf16, #tpu.memory_space<vmem>>, vector<8x128xbf16>,
    %c0_96 = arith.constant 0 : index
    %c0_97 = arith.constant 0 : index
    %295 = vector.load %arg14[%c0_96, %c0_97] : memref<8x256xbf16, #tpu.memory_space<vmem>>, vector<8x256xbf16>
    %cst_98 = arith.constant dense<0.000000e+00> : vector<8x512xf32>
    %296 = tpu.matmul %295, %1, %cst_98 {dimension_numbers = #tpu.dot_dimension_numbers<[1], [0], [0], [1], [0, 0, 1, 1], [], []>} : vector<8x256xbf16>, vector<256x512xbf16>, vector<8x512xf32> -> vector<8x512xf32>
    %297 = vector.broadcast %2 : vector<1x512xf32> to vector<8x512xf32>
    %298 = arith.addf %296, %297 : vector<8x512xf32>
    %299 = vector.extract_strided_slice %298 {offsets = [0, 0], sizes = [8, 128], strides = [1, 1]} : vector<8x512xf32> to vector<8x128xf32>
    %300 = arith.negf %299 : vector<8x128xf32>
    %301 = math.exp %300 : vector<8x128xf32>
    %cst_99 = arith.constant 1.000000e+00 : f32
    %302 = vector.broadcast %cst_99 : f32 to vector<8x128xf32>
    %303 = arith.addf %302, %301 : vector<8x128xf32>
    %304 = arith.divf %302, %303 : vector<8x128xf32>
    %305 = vector.extract_strided_slice %298 {offsets = [0, 128], sizes = [8, 128], strides = [1, 1]} : vector<8x512xf32> to vector<8x128xf32>
    %306 = arith.negf %305 : vector<8x128xf32>
    %307 = math.exp %306 : vector<8x128xf32>
    %cst_100 = arith.constant 1.000000e+00 : f32
    %308 = vector.broadcast %cst_100 : f32 to vector<8x128xf32>
    %309 = arith.addf %308, %307 : vector<8x128xf32>
    %310 = arith.divf %308, %309 : vector<8x128xf32>
    %311 = vector.extract_strided_slice %298 {offsets = [0, 256], sizes = [8, 128], strides = [1, 1]} : vector<8x512xf32> to vector<8x128xf32>
    %312 = math.tanh %311 : vector<8x128xf32>
    %313 = vector.extract_strided_slice %298 {offsets = [0, 384], sizes = [8, 128], strides = [1, 1]} : vector<8x512xf32> to vector<8x128xf32>
    %314 = arith.negf %313 : vector<8x128xf32>
    %315 = math.exp %314 : vector<8x128xf32>
    %cst_101 = arith.constant 1.000000e+00 : f32
    %316 = vector.broadcast %cst_101 : f32 to vector<8x128xf32>
    %317 = arith.addf %316, %315 : vector<8x128xf32>
    %318 = arith.divf %316, %317 : vector<8x128xf32>
    %319 = arith.mulf %310, %257 : vector<8x128xf32>
    %320 = arith.mulf %304, %312 : vector<8x128xf32>
    %321 = arith.addf %319, %320 : vector<8x128xf32>
    %322 = math.tanh %321 : vector<8x128xf32>
    %323 = arith.mulf %318, %322 : vector<8x128xf32>
    %324 = arith.truncf %323 : vector<8x128xf32> to vector<8x128xbf16>
    %c0_102 = arith.constant 0 : index
    %c128_103 = arith.constant 128 : index
    %325 = vector.load %arg14[%c0_102, %c128_103] : memref<8x256xbf16, #tpu.memory_space<vmem>>, vector<8x128xbf16>
    tpu.vector_store %arg14[%c0_102, %c128_103], %324 {strides = array<i32>} : memref<8x256xbf16, #tpu.memory_space<vmem>>, vector<8x128xbf16>,
    %c32 = arith.constant 32 : index
    %c0_104 = arith.constant 0 : index
    %326 = vector.load %arg13[%c32, %c0_104] : memref<64x128xf32, #tpu.memory_space<vmem>>, vector<8x128xf32>
    tpu.vector_store %arg13[%c32, %c0_104], %323 {strides = array<i32>} : memref<64x128xf32, #tpu.memory_space<vmem>>, vector<8x128xf32>,
    %c5 = arith.constant 5 : index
    %c0_105 = arith.constant 0 : index
    %c0_106 = arith.constant 0 : index
    %327 = vector.load %arg1[%c5, %c0_105, %c0_106] : memref<8x8x512xf32, #tpu.memory_space<vmem>>, vector<1x8x512xf32>
    %328 = vector.shape_cast %327 : vector<1x8x512xf32> to vector<8x512xf32>
    %c0_107 = arith.constant 0 : index
    %c0_108 = arith.constant 0 : index
    %329 = vector.load %arg14[%c0_107, %c0_108] : memref<8x256xbf16, #tpu.memory_space<vmem>>, vector<8x128xbf16>
    %cst_109 = arith.constant dense<0.000000e+00> : vector<8x512xf32>
    %330 = tpu.matmul %329, %0, %cst_109 {dimension_numbers = #tpu.dot_dimension_numbers<[1], [0], [0], [1], [0, 0, 1, 1], [], []>} : vector<8x128xbf16>, vector<128x512xbf16>, vector<8x512xf32> -> vector<8x512xf32>
    %331 = arith.addf %328, %330 : vector<8x512xf32>
    %332 = vector.extract_strided_slice %331 {offsets = [0, 0], sizes = [8, 128], strides = [1, 1]} : vector<8x512xf32> to vector<8x128xf32>
    %333 = arith.negf %332 : vector<8x128xf32>
    %334 = math.exp %333 : vector<8x128xf32>
    %cst_110 = arith.constant 1.000000e+00 : f32
    %335 = vector.broadcast %cst_110 : f32 to vector<8x128xf32>
    %336 = arith.addf %335, %334 : vector<8x128xf32>
    %337 = arith.divf %335, %336 : vector<8x128xf32>
    %338 = vector.extract_strided_slice %331 {offsets = [0, 128], sizes = [8, 128], strides = [1, 1]} : vector<8x512xf32> to vector<8x128xf32>
    %339 = arith.negf %338 : vector<8x128xf32>
    %340 = math.exp %339 : vector<8x128xf32>
    %cst_111 = arith.constant 1.000000e+00 : f32
    %341 = vector.broadcast %cst_111 : f32 to vector<8x128xf32>
    %342 = arith.addf %341, %340 : vector<8x128xf32>
    %343 = arith.divf %341, %342 : vector<8x128xf32>
    %344 = vector.extract_strided_slice %331 {offsets = [0, 256], sizes = [8, 128], strides = [1, 1]} : vector<8x512xf32> to vector<8x128xf32>
    %345 = math.tanh %344 : vector<8x128xf32>
    %346 = vector.extract_strided_slice %331 {offsets = [0, 384], sizes = [8, 128], strides = [1, 1]} : vector<8x512xf32> to vector<8x128xf32>
    %347 = arith.negf %346 : vector<8x128xf32>
    %348 = math.exp %347 : vector<8x128xf32>
    %cst_112 = arith.constant 1.000000e+00 : f32
    %349 = vector.broadcast %cst_112 : f32 to vector<8x128xf32>
    %350 = arith.addf %349, %348 : vector<8x128xf32>
    %351 = arith.divf %349, %350 : vector<8x128xf32>
    %352 = arith.mulf %343, %290 : vector<8x128xf32>
    %353 = arith.mulf %337, %345 : vector<8x128xf32>
    %354 = arith.addf %352, %353 : vector<8x128xf32>
    %355 = math.tanh %354 : vector<8x128xf32>
    %356 = arith.mulf %351, %355 : vector<8x128xf32>
    %357 = arith.truncf %356 : vector<8x128xf32> to vector<8x128xbf16>
    %c0_113 = arith.constant 0 : index
    %c0_114 = arith.constant 0 : index
    %358 = vector.load %arg14[%c0_113, %c0_114] : memref<8x256xbf16, #tpu.memory_space<vmem>>, vector<8x128xbf16>
    tpu.vector_store %arg14[%c0_113, %c0_114], %357 {strides = array<i32>} : memref<8x256xbf16, #tpu.memory_space<vmem>>, vector<8x128xbf16>,
    %c0_115 = arith.constant 0 : index
    %c0_116 = arith.constant 0 : index
    %359 = vector.load %arg14[%c0_115, %c0_116] : memref<8x256xbf16, #tpu.memory_space<vmem>>, vector<8x256xbf16>
    %cst_117 = arith.constant dense<0.000000e+00> : vector<8x512xf32>
    %360 = tpu.matmul %359, %1, %cst_117 {dimension_numbers = #tpu.dot_dimension_numbers<[1], [0], [0], [1], [0, 0, 1, 1], [], []>} : vector<8x256xbf16>, vector<256x512xbf16>, vector<8x512xf32> -> vector<8x512xf32>
    %361 = vector.broadcast %2 : vector<1x512xf32> to vector<8x512xf32>
    %362 = arith.addf %360, %361 : vector<8x512xf32>
    %363 = vector.extract_strided_slice %362 {offsets = [0, 0], sizes = [8, 128], strides = [1, 1]} : vector<8x512xf32> to vector<8x128xf32>
    %364 = arith.negf %363 : vector<8x128xf32>
    %365 = math.exp %364 : vector<8x128xf32>
    %cst_118 = arith.constant 1.000000e+00 : f32
    %366 = vector.broadcast %cst_118 : f32 to vector<8x128xf32>
    %367 = arith.addf %366, %365 : vector<8x128xf32>
    %368 = arith.divf %366, %367 : vector<8x128xf32>
    %369 = vector.extract_strided_slice %362 {offsets = [0, 128], sizes = [8, 128], strides = [1, 1]} : vector<8x512xf32> to vector<8x128xf32>
    %370 = arith.negf %369 : vector<8x128xf32>
    %371 = math.exp %370 : vector<8x128xf32>
    %cst_119 = arith.constant 1.000000e+00 : f32
    %372 = vector.broadcast %cst_119 : f32 to vector<8x128xf32>
    %373 = arith.addf %372, %371 : vector<8x128xf32>
    %374 = arith.divf %372, %373 : vector<8x128xf32>
    %375 = vector.extract_strided_slice %362 {offsets = [0, 256], sizes = [8, 128], strides = [1, 1]} : vector<8x512xf32> to vector<8x128xf32>
    %376 = math.tanh %375 : vector<8x128xf32>
    %377 = vector.extract_strided_slice %362 {offsets = [0, 384], sizes = [8, 128], strides = [1, 1]} : vector<8x512xf32> to vector<8x128xf32>
    %378 = arith.negf %377 : vector<8x128xf32>
    %379 = math.exp %378 : vector<8x128xf32>
    %cst_120 = arith.constant 1.000000e+00 : f32
    %380 = vector.broadcast %cst_120 : f32 to vector<8x128xf32>
    %381 = arith.addf %380, %379 : vector<8x128xf32>
    %382 = arith.divf %380, %381 : vector<8x128xf32>
    %383 = arith.mulf %374, %321 : vector<8x128xf32>
    %384 = arith.mulf %368, %376 : vector<8x128xf32>
    %385 = arith.addf %383, %384 : vector<8x128xf32>
    %386 = math.tanh %385 : vector<8x128xf32>
    %387 = arith.mulf %382, %386 : vector<8x128xf32>
    %388 = arith.truncf %387 : vector<8x128xf32> to vector<8x128xbf16>
    %c0_121 = arith.constant 0 : index
    %c128_122 = arith.constant 128 : index
    %389 = vector.load %arg14[%c0_121, %c128_122] : memref<8x256xbf16, #tpu.memory_space<vmem>>, vector<8x128xbf16>
    tpu.vector_store %arg14[%c0_121, %c128_122], %388 {strides = array<i32>} : memref<8x256xbf16, #tpu.memory_space<vmem>>, vector<8x128xbf16>,
    %c40 = arith.constant 40 : index
    %c0_123 = arith.constant 0 : index
    %390 = vector.load %arg13[%c40, %c0_123] : memref<64x128xf32, #tpu.memory_space<vmem>>, vector<8x128xf32>
    tpu.vector_store %arg13[%c40, %c0_123], %387 {strides = array<i32>} : memref<64x128xf32, #tpu.memory_space<vmem>>, vector<8x128xf32>,
    %c6 = arith.constant 6 : index
    %c0_124 = arith.constant 0 : index
    %c0_125 = arith.constant 0 : index
    %391 = vector.load %arg1[%c6, %c0_124, %c0_125] : memref<8x8x512xf32, #tpu.memory_space<vmem>>, vector<1x8x512xf32>
    %392 = vector.shape_cast %391 : vector<1x8x512xf32> to vector<8x512xf32>
    %c0_126 = arith.constant 0 : index
    %c0_127 = arith.constant 0 : index
    %393 = vector.load %arg14[%c0_126, %c0_127] : memref<8x256xbf16, #tpu.memory_space<vmem>>, vector<8x128xbf16>
    %cst_128 = arith.constant dense<0.000000e+00> : vector<8x512xf32>
    %394 = tpu.matmul %393, %0, %cst_128 {dimension_numbers = #tpu.dot_dimension_numbers<[1], [0], [0], [1], [0, 0, 1, 1], [], []>} : vector<8x128xbf16>, vector<128x512xbf16>, vector<8x512xf32> -> vector<8x512xf32>
    %395 = arith.addf %392, %394 : vector<8x512xf32>
    %396 = vector.extract_strided_slice %395 {offsets = [0, 0], sizes = [8, 128], strides = [1, 1]} : vector<8x512xf32> to vector<8x128xf32>
    %397 = arith.negf %396 : vector<8x128xf32>
    %398 = math.exp %397 : vector<8x128xf32>
    %cst_129 = arith.constant 1.000000e+00 : f32
    %399 = vector.broadcast %cst_129 : f32 to vector<8x128xf32>
    %400 = arith.addf %399, %398 : vector<8x128xf32>
    %401 = arith.divf %399, %400 : vector<8x128xf32>
    %402 = vector.extract_strided_slice %395 {offsets = [0, 128], sizes = [8, 128], strides = [1, 1]} : vector<8x512xf32> to vector<8x128xf32>
    %403 = arith.negf %402 : vector<8x128xf32>
    %404 = math.exp %403 : vector<8x128xf32>
    %cst_130 = arith.constant 1.000000e+00 : f32
    %405 = vector.broadcast %cst_130 : f32 to vector<8x128xf32>
    %406 = arith.addf %405, %404 : vector<8x128xf32>
    %407 = arith.divf %405, %406 : vector<8x128xf32>
    %408 = vector.extract_strided_slice %395 {offsets = [0, 256], sizes = [8, 128], strides = [1, 1]} : vector<8x512xf32> to vector<8x128xf32>
    %409 = math.tanh %408 : vector<8x128xf32>
    %410 = vector.extract_strided_slice %395 {offsets = [0, 384], sizes = [8, 128], strides = [1, 1]} : vector<8x512xf32> to vector<8x128xf32>
    %411 = arith.negf %410 : vector<8x128xf32>
    %412 = math.exp %411 : vector<8x128xf32>
    %cst_131 = arith.constant 1.000000e+00 : f32
    %413 = vector.broadcast %cst_131 : f32 to vector<8x128xf32>
    %414 = arith.addf %413, %412 : vector<8x128xf32>
    %415 = arith.divf %413, %414 : vector<8x128xf32>
    %416 = arith.mulf %407, %354 : vector<8x128xf32>
    %417 = arith.mulf %401, %409 : vector<8x128xf32>
    %418 = arith.addf %416, %417 : vector<8x128xf32>
    %419 = math.tanh %418 : vector<8x128xf32>
    %420 = arith.mulf %415, %419 : vector<8x128xf32>
    %421 = arith.truncf %420 : vector<8x128xf32> to vector<8x128xbf16>
    %c0_132 = arith.constant 0 : index
    %c0_133 = arith.constant 0 : index
    %422 = vector.load %arg14[%c0_132, %c0_133] : memref<8x256xbf16, #tpu.memory_space<vmem>>, vector<8x128xbf16>
    tpu.vector_store %arg14[%c0_132, %c0_133], %421 {strides = array<i32>} : memref<8x256xbf16, #tpu.memory_space<vmem>>, vector<8x128xbf16>,
    %c0_134 = arith.constant 0 : index
    %c0_135 = arith.constant 0 : index
    %423 = vector.load %arg14[%c0_134, %c0_135] : memref<8x256xbf16, #tpu.memory_space<vmem>>, vector<8x256xbf16>
    %cst_136 = arith.constant dense<0.000000e+00> : vector<8x512xf32>
    %424 = tpu.matmul %423, %1, %cst_136 {dimension_numbers = #tpu.dot_dimension_numbers<[1], [0], [0], [1], [0, 0, 1, 1], [], []>} : vector<8x256xbf16>, vector<256x512xbf16>, vector<8x512xf32> -> vector<8x512xf32>
    %425 = vector.broadcast %2 : vector<1x512xf32> to vector<8x512xf32>
    %426 = arith.addf %424, %425 : vector<8x512xf32>
    %427 = vector.extract_strided_slice %426 {offsets = [0, 0], sizes = [8, 128], strides = [1, 1]} : vector<8x512xf32> to vector<8x128xf32>
    %428 = arith.negf %427 : vector<8x128xf32>
    %429 = math.exp %428 : vector<8x128xf32>
    %cst_137 = arith.constant 1.000000e+00 : f32
    %430 = vector.broadcast %cst_137 : f32 to vector<8x128xf32>
    %431 = arith.addf %430, %429 : vector<8x128xf32>
    %432 = arith.divf %430, %431 : vector<8x128xf32>
    %433 = vector.extract_strided_slice %426 {offsets = [0, 128], sizes = [8, 128], strides = [1, 1]} : vector<8x512xf32> to vector<8x128xf32>
    %434 = arith.negf %433 : vector<8x128xf32>
    %435 = math.exp %434 : vector<8x128xf32>
    %cst_138 = arith.constant 1.000000e+00 : f32
    %436 = vector.broadcast %cst_138 : f32 to vector<8x128xf32>
    %437 = arith.addf %436, %435 : vector<8x128xf32>
    %438 = arith.divf %436, %437 : vector<8x128xf32>
    %439 = vector.extract_strided_slice %426 {offsets = [0, 256], sizes = [8, 128], strides = [1, 1]} : vector<8x512xf32> to vector<8x128xf32>
    %440 = math.tanh %439 : vector<8x128xf32>
    %441 = vector.extract_strided_slice %426 {offsets = [0, 384], sizes = [8, 128], strides = [1, 1]} : vector<8x512xf32> to vector<8x128xf32>
    %442 = arith.negf %441 : vector<8x128xf32>
    %443 = math.exp %442 : vector<8x128xf32>
    %cst_139 = arith.constant 1.000000e+00 : f32
    %444 = vector.broadcast %cst_139 : f32 to vector<8x128xf32>
    %445 = arith.addf %444, %443 : vector<8x128xf32>
    %446 = arith.divf %444, %445 : vector<8x128xf32>
    %447 = arith.mulf %438, %385 : vector<8x128xf32>
    %448 = arith.mulf %432, %440 : vector<8x128xf32>
    %449 = arith.addf %447, %448 : vector<8x128xf32>
    %450 = math.tanh %449 : vector<8x128xf32>
    %451 = arith.mulf %446, %450 : vector<8x128xf32>
    %452 = arith.truncf %451 : vector<8x128xf32> to vector<8x128xbf16>
    %c0_140 = arith.constant 0 : index
    %c128_141 = arith.constant 128 : index
    %453 = vector.load %arg14[%c0_140, %c128_141] : memref<8x256xbf16, #tpu.memory_space<vmem>>, vector<8x128xbf16>
    tpu.vector_store %arg14[%c0_140, %c128_141], %452 {strides = array<i32>} : memref<8x256xbf16, #tpu.memory_space<vmem>>, vector<8x128xbf16>,
    %c48 = arith.constant 48 : index
    %c0_142 = arith.constant 0 : index
    %454 = vector.load %arg13[%c48, %c0_142] : memref<64x128xf32, #tpu.memory_space<vmem>>, vector<8x128xf32>
    tpu.vector_store %arg13[%c48, %c0_142], %451 {strides = array<i32>} : memref<64x128xf32, #tpu.memory_space<vmem>>, vector<8x128xf32>,
    %c7 = arith.constant 7 : index
    %c0_143 = arith.constant 0 : index
    %c0_144 = arith.constant 0 : index
    %455 = vector.load %arg1[%c7, %c0_143, %c0_144] : memref<8x8x512xf32, #tpu.memory_space<vmem>>, vector<1x8x512xf32>
    %456 = vector.shape_cast %455 : vector<1x8x512xf32> to vector<8x512xf32>
    %c0_145 = arith.constant 0 : index
    %c0_146 = arith.constant 0 : index
    %457 = vector.load %arg14[%c0_145, %c0_146] : memref<8x256xbf16, #tpu.memory_space<vmem>>, vector<8x128xbf16>
    %cst_147 = arith.constant dense<0.000000e+00> : vector<8x512xf32>
    %458 = tpu.matmul %457, %0, %cst_147 {dimension_numbers = #tpu.dot_dimension_numbers<[1], [0], [0], [1], [0, 0, 1, 1], [], []>} : vector<8x128xbf16>, vector<128x512xbf16>, vector<8x512xf32> -> vector<8x512xf32>
    %459 = arith.addf %456, %458 : vector<8x512xf32>
    %460 = vector.extract_strided_slice %459 {offsets = [0, 0], sizes = [8, 128], strides = [1, 1]} : vector<8x512xf32> to vector<8x128xf32>
    %461 = arith.negf %460 : vector<8x128xf32>
    %462 = math.exp %461 : vector<8x128xf32>
    %cst_148 = arith.constant 1.000000e+00 : f32
    %463 = vector.broadcast %cst_148 : f32 to vector<8x128xf32>
    %464 = arith.addf %463, %462 : vector<8x128xf32>
    %465 = arith.divf %463, %464 : vector<8x128xf32>
    %466 = vector.extract_strided_slice %459 {offsets = [0, 128], sizes = [8, 128], strides = [1, 1]} : vector<8x512xf32> to vector<8x128xf32>
    %467 = arith.negf %466 : vector<8x128xf32>
    %468 = math.exp %467 : vector<8x128xf32>
    %cst_149 = arith.constant 1.000000e+00 : f32
    %469 = vector.broadcast %cst_149 : f32 to vector<8x128xf32>
    %470 = arith.addf %469, %468 : vector<8x128xf32>
    %471 = arith.divf %469, %470 : vector<8x128xf32>
    %472 = vector.extract_strided_slice %459 {offsets = [0, 256], sizes = [8, 128], strides = [1, 1]} : vector<8x512xf32> to vector<8x128xf32>
    %473 = math.tanh %472 : vector<8x128xf32>
    %474 = vector.extract_strided_slice %459 {offsets = [0, 384], sizes = [8, 128], strides = [1, 1]} : vector<8x512xf32> to vector<8x128xf32>
    %475 = arith.negf %474 : vector<8x128xf32>
    %476 = math.exp %475 : vector<8x128xf32>
    %cst_150 = arith.constant 1.000000e+00 : f32
    %477 = vector.broadcast %cst_150 : f32 to vector<8x128xf32>
    %478 = arith.addf %477, %476 : vector<8x128xf32>
    %479 = arith.divf %477, %478 : vector<8x128xf32>
    %480 = arith.mulf %471, %418 : vector<8x128xf32>
    %481 = arith.mulf %465, %473 : vector<8x128xf32>
    %482 = arith.addf %480, %481 : vector<8x128xf32>
    %483 = math.tanh %482 : vector<8x128xf32>
    %484 = arith.mulf %479, %483 : vector<8x128xf32>
    %485 = arith.truncf %484 : vector<8x128xf32> to vector<8x128xbf16>
    %c0_151 = arith.constant 0 : index
    %c0_152 = arith.constant 0 : index
    %486 = vector.load %arg14[%c0_151, %c0_152] : memref<8x256xbf16, #tpu.memory_space<vmem>>, vector<8x128xbf16>
    tpu.vector_store %arg14[%c0_151, %c0_152], %485 {strides = array<i32>} : memref<8x256xbf16, #tpu.memory_space<vmem>>, vector<8x128xbf16>,
    %c0_153 = arith.constant 0 : index
    %c0_154 = arith.constant 0 : index
    %487 = vector.load %arg14[%c0_153, %c0_154] : memref<8x256xbf16, #tpu.memory_space<vmem>>, vector<8x256xbf16>
    %cst_155 = arith.constant dense<0.000000e+00> : vector<8x512xf32>
    %488 = tpu.matmul %487, %1, %cst_155 {dimension_numbers = #tpu.dot_dimension_numbers<[1], [0], [0], [1], [0, 0, 1, 1], [], []>} : vector<8x256xbf16>, vector<256x512xbf16>, vector<8x512xf32> -> vector<8x512xf32>
    %489 = vector.broadcast %2 : vector<1x512xf32> to vector<8x512xf32>
    %490 = arith.addf %488, %489 : vector<8x512xf32>
    %491 = vector.extract_strided_slice %490 {offsets = [0, 0], sizes = [8, 128], strides = [1, 1]} : vector<8x512xf32> to vector<8x128xf32>
    %492 = arith.negf %491 : vector<8x128xf32>
    %493 = math.exp %492 : vector<8x128xf32>
    %cst_156 = arith.constant 1.000000e+00 : f32
    %494 = vector.broadcast %cst_156 : f32 to vector<8x128xf32>
    %495 = arith.addf %494, %493 : vector<8x128xf32>
    %496 = arith.divf %494, %495 : vector<8x128xf32>
    %497 = vector.extract_strided_slice %490 {offsets = [0, 128], sizes = [8, 128], strides = [1, 1]} : vector<8x512xf32> to vector<8x128xf32>
    %498 = arith.negf %497 : vector<8x128xf32>
    %499 = math.exp %498 : vector<8x128xf32>
    %cst_157 = arith.constant 1.000000e+00 : f32
    %500 = vector.broadcast %cst_157 : f32 to vector<8x128xf32>
    %501 = arith.addf %500, %499 : vector<8x128xf32>
    %502 = arith.divf %500, %501 : vector<8x128xf32>
    %503 = vector.extract_strided_slice %490 {offsets = [0, 256], sizes = [8, 128], strides = [1, 1]} : vector<8x512xf32> to vector<8x128xf32>
    %504 = math.tanh %503 : vector<8x128xf32>
    %505 = vector.extract_strided_slice %490 {offsets = [0, 384], sizes = [8, 128], strides = [1, 1]} : vector<8x512xf32> to vector<8x128xf32>
    %506 = arith.negf %505 : vector<8x128xf32>
    %507 = math.exp %506 : vector<8x128xf32>
    %cst_158 = arith.constant 1.000000e+00 : f32
    %508 = vector.broadcast %cst_158 : f32 to vector<8x128xf32>
    %509 = arith.addf %508, %507 : vector<8x128xf32>
    %510 = arith.divf %508, %509 : vector<8x128xf32>
    %511 = arith.mulf %502, %449 : vector<8x128xf32>
    %512 = arith.mulf %496, %504 : vector<8x128xf32>
    %513 = arith.addf %511, %512 : vector<8x128xf32>
    %514 = math.tanh %513 : vector<8x128xf32>
    %515 = arith.mulf %510, %514 : vector<8x128xf32>
    %516 = arith.truncf %515 : vector<8x128xf32> to vector<8x128xbf16>
    %c0_159 = arith.constant 0 : index
    %c128_160 = arith.constant 128 : index
    %517 = vector.load %arg14[%c0_159, %c128_160] : memref<8x256xbf16, #tpu.memory_space<vmem>>, vector<8x128xbf16>
    tpu.vector_store %arg14[%c0_159, %c128_160], %516 {strides = array<i32>} : memref<8x256xbf16, #tpu.memory_space<vmem>>, vector<8x128xbf16>,
    %c56 = arith.constant 56 : index
    %c0_161 = arith.constant 0 : index
    %518 = vector.load %arg13[%c56, %c0_161] : memref<64x128xf32, #tpu.memory_space<vmem>>, vector<8x128xf32>
    tpu.vector_store %arg13[%c56, %c0_161], %515 {strides = array<i32>} : memref<64x128xf32, #tpu.memory_space<vmem>>, vector<8x128xf32>,
    %c0_162 = arith.constant 0 : index
    %c0_163 = arith.constant 0 : index
    %519 = vector.load %arg13[%c0_162, %c0_163] : memref<64x128xf32, #tpu.memory_space<vmem>>, vector<64x128xf32>
    %520 = arith.truncf %519 : vector<64x128xf32> to vector<64x128xbf16>
    %c0_164 = arith.constant 0 : index
    %c0_165 = arith.constant 0 : index
    %521 = vector.load %arg5[%c0_164, %c0_165] : memref<128x128xbf16, #tpu.memory_space<vmem>>, vector<128x128xbf16>
    %cst_166 = arith.constant dense<0.000000e+00> : vector<64x128xf32>
    %522 = tpu.matmul %520, %521, %cst_166 {dimension_numbers = #tpu.dot_dimension_numbers<[1], [0], [0], [1], [0, 0, 1, 1], [], []>} : vector<64x128xbf16>, vector<128x128xbf16>, vector<64x128xf32> -> vector<64x128xf32>
    %c0_167 = arith.constant 0 : index
    %c0_168 = arith.constant 0 : index
    %523 = vector.load %arg6[%c0_167, %c0_168] : memref<1x128xf32, #tpu.memory_space<vmem>>, vector<1x128xf32>
    %524 = vector.broadcast %523 : vector<1x128xf32> to vector<64x128xf32>
    %525 = arith.addf %522, %524 : vector<64x128xf32>
    %526 = math.tanh %525 : vector<64x128xf32>
    %c0_169 = arith.constant 0 : index
    %c0_170 = arith.constant 0 : index
    %527 = vector.load %arg7[%c0_169, %c0_170] : memref<128x1xf32, #tpu.memory_space<vmem>>, vector<128x1xf32>
    %cst_171 = arith.constant dense<0.000000e+00> : vector<64x1xf32>
    %528 = tpu.matmul %526, %527, %cst_171 {dimension_numbers = #tpu.dot_dimension_numbers<[1], [0], [0], [1], [0, 0, 1, 1], [], []>} : vector<64x128xf32>, vector<128x1xf32>, vector<64x1xf32> -> vector<64x1xf32>
    %c0_172 = arith.constant 0 : index
    %c0_173 = arith.constant 0 : index
    %529 = vector.load %arg8[%c0_172, %c0_173] : memref<128x1xf32, #tpu.memory_space<vmem>>, vector<128x1xf32>
    %cst_174 = arith.constant dense<0.000000e+00> : vector<64x1xf32>
    %530 = tpu.matmul %519, %529, %cst_174 {dimension_numbers = #tpu.dot_dimension_numbers<[1], [0], [0], [1], [0, 0, 1, 1], [], []>} : vector<64x128xf32>, vector<128x1xf32>, vector<64x1xf32> -> vector<64x1xf32>
    %531 = arith.addf %528, %530 : vector<64x1xf32>
    %532 = vector.extract_strided_slice %531 {offsets = [0, 0], sizes = [8, 1], strides = [1, 1]} : vector<64x1xf32> to vector<8x1xf32>
    %533 = vector.extract_strided_slice %531 {offsets = [8, 0], sizes = [8, 1], strides = [1, 1]} : vector<64x1xf32> to vector<8x1xf32>
    %534 = vector.extract_strided_slice %531 {offsets = [16, 0], sizes = [8, 1], strides = [1, 1]} : vector<64x1xf32> to vector<8x1xf32>
    %535 = vector.extract_strided_slice %531 {offsets = [24, 0], sizes = [8, 1], strides = [1, 1]} : vector<64x1xf32> to vector<8x1xf32>
    %536 = vector.extract_strided_slice %531 {offsets = [32, 0], sizes = [8, 1], strides = [1, 1]} : vector<64x1xf32> to vector<8x1xf32>
    %537 = vector.extract_strided_slice %531 {offsets = [40, 0], sizes = [8, 1], strides = [1, 1]} : vector<64x1xf32> to vector<8x1xf32>
    %538 = vector.extract_strided_slice %531 {offsets = [48, 0], sizes = [8, 1], strides = [1, 1]} : vector<64x1xf32> to vector<8x1xf32>
    %539 = vector.extract_strided_slice %531 {offsets = [56, 0], sizes = [8, 1], strides = [1, 1]} : vector<64x1xf32> to vector<8x1xf32>
    %540 = arith.maximumf %532, %533 : vector<8x1xf32>
    %541 = arith.maximumf %540, %534 : vector<8x1xf32>
    %542 = arith.maximumf %541, %535 : vector<8x1xf32>
    %543 = arith.maximumf %542, %536 : vector<8x1xf32>
    %544 = arith.maximumf %543, %537 : vector<8x1xf32>
    %545 = arith.maximumf %544, %538 : vector<8x1xf32>
    %546 = arith.maximumf %545, %539 : vector<8x1xf32>
    %547 = arith.subf %532, %546 : vector<8x1xf32>
    %548 = math.exp %547 : vector<8x1xf32>
    %549 = arith.subf %533, %546 : vector<8x1xf32>
    %550 = math.exp %549 : vector<8x1xf32>
    %551 = arith.subf %534, %546 : vector<8x1xf32>
    %552 = math.exp %551 : vector<8x1xf32>
    %553 = arith.subf %535, %546 : vector<8x1xf32>
    %554 = math.exp %553 : vector<8x1xf32>
    %555 = arith.subf %536, %546 : vector<8x1xf32>
    %556 = math.exp %555 : vector<8x1xf32>
    %557 = arith.subf %537, %546 : vector<8x1xf32>
    %558 = math.exp %557 : vector<8x1xf32>
    %559 = arith.subf %538, %546 : vector<8x1xf32>
    %560 = math.exp %559 : vector<8x1xf32>
    %561 = arith.subf %539, %546 : vector<8x1xf32>
    %562 = math.exp %561 : vector<8x1xf32>
    %563 = arith.addf %548, %550 : vector<8x1xf32>
    %564 = arith.addf %563, %552 : vector<8x1xf32>
    %565 = arith.addf %564, %554 : vector<8x1xf32>
    %566 = arith.addf %565, %556 : vector<8x1xf32>
    %567 = arith.addf %566, %558 : vector<8x1xf32>
    %568 = arith.addf %567, %560 : vector<8x1xf32>
    %569 = arith.addf %568, %562 : vector<8x1xf32>
    %570 = tpu.reciprocal %569 {approx = true} : vector<8x1xf32> -> vector<8x1xf32>
    %571 = arith.mulf %548, %570 : vector<8x1xf32>
    %572 = arith.mulf %550, %570 : vector<8x1xf32>
    %573 = arith.mulf %552, %570 : vector<8x1xf32>
    %574 = arith.mulf %554, %570 : vector<8x1xf32>
    %575 = arith.mulf %556, %570 : vector<8x1xf32>
    %576 = arith.mulf %558, %570 : vector<8x1xf32>
    %577 = arith.mulf %560, %570 : vector<8x1xf32>
    %578 = arith.mulf %562, %570 : vector<8x1xf32>
    %c0_175 = arith.constant 0 : index
    %c0_176 = arith.constant 0 : index
    %579 = vector.load %arg13[%c0_175, %c0_176] : memref<64x128xf32, #tpu.memory_space<vmem>>, vector<8x128xf32>
    %580 = vector.broadcast %571 : vector<8x1xf32> to vector<8x128xf32>
    %581 = arith.mulf %580, %579 : vector<8x128xf32>
    %c8_177 = arith.constant 8 : index
    %c0_178 = arith.constant 0 : index
    %582 = vector.load %arg13[%c8_177, %c0_178] : memref<64x128xf32, #tpu.memory_space<vmem>>, vector<8x128xf32>
    %583 = vector.broadcast %572 : vector<8x1xf32> to vector<8x128xf32>
    %584 = arith.mulf %583, %582 : vector<8x128xf32>
    %c16_179 = arith.constant 16 : index
    %c0_180 = arith.constant 0 : index
    %585 = vector.load %arg13[%c16_179, %c0_180] : memref<64x128xf32, #tpu.memory_space<vmem>>, vector<8x128xf32>
    %586 = vector.broadcast %573 : vector<8x1xf32> to vector<8x128xf32>
    %587 = arith.mulf %586, %585 : vector<8x128xf32>
    %c24_181 = arith.constant 24 : index
    %c0_182 = arith.constant 0 : index
    %588 = vector.load %arg13[%c24_181, %c0_182] : memref<64x128xf32, #tpu.memory_space<vmem>>, vector<8x128xf32>
    %589 = vector.broadcast %574 : vector<8x1xf32> to vector<8x128xf32>
    %590 = arith.mulf %589, %588 : vector<8x128xf32>
    %c32_183 = arith.constant 32 : index
    %c0_184 = arith.constant 0 : index
    %591 = vector.load %arg13[%c32_183, %c0_184] : memref<64x128xf32, #tpu.memory_space<vmem>>, vector<8x128xf32>
    %592 = vector.broadcast %575 : vector<8x1xf32> to vector<8x128xf32>
    %593 = arith.mulf %592, %591 : vector<8x128xf32>
    %c40_185 = arith.constant 40 : index
    %c0_186 = arith.constant 0 : index
    %594 = vector.load %arg13[%c40_185, %c0_186] : memref<64x128xf32, #tpu.memory_space<vmem>>, vector<8x128xf32>
    %595 = vector.broadcast %576 : vector<8x1xf32> to vector<8x128xf32>
    %596 = arith.mulf %595, %594 : vector<8x128xf32>
    %c48_187 = arith.constant 48 : index
    %c0_188 = arith.constant 0 : index
    %597 = vector.load %arg13[%c48_187, %c0_188] : memref<64x128xf32, #tpu.memory_space<vmem>>, vector<8x128xf32>
    %598 = vector.broadcast %577 : vector<8x1xf32> to vector<8x128xf32>
    %599 = arith.mulf %598, %597 : vector<8x128xf32>
    %c56_189 = arith.constant 56 : index
    %c0_190 = arith.constant 0 : index
    %600 = vector.load %arg13[%c56_189, %c0_190] : memref<64x128xf32, #tpu.memory_space<vmem>>, vector<8x128xf32>
    %601 = vector.broadcast %578 : vector<8x1xf32> to vector<8x128xf32>
    %602 = arith.mulf %601, %600 : vector<8x128xf32>
    %603 = arith.addf %581, %584 : vector<8x128xf32>
    %604 = arith.addf %603, %587 : vector<8x128xf32>
    %605 = arith.addf %604, %590 : vector<8x128xf32>
    %606 = arith.addf %605, %593 : vector<8x128xf32>
    %607 = arith.addf %606, %596 : vector<8x128xf32>
    %608 = arith.addf %607, %599 : vector<8x128xf32>
    %609 = arith.addf %608, %602 : vector<8x128xf32>
    %610 = tpu.concatenate %571, %572, %573, %574, %575, %576, %577, %578 in 1 : vector<8x1xf32>, vector<8x1xf32>, vector<8x1xf32>, vector<8x1xf32>, vector<8x1xf32>, vector<8x1xf32>, vector<8x1xf32>, vector<8x1xf32> -> vector<8x8xf32>
    %c0_191 = arith.constant 0 : index
    %c0_192 = arith.constant 0 : index
    %611 = vector.load %arg12[%c0_191, %c0_192] : memref<8x8xf32, #tpu.memory_space<vmem>>, vector<8x8xf32>
    tpu.vector_store %arg12[%c0_191, %c0_192], %610 {strides = array<i32>} : memref<8x8xf32, #tpu.memory_space<vmem>>, vector<8x8xf32>,
    %c0_193 = arith.constant 0 : index
    %c0_194 = arith.constant 0 : index
    %612 = vector.load %arg9[%c0_193, %c0_194] : memref<128x1xf32, #tpu.memory_space<vmem>>, vector<128x1xf32>
    %cst_195 = arith.constant dense<0.000000e+00> : vector<8x1xf32>
    %613 = tpu.matmul %609, %612, %cst_195 {dimension_numbers = #tpu.dot_dimension_numbers<[1], [0], [0], [1], [0, 0, 1, 1], [], []>} : vector<8x128xf32>, vector<128x1xf32>, vector<8x1xf32> -> vector<8x1xf32>
    %c0_196 = arith.constant 0 : index
    %c0_197 = arith.constant 0 : index
    %614 = vector.load %arg10[%c0_196, %c0_197] : memref<1x1xf32, #tpu.memory_space<vmem>>, vector<1x1xf32>
    %615 = vector.broadcast %614 : vector<1x1xf32> to vector<8x1xf32>
    %616 = arith.addf %613, %615 : vector<8x1xf32>
    %c0_198 = arith.constant 0 : index
    %c0_199 = arith.constant 0 : index
    %617 = vector.load %arg11[%c0_198, %c0_199] : memref<8x1xf32, #tpu.memory_space<vmem>>, vector<8x1xf32>
    tpu.vector_store %arg11[%c0_198, %c0_199], %616 {strides = array<i32>} : memref<8x1xf32, #tpu.memory_space<vmem>>, vector<8x1xf32>,
    return
  }
  func.func @transform_0(%arg0: i32) -> (i32, i32, i32) {
    %c0_i32 = arith.constant 0 : i32
    %c0_i32_0 = arith.constant 0 : i32
    %c0_i32_1 = arith.constant 0 : i32
    return %c0_i32, %arg0, %c0_i32_0 : i32, i32, i32
  }
  func.func @transform_1(%arg0: i32) -> (i32, i32) {
    %c0_i32 = arith.constant 0 : i32
    %c0_i32_0 = arith.constant 0 : i32
    %c0_i32_1 = arith.constant 0 : i32
    return %c0_i32, %c0_i32_0 : i32, i32
  }
  func.func @transform_2(%arg0: i32) -> (i32, i32) {
    %c0_i32 = arith.constant 0 : i32
    %c0_i32_0 = arith.constant 0 : i32
    %c0_i32_1 = arith.constant 0 : i32
    return %c0_i32, %c0_i32_0 : i32, i32
  }
  func.func @transform_3(%arg0: i32) -> (i32, i32) {
    %c0_i32 = arith.constant 0 : i32
    %c0_i32_0 = arith.constant 0 : i32
    %c0_i32_1 = arith.constant 0 : i32
    return %c0_i32, %c0_i32_0 : i32, i32
  }
  func.func @transform_4(%arg0: i32) -> (i32, i32) {
    %c0_i32 = arith.constant 0 : i32
    %c0_i32_0 = arith.constant 0 : i32
    %c0_i32_1 = arith.constant 0 : i32
    return %c0_i32, %c0_i32_0 : i32, i32
  }
  func.func @transform_5(%arg0: i32) -> (i32, i32) {
    %c0_i32 = arith.constant 0 : i32
    %c0_i32_0 = arith.constant 0 : i32
    %c0_i32_1 = arith.constant 0 : i32
    return %c0_i32, %c0_i32_0 : i32, i32
  }
  func.func @transform_6(%arg0: i32) -> (i32, i32) {
    %c0_i32 = arith.constant 0 : i32
    %c0_i32_0 = arith.constant 0 : i32
    %c0_i32_1 = arith.constant 0 : i32
    return %c0_i32, %c0_i32_0 : i32, i32
  }
  func.func @transform_7(%arg0: i32) -> (i32, i32) {
    %c0_i32 = arith.constant 0 : i32
    %c0_i32_0 = arith.constant 0 : i32
    %c0_i32_1 = arith.constant 0 : i32
    return %c0_i32, %c0_i32_0 : i32, i32
  }
  func.func @transform_8(%arg0: i32) -> (i32, i32) {
    %c0_i32 = arith.constant 0 : i32
    %c0_i32_0 = arith.constant 0 : i32
    %c0_i32_1 = arith.constant 0 : i32
    return %c0_i32, %c0_i32_0 : i32, i32
  }
  func.func @transform_9(%arg0: i32) -> (i32, i32) {
    %c0_i32 = arith.constant 0 : i32
    %c0_i32_0 = arith.constant 0 : i32
    %c0_i32_1 = arith.constant 0 : i32
    return %c0_i32, %c0_i32_0 : i32, i32
  }
  func.func @transform_10(%arg0: i32) -> (i32, i32) {
    %c0_i32 = arith.constant 0 : i32
    %c0_i32_0 = arith.constant 0 : i32
    return %arg0, %c0_i32 : i32, i32
  }
  func.func @transform_11(%arg0: i32) -> (i32, i32) {
    %c0_i32 = arith.constant 0 : i32
    %c0_i32_0 = arith.constant 0 : i32
    return %arg0, %c0_i32 : i32, i32
  }
}

</mosaic_0001>

<bundles_post_ra>
// kernel: lstm_model_with_attention.1
= control target key start
LH: loop header
LB: loop body
LE: loop exit
PB: predicated region body
PF: predicated region fallthrough
CT: control target
= control target key end

     0   :  { %s7738_s0 = inlined_call_operand.vmem [shape: f32[8,16,512], index: 0, kind: input, shape index: {}]   ;;  %s7739_s1 = inlined_call_operand.vmem [shape: bf16[128,512], index: 1, kind: input, shape index: {}]   ;;  %s7740_s2 = inlined_call_operand.vmem [shape: bf16[256,512], index: 2, kind: input, shape index: {}]   ;;  %s7741_s3 = inlined_call_operand.vmem [shape: f32[1,512], index: 3, kind: input, shape index: {}]   ;;  %s7742_s4 = inlined_call_operand.vmem [shape: bf16[128,128], index: 4, kind: input, shape index: {}]   ;;  %s7743_s5 = inlined_call_operand.vmem [shape: f32[1,128], index: 5, kind: input, shape index: {}]   ;;  %s7744_s6 = inlined_call_operand.vmem [shape: f32[128,1], index: 6, kind: input, shape index: {}]   ;;  %s7745_s7 = inlined_call_operand.vmem [shape: f32[128,1], index: 7, kind: input, shape index: {}]   ;;  %s7746_s8 = inlined_call_operand.vmem [shape: f32[128,1], index: 8, kind: input, shape index: {}]   ;;  %s7747_s9 = inlined_call_operand.<no memory space> [shape: f32[1,1], index: 9, kind: input, shape index: {}]   ;;  %s7748_s10 = inlined_call_operand.vmem [shape: f32[16,1], index: 10, kind: output, shape index: {0}]   ;;  %s7749_s11 = inlined_call_operand.vmem [shape: f32[16,8], index: 11, kind: output, shape index: {1}]  }
   0x1   :  { %v17_v0 = vstv %s7747_s9 }
   0x2   :  { %18 = vst [vmem:[#allocation4] sm:$0x1] %v17_v0 }
   0x3   :  { %s5004_s19 = smov 0   ;;  %s5006_s20 = smov 0  }
   0x4   :  { %s5008_s21 = smov 0  }
   0x5 LB: > { %s3687_s9 = sadd.s32 4294967295, %s4928_s21   ;;  %s5021_s22 = sadd.s32 1, %s4928_s21   ;;  %s4928_s21 = sphi %s5008_s21, %s8477_s21   ;;  %s4924_s20 = sphi %s5006_s20, %s8476_s20   ;;  %s4920_s19 = sphi %s5004_s19, %s8475_s19  }
   0x6   : > { %s28_s23 = ssub.s32 %s4928_s21, %s5021_s22  ;;  %s31_s24 = sadd.s32 1, %s4924_s20 }
   0x7   : > { %p29_p0 = scmp.eq.s32.totalorder %s28_s23, 0  ;;  %p38_p1 = scmp.ne.s32.totalorder %s4924_s20, %s4920_s19 }
   0x8   : > { %p39_p2 = scmp.eq.s32.totalorder %s4928_s21, 0  ;;  %p3690_p4 = scmp.ge.s32.totalorder %s4928_s21, 2 }
   0x9   : > { %s5030_s25 = scalar_select %p29_p0, %s4924_s20, %s31_s24  }
   0xa   : > { %p40_p3 = por %p39_p2, %p38_p1  ;;  %332 = sbr.rel (%p3690_p4) target bundleno = 37 (0x25), region = 52 }
  0x11   : > { %335 = sbr.rel (!%p40_p3) target bundleno = 37 (0x25), region = 56  ;;  %s337_s26 = sand.u32 (%p40_p3), 1, %s4924_s20  }
  0x12   : > { %s3898_s27 = sshll.u32 (%p40_p3), %s4928_s21, 5  ;;  %s3691_s28 = sshll.u32 (%p40_p3), %s337_s26, 8 }
  0x13   : > { %s5038_s12 = scalar_lea.vmem (%p40_p3), %s7738_s0, %s3898_s27  ;;  %s5043_s13 = scalar_lea.vmem (%p40_p3), [#allocation5], %s3691_s28 }
  0x14   : > { %v355_v1 = vld [vmem:[%s5038_s12] sm:$0xff] (%p40_p3)  ;;  %v357_v2 = vld [vmem:[%s5038_s12 + $0x8] sm:$0xff] (%p40_p3)  ;;  %v359_v3 = vld [vmem:[%s5038_s12 + $0x10] sm:$0xff] (%p40_p3) }
  0x15   : > { %356 = vst [vmem:[%s5043_s13] sm:$0xff] (%p40_p3), %v355_v1  ;;  %358 = vst [vmem:[%s5043_s13 + $0x8] sm:$0xff] (%p40_p3), %v357_v2  ;;  %v361_v4 = vld [vmem:[%s5038_s12 + $0x18] sm:$0xff] (%p40_p3)  ;;  %v363_v5 = vld [vmem:[%s5038_s12 + $0x40] sm:$0xff] (%p40_p3) }
  0x16   : > { %360 = vst [vmem:[%s5043_s13 + $0x10] sm:$0xff] (%p40_p3), %v359_v3  ;;  %v365_v6 = vld [vmem:[%s5038_s12 + $0x48] sm:$0xff] (%p40_p3)  ;;  %362 = vst [vmem:[%s5043_s13 + $0x18] sm:$0xff] (%p40_p3), %v361_v4  ;;  %v367_v7 = vld [vmem:[%s5038_s12 + $0x50] sm:$0xff] (%p40_p3) }
  0x17   : > { %364 = vst [vmem:[%s5043_s13 + $0x20] sm:$0xff] (%p40_p3), %v363_v5  ;;  %366 = vst [vmem:[%s5043_s13 + $0x28] sm:$0xff] (%p40_p3), %v365_v6  ;;  %v369_v8 = vld [vmem:[%s5038_s12 + $0x58] sm:$0xff] (%p40_p3)  ;;  %v371_v9 = vld [vmem:[%s5038_s12 + $0x80] sm:$0xff] (%p40_p3) }
  0x18   : > { %368 = vst [vmem:[%s5043_s13 + $0x30] sm:$0xff] %v367_v7  ;;  %370 = vst [vmem:[%s5043_s13 + $0x38] sm:$0xff] %v369_v8  ;;  %v373_v10 = vld [vmem:[%s5038_s12 + $0x88] sm:$0xff]  ;;  %v375_v11 = vld [vmem:[%s5038_s12 + $0x90] sm:$0xff] }
  0x19   : > { %372 = vst [vmem:[%s5043_s13 + $0x40] sm:$0xff] %v371_v9  ;;  %v377_v12 = vld [vmem:[%s5038_s12 + $0x98] sm:$0xff]  ;;  %374 = vst [vmem:[%s5043_s13 + $0x48] sm:$0xff] %v373_v10  ;;  %v379_v13 = vld [vmem:[%s5038_s12 + $0xc0] sm:$0xff] }
  0x1a   : > { %376 = vst [vmem:[%s5043_s13 + $0x50] sm:$0xff] %v375_v11  ;;  %378 = vst [vmem:[%s5043_s13 + $0x58] sm:$0xff] %v377_v12  ;;  %v381_v14 = vld [vmem:[%s5038_s12 + $0xc8] sm:$0xff]  ;;  %v383_v15 = vld [vmem:[%s5038_s12 + $0xd0] sm:$0xff] }
  0x1b   : > { %380 = vst [vmem:[%s5043_s13 + $0x60] sm:$0xff] %v379_v13  ;;  %382 = vst [vmem:[%s5043_s13 + $0x68] sm:$0xff] %v381_v14  ;;  %v385_v16 = vld [vmem:[%s5038_s12 + $0xd8] sm:$0xff]  ;;  %v387_v17 = vld [vmem:[%s5038_s12 + $0x100] sm:$0xff] }
  0x1c   : > { %384 = vst [vmem:[%s5043_s13 + $0x70] sm:$0xff] %v383_v15  ;;  %v389_v18 = vld [vmem:[%s5038_s12 + $0x108] sm:$0xff]  ;;  %386 = vst [vmem:[%s5043_s13 + $0x78] sm:$0xff] %v385_v16  ;;  %v391_v19 = vld [vmem:[%s5038_s12 + $0x110] sm:$0xff] }
  0x1d   : > { %388 = vst [vmem:[%s5043_s13 + $0x80] sm:$0xff] %v387_v17  ;;  %390 = vst [vmem:[%s5043_s13 + $0x88] sm:$0xff] %v389_v18  ;;  %v393_v20 = vld [vmem:[%s5038_s12 + $0x118] sm:$0xff]  ;;  %v395_v21 = vld [vmem:[%s5038_s12 + $0x140] sm:$0xff] }
  0x1e   : > { %392 = vst [vmem:[%s5043_s13 + $0x90] sm:$0xff] %v391_v19  ;;  %394 = vst [vmem:[%s5043_s13 + $0x98] sm:$0xff] %v393_v20  ;;  %v397_v22 = vld [vmem:[%s5038_s12 + $0x148] sm:$0xff]  ;;  %v399_v23 = vld [vmem:[%s5038_s12 + $0x150] sm:$0xff] }
  0x1f   : > { %396 = vst [vmem:[%s5043_s13 + $0xa0] sm:$0xff] %v395_v21  ;;  %v401_v24 = vld [vmem:[%s5038_s12 + $0x158] sm:$0xff]  ;;  %398 = vst [vmem:[%s5043_s13 + $0xa8] sm:$0xff] %v397_v22  ;;  %v403_v25 = vld [vmem:[%s5038_s12 + $0x180] sm:$0xff] }
  0x20   : > { %400 = vst [vmem:[%s5043_s13 + $0xb0] sm:$0xff] %v399_v23  ;;  %402 = vst [vmem:[%s5043_s13 + $0xb8] sm:$0xff] %v401_v24  ;;  %v405_v26 = vld [vmem:[%s5038_s12 + $0x188] sm:$0xff]  ;;  %v407_v27 = vld [vmem:[%s5038_s12 + $0x190] sm:$0xff] }
  0x21   : > { %404 = vst [vmem:[%s5043_s13 + $0xc0] sm:$0xff] %v403_v25  ;;  %406 = vst [vmem:[%s5043_s13 + $0xc8] sm:$0xff] %v405_v26  ;;  %v409_v28 = vld [vmem:[%s5038_s12 + $0x198] sm:$0xff]  ;;  %v411_v29 = vld [vmem:[%s5038_s12 + $0x1c0] sm:$0xff] }
  0x22   : > { %408 = vst [vmem:[%s5043_s13 + $0xd0] sm:$0xff] %v407_v27  ;;  %v413_v30 = vld [vmem:[%s5038_s12 + $0x1c8] sm:$0xff]  ;;  %410 = vst [vmem:[%s5043_s13 + $0xd8] sm:$0xff] %v409_v28  ;;  %v415_v31 = vld [vmem:[%s5038_s12 + $0x1d0] sm:$0xff] }
  0x23   : > { %412 = vst [vmem:[%s5043_s13 + $0xe0] sm:$0xff] %v411_v29  ;;  %414 = vst [vmem:[%s5043_s13 + $0xe8] sm:$0xff] %v413_v30  ;;  %v417_v32 = vld [vmem:[%s5038_s12 + $0x1d8] sm:$0xff] }
  0x24   : > { %416 = vst [vmem:[%s5043_s13 + $0xf0] sm:$0xff] %v415_v31  ;;  %418 = vst [vmem:[%s5043_s13 + $0xf8] sm:$0xff] %v417_v32 }
  0x25 PF: > { %p3694_p5 = scmp.ge.s32.totalorder %s4928_s21, 1  ;;  %p423_p6 = scmp.lt.s32.totalorder %s4928_s21, 3 }
  0x27   : > { %p424_p7 = pnand %p3694_p5, %p423_p6 }
  0x29   : > { %427 = sbr.rel (%p424_p7) target bundleno = 3589 (0xe05), region = 79 }
  0x30   : > { %v5111_v33 = vld [vmem:[%s7739_s1 + $0x4] ss:$16 sps:$4 sm:$0xff]   ;;  %v5116_v34 = vld [vmem:[%s7739_s1] ss:$16 sps:$4 sm:$0xff]   ;;  %v7750_v35 = vmov 0   ;;  %s430_s29 = sand.u32 1, %s4920_s19  }
  0x31   : > { %8052 = vst [vmem:[#allocation6_spill] sm:$0xff] %v5111_v33  ;;  %776 = vmatprep.mubr.bf16.mxu0 %v7750_v35  ;;  %578 = vst [vmem:[#allocation3] sm:$0xff] %v7750_v35  ;;  %817 = vmatprep.mubr.bf16.mxu1 %v7750_v35  ;;  %v5125_v36 = vld [vmem:[%s7739_s1 + $0x24] ss:$16 sps:$4 sm:$0xff]   ;;  %v5132_v37 = vld [vmem:[%s7739_s1 + $0x20] ss:$16 sps:$4 sm:$0xff]  }
  0x32   : > { %744 = vmatprep.subr.bf16.mxu0 %v5111_v33  ;;  %4255 = vset.pattern.permute.xlu1 %v7750_v35  ;;  %v5139_v38 = vld [vmem:[%s7739_s1 + $0x44] ss:$16 sps:$4 sm:$0xff]   ;;  %v5144_v39 = vld [vmem:[%s7739_s1 + $0xc] ss:$16 sps:$4 sm:$0xff]   ;;  %v5149_v40 = vld [vmem:[%s7739_s1 + $0x8] ss:$16 sps:$4 sm:$0xff]  }
  0x33   : > { %745 = vmatpush1.bf16.msra.mxu0 %v5116_v34  ;;  %4254 = vset.pattern.permute.xlu0 %v7750_v35  ;;  %8053 = vst [vmem:[#allocation7_spill] sm:$0xff] %v5144_v39  ;;  %v5155_v41 = vld [vmem:[%s7739_s1 + $0x40] ss:$16 sps:$4 sm:$0xff]   ;;  %v5162_v42 = vld [vmem:[%s7739_s1 + $0x64] ss:$16 sps:$4 sm:$0xff]   ;;  %s3695_s30 = sshll.u32 %s430_s29, 8 }
  0x34   : > { %746 = vmatprep.subr.bf16.mxu0 %v5125_v36  ;;  %785 = vmatprep.subr.bf16.mxu1 %v5144_v39  ;;  %v5168_v43 = vld [vmem:[%s7739_s1 + $0x2c] ss:$16 sps:$4 sm:$0xff]   ;;  %v5173_v44 = vld [vmem:[%s7739_s1 + $0x28] ss:$16 sps:$4 sm:$0xff]   ;;  %v5180_v45 = vld [vmem:[%s7739_s1 + $0x60] ss:$16 sps:$4 sm:$0xff]  }
  0x35   : > { %786 = vmatpush1.bf16.msra.mxu1 %v5149_v40  ;;  %v5185_v46 = vld [vmem:[%s7739_s1 + $0x84] ss:$16 sps:$4 sm:$0xff]   ;;  %v5190_v47 = vld [vmem:[%s7739_s1 + $0x4c] ss:$16 sps:$4 sm:$0xff]   ;;  %v5197_v48 = vld [vmem:[%s7739_s1 + $0x48] ss:$16 sps:$4 sm:$0xff]  }
  0x36   : > { %787 = vmatprep.subr.bf16.mxu1 %v5168_v43  ;;  %v5203_v49 = vld [vmem:[%s7739_s1 + $0x6c] ss:$16 sps:$4 sm:$0xff]   ;;  %v5209_v50 = vld [vmem:[%s7739_s1 + $0x80] ss:$16 sps:$4 sm:$0xff]   ;;  %v5215_v51 = vld [vmem:[%s7739_s1 + $0xa4] ss:$16 sps:$4 sm:$0xff]  }
  0x37   : > { %747 = vmatpush1.bf16.msra.mxu0 %v5132_v37  ;;  %v5221_v52 = vld [vmem:[%s7739_s1 + $0x68] ss:$16 sps:$4 sm:$0xff]   ;;  %v5227_v53 = vld [vmem:[%s7739_s1 + $0x8c] ss:$16 sps:$4 sm:$0xff]   ;;  %v5232_v54 = vld [vmem:[%s7739_s1 + $0xa0] ss:$16 sps:$4 sm:$0xff]  }
  0x38   : > { %748 = vmatprep.subr.bf16.mxu0 %v5139_v38  ;;  %v5238_v55 = vld [vmem:[%s7739_s1 + $0xc4] ss:$16 sps:$4 sm:$0xff]   ;;  %v5245_v56 = vld [vmem:[%s7739_s1 + $0x88] ss:$16 sps:$4 sm:$0xff]   ;;  %v5251_v57 = vld [vmem:[%s7739_s1 + $0xac] ss:$16 sps:$4 sm:$0xff]  }
  0x39   : > { %788 = vmatpush1.bf16.msra.mxu1 %v5173_v44  ;;  %v5257_v58 = vld [vmem:[%s7739_s1 + $0xc0] ss:$16 sps:$4 sm:$0xff]   ;;  %v5262_v59 = vld [vmem:[%s7739_s1 + $0xe4] ss:$16 sps:$4 sm:$0xff]   ;;  %v5269_v60 = vld [vmem:[%s7739_s1 + $0xa8] ss:$16 sps:$4 sm:$0xff]  }
  0x3a   : > { %789 = vmatprep.subr.bf16.mxu1 %v5190_v47  ;;  %v5274_v61 = vld [vmem:[%s7739_s1 + $0xe0] ss:$16 sps:$4 sm:$0xff]   ;;  %v5280_v62 = vld [vmem:[%s7739_s1 + $0xcc] ss:$16 sps:$4 sm:$0xff]   ;;  %v5285_v63 = vld [vmem:[%s7739_s1 + $0xc8] ss:$16 sps:$4 sm:$0xff]  }
  0x3b   : > { %749 = vmatpush1.bf16.msra.mxu0 %v5155_v41  ;;  %v5290_v0 = vld [vmem:[%s7740_s2 + $0x4] ss:$16 sps:$4 sm:$0xff]   ;;  %v5296_v1 = vld [vmem:[%s7739_s1 + $0xec] ss:$16 sps:$4 sm:$0xff]   ;;  %v583_v2 = vld [vmem:[#allocation3] sm:$0xf] }
  0x3c   : > { %750 = vmatprep.subr.bf16.mxu0 %v5162_v42  ;;  %v5304_v3 = vld [vmem:[%s7740_s2] ss:$16 sps:$4 sm:$0xff]   ;;  %v5309_v4 = vld [vmem:[%s7739_s1 + $0xe8] ss:$16 sps:$4 sm:$0xff]   ;;  %v5314_v5 = vld [vmem:[%s7740_s2 + $0x24] ss:$16 sps:$4 sm:$0xff]  }
  0x3d   : > { %790 = vmatpush1.bf16.msra.mxu1 %v5197_v48  ;;  %v5320_v6 = vld [vmem:[%s7740_s2 + $0xc] ss:$16 sps:$4 sm:$0xff]   ;;  %v5328_v7 = vld [vmem:[%s7740_s2 + $0x8] ss:$16 sps:$4 sm:$0xff]   ;;  %v5344_v9 = vld [vmem:[%s7740_s2 + $0x20] ss:$16 sps:$4 sm:$0xff]  }
  0x3e   : > { %791 = vmatprep.subr.bf16.mxu1 %v5203_v49  ;;  %v5334_v8 = vld [vmem:[%s7740_s2 + $0x2c] ss:$16 sps:$4 sm:$0xff]   ;;  %v5349_v10 = vld [vmem:[%s7740_s2 + $0x28] ss:$16 sps:$4 sm:$0xff]   ;;  %v5356_v11 = vld [vmem:[%s7740_s2 + $0x44] ss:$16 sps:$4 sm:$0xff]  }
  0x3f   : > { %751 = vmatpush1.bf16.msra.mxu0 %v5180_v45  ;;  %v5361_v12 = vld [vmem:[%s7740_s2 + $0x4c] ss:$16 sps:$4 sm:$0xff]   ;;  %v5366_v13 = vld [vmem:[%s7740_s2 + $0x40] ss:$16 sps:$4 sm:$0xff]   ;;  %v5371_v14 = vld [vmem:[%s7740_s2 + $0x48] ss:$16 sps:$4 sm:$0xff]  }
  0x40   : > { %752 = vmatprep.subr.bf16.mxu0 %v5185_v46  ;;  %v5380_v15 = vld [vmem:[%s7740_s2 + $0x64] ss:$16 sps:$4 sm:$0xff]   ;;  %v5385_v16 = vld [vmem:[%s7740_s2 + $0x6c] ss:$16 sps:$4 sm:$0xff]   ;;  %v5390_v17 = vld [vmem:[%s7740_s2 + $0x60] ss:$16 sps:$4 sm:$0xff]  }
  0x41   : > { %792 = vmatpush1.bf16.msra.mxu1 %v5221_v52  ;;  %8054 = vst [vmem:[#allocation8_spill] sm:$0xff] %v5390_v17  ;;  %v5395_v18 = vld [vmem:[%s7740_s2 + $0x68] ss:$16 sps:$4 sm:$0xff]   ;;  %v5404_v19 = vld [vmem:[%s7740_s2 + $0x84] ss:$16 sps:$4 sm:$0xff]   ;;  %s5692_s12 = scalar_lea.vmem [#allocation5], %s3695_s30 }
  0x42   : > { %793 = vmatprep.subr.bf16.mxu1 %v5227_v53  ;;  %8055 = vst [vmem:[#allocation9_spill] sm:$0xff] %v5395_v18  ;;  %8056 = vst [vmem:[#allocation10_spill] sm:$0xff] %v5404_v19  ;;  %v5409_v20 = vld [vmem:[%s7740_s2 + $0x8c] ss:$16 sps:$4 sm:$0xff]   ;;  %v5414_v21 = vld [vmem:[%s7740_s2 + $0x80] ss:$16 sps:$4 sm:$0xff]  }
  0x43   : > { %753 = vmatpush1.bf16.msra.mxu0 %v5209_v50  ;;  %8057 = vst [vmem:[#allocation11_spill] sm:$0xff] %v5409_v20  ;;  %8058 = vst [vmem:[#allocation12_spill] sm:$0xff] %v5414_v21  ;;  %v5419_v22 = vld [vmem:[%s7740_s2 + $0x88] ss:$16 sps:$4 sm:$0xff]   ;;  %v5428_v23 = vld [vmem:[%s7740_s2 + $0xa4] ss:$16 sps:$4 sm:$0xff]  }
  0x44   : > { %754 = vmatprep.subr.bf16.mxu0 %v5215_v51  ;;  %8059 = vst [vmem:[#allocation13_spill] sm:$0xff] %v5419_v22  ;;  %8060 = vst [vmem:[#allocation14_spill] sm:$0xff] %v5428_v23  ;;  %v5433_v24 = vld [vmem:[%s7740_s2 + $0xac] ss:$16 sps:$4 sm:$0xff]   ;;  %v5438_v25 = vld [vmem:[%s7740_s2 + $0xa0] ss:$16 sps:$4 sm:$0xff]  }
  0x45   : > { %794 = vmatpush1.bf16.msra.mxu1 %v5245_v56  ;;  %8061 = vst [vmem:[#allocation15_spill] sm:$0xff] %v5433_v24  ;;  %8062 = vst [vmem:[#allocation16_spill] sm:$0xff] %v5438_v25  ;;  %v5443_v26 = vld [vmem:[%s7740_s2 + $0xa8] ss:$16 sps:$4 sm:$0xff]   ;;  %v5452_v27 = vld [vmem:[%s7740_s2 + $0xc4] ss:$16 sps:$4 sm:$0xff]  }
  0x46   : > { %795 = vmatprep.subr.bf16.mxu1 %v5251_v57  ;;  %8063 = vst [vmem:[#allocation17_spill] sm:$0xff] %v5443_v26  ;;  %8064 = vst [vmem:[#allocation18_spill] sm:$0xff] %v5452_v27  ;;  %v5457_v28 = vld [vmem:[%s7740_s2 + $0xcc] ss:$16 sps:$4 sm:$0xff]   ;;  %v5462_v29 = vld [vmem:[%s7740_s2 + $0xc0] ss:$16 sps:$4 sm:$0xff]  }
  0x47   : > { %755 = vmatpush1.bf16.msra.mxu0 %v5232_v54  ;;  %8065 = vst [vmem:[#allocation19_spill] sm:$0xff] %v5457_v28  ;;  %8066 = vst [vmem:[#allocation20_spill] sm:$0xff] %v5462_v29  ;;  %v5467_v30 = vld [vmem:[%s7740_s2 + $0xc8] ss:$16 sps:$4 sm:$0xff]   ;;  %v5476_v31 = vld [vmem:[%s7740_s2 + $0xe4] ss:$16 sps:$4 sm:$0xff]  }
  0x48   : > { %756 = vmatprep.subr.bf16.mxu0 %v5238_v55  ;;  %8067 = vst [vmem:[#allocation21_spill] sm:$0xff] %v5467_v30  ;;  %8068 = vst [vmem:[#allocation22_spill] sm:$0xff] %v5476_v31  ;;  %v5481_v32 = vld [vmem:[%s7740_s2 + $0xec] ss:$16 sps:$4 sm:$0xff]   ;;  %v5491_v35 = vld [vmem:[%s7740_s2 + $0xe8] ss:$16 sps:$4 sm:$0xff]  }
  0x49   : > { %796 = vmatpush1.bf16.msra.mxu1 %v5269_v60  ;;  %8069 = vst [vmem:[#allocation23_spill] sm:$0xff] %v5481_v32  ;;  %8071 = vst [vmem:[#allocation25_spill] sm:$0xff] %v5491_v35  ;;  %s4932_s26 = smov 2   ;;  %s4933_s27 = smov 1   ;;  %vm4934_vm0 = vmmov 0   ;;  %vm3487_vm1 = vcmask 7168  }
  0x4a   : > { %797 = vmatprep.subr.bf16.mxu1 %v5280_v62  ;;  %s4936_s16 = smov 4   ;;  %s4937_s17 = smov 3   ;;  %vm3489_vm2 = vcmask 15360   ;;  %vm3491_vm3 = vcmask 23552   ;;  %vm3493_vm4 = vcmask 31744   ;;  %vm3495_vm5 = vcmask 39936  }
  0x4b   : > { %757 = vmatpush1.bf16.msra.mxu0 %v5257_v58  ;;  %s4938_s18 = smov 6   ;;  %s4939_s23 = smov 5   ;;  %vm3497_vm6 = vcmask 48128   ;;  %vm3499_vm7 = vcmask 56320   ;;  %vm3501_vm8 = vcmask 64512  }
  0x4c   : > { %758 = vmatprep.subr.bf16.mxu0 %v5262_v59  ;;  %s4940_s24 = smov 7   ;;  %p472_p8 = scmp.lt.s32.totalorder %s3687_s9, 1 }
  0x4d   : > { %798 = vmatpush1.bf16.msra.mxu1 %v5285_v63 }
  0x4e   : > { %799 = vmatprep.subr.bf16.mxu1 %v5296_v1  ;;  %s8479_s9 = smov (!%p472_p8, %s3687_s9), 1 }
  0x4f   : > { %759 = vmatpush1.bf16.msra.mxu0 %v5274_v61 }
  0x50   : > { %1205 = vmatprep.subr.bf16.mxu0 %v5290_v0 }
  0x51   : > { %800 = vmatpush1.bf16.msra.mxu1 %v5309_v4 }
  0x52   : > { %777 = vmatmul.mubr.bf16.vlgmr.msra.gmra.mrb[0].mxu0 %v583_v2  ;;  %1246 = vmatprep.subr.bf16.mxu1 %v5320_v6 }
  0x53   : > { %1206 = vmatpush1.bf16.msra.mxu0 %v5304_v3 }
  0x54   : > { %1207 = vmatprep.subr.bf16.mxu0 %v5314_v5  ;;  %818 = vmatmul.mubr.bf16.vlgmr.msra.gmra.mrb[0].mxu1 %v583_v2  ;;  %v5486_v2 = vld [vmem:[%s7740_s2 + $0xe0] ss:$16 sps:$4 sm:$0xff]  }
  0x55   : > { %1247 = vmatpush1.bf16.msra.mxu1 %v5328_v7  ;;  %8070 = vst [vmem:[#allocation24_spill] sm:$0xff] %v5486_v2 }
  0x56   : > { %1248 = vmatprep.subr.bf16.mxu1 %v5334_v8 }
  0x57   : > { %1208 = vmatpush1.bf16.msra.mxu0 %v5344_v9 }
  0x58   : > { %1209 = vmatprep.subr.bf16.mxu0 %v5356_v11 }
  0x59   : > { %1249 = vmatpush1.bf16.msra.mxu1 %v5349_v10 }
  0x5a   : > { %1250 = vmatprep.subr.bf16.mxu1 %v5361_v12 }
  0x5b   : > { %1210 = vmatpush1.bf16.msra.mxu0 %v5366_v13 }
  0x5c   : > { %1211 = vmatprep.subr.bf16.mxu0 %v5380_v15 }
  0x5d   : > { %1251 = vmatpush1.bf16.msra.mxu1 %v5371_v14 }
  0x5e   : > { %1252 = vmatprep.subr.bf16.mxu1 %v5385_v16 }
  0x5f   : > { %1212 = vmatpush1.bf16.msra.mxu0 %v5390_v17 }
  0x60   : > { %1213 = vmatprep.subr.bf16.mxu0 %v5404_v19 }
  0x61   : > { %1253 = vmatpush1.bf16.msra.mxu1 %v5395_v18 }
  0x62   : > { %1254 = vmatprep.subr.bf16.mxu1 %v5409_v20  ;;  %v581_v20 = vld [vmem:[%s5692_s12 + $0x10] sm:$0xff] }
  0x63   : > { %1214 = vmatpush1.bf16.msra.mxu0 %v5414_v21 }
  0x64   : > { %1215 = vmatprep.subr.bf16.mxu0 %v5428_v23 }
  0x65   : > { %1255 = vmatpush1.bf16.msra.mxu1 %v5419_v22 }
  0x66   : > { %1256 = vmatprep.subr.bf16.mxu1 %v5433_v24 }
  0x67   : > { %1216 = vmatpush1.bf16.msra.mxu0 %v5438_v25  ;;  %v582_v25 = vld [vmem:[%s5692_s12 + $0x18] sm:$0xff] }
  0x68   : > { %1217 = vmatprep.subr.bf16.mxu0 %v5452_v27 }
  0x69   : > { %1257 = vmatpush1.bf16.msra.mxu1 %v5443_v26 }
  0x6a   : > { %1258 = vmatprep.subr.bf16.mxu1 %v5457_v28 }
  0x6b   : > { %1218 = vmatpush1.bf16.msra.mxu0 %v5462_v29  ;;  %v5505_v29 = vld [vmem:[%s7740_s2 + $0x10c] ss:$16 sps:$4 sm:$0xff]  }
  0x6c   : > { %1219 = vmatprep.subr.bf16.mxu0 %v5476_v31  ;;  %8073 = vst [vmem:[#allocation27_spill] sm:$0xff] %v5505_v29  ;;  %v5510_v31 = vld [vmem:[%s7740_s2 + $0x100] ss:$16 sps:$4 sm:$0xff]  }
  0x6d   : > { %1259 = vmatpush1.bf16.msra.mxu1 %v5467_v30  ;;  %v5500_v30 = vld [vmem:[%s7740_s2 + $0x104] ss:$16 sps:$4 sm:$0xff]   ;;  %8074 = vst [vmem:[#allocation28_spill] sm:$0xff] %v5510_v31 }
  0x6e   : > { %1260 = vmatprep.subr.bf16.mxu1 %v5481_v32  ;;  %8072 = vst [vmem:[#allocation26_spill] sm:$0xff] %v5500_v30  ;;  %v5529_v32 = vld [vmem:[%s7740_s2 + $0x12c] ss:$16 sps:$4 sm:$0xff]  }
  0x6f   : > { %1220 = vmatpush1.bf16.msra.mxu0 %v5486_v2  ;;  %v5515_v2 = vld [vmem:[%s7740_s2 + $0x108] ss:$16 sps:$4 sm:$0xff]   ;;  %8077 = vst [vmem:[#allocation31_spill] sm:$0xff] %v5529_v32 }
  0x70   : > { %8075 = vst [vmem:[#allocation29_spill] sm:$0xff] %v5515_v2  ;;  %1221 = vmatprep.subr.bf16.mxu0 %v5500_v30  ;;  %v5534_v30 = vld [vmem:[%s7740_s2 + $0x120] ss:$16 sps:$4 sm:$0xff]  }
  0x71   : > { %1261 = vmatpush1.bf16.msra.mxu1 %v5491_v35  ;;  %v5524_v35 = vld [vmem:[%s7740_s2 + $0x124] ss:$16 sps:$4 sm:$0xff]   ;;  %8078 = vst [vmem:[#allocation32_spill] sm:$0xff] %v5534_v30 }
  0x72   : > { %1262 = vmatprep.subr.bf16.mxu1 %v5505_v29  ;;  %8076 = vst [vmem:[#allocation30_spill] sm:$0xff] %v5524_v35  ;;  %v5553_v29 = vld [vmem:[%s7740_s2 + $0x14c] ss:$16 sps:$4 sm:$0xff]  }
  0x73   : > { %1222 = vmatpush1.bf16.msra.mxu0 %v5510_v31  ;;  %v5539_v31 = vld [vmem:[%s7740_s2 + $0x128] ss:$16 sps:$4 sm:$0xff]   ;;  %8081 = vst [vmem:[#allocation35_spill] sm:$0xff] %v5553_v29 }
  0x74   : > { %8079 = vst [vmem:[#allocation33_spill] sm:$0xff] %v5539_v31  ;;  %1223 = vmatprep.subr.bf16.mxu0 %v5524_v35  ;;  %v5558_v35 = vld [vmem:[%s7740_s2 + $0x140] ss:$16 sps:$4 sm:$0xff]  }
  0x75   : > { %1263 = vmatpush1.bf16.msra.mxu1 %v5515_v2  ;;  %v5548_v2 = vld [vmem:[%s7740_s2 + $0x144] ss:$16 sps:$4 sm:$0xff]   ;;  %8082 = vst [vmem:[#allocation36_spill] sm:$0xff] %v5558_v35 }
  0x76   : > { %1264 = vmatprep.subr.bf16.mxu1 %v5529_v32  ;;  %8080 = vst [vmem:[#allocation34_spill] sm:$0xff] %v5548_v2  ;;  %v5577_v32 = vld [vmem:[%s7740_s2 + $0x16c] ss:$16 sps:$4 sm:$0xff]  }
  0x77   : > { %1224 = vmatpush1.bf16.msra.mxu0 %v5534_v30  ;;  %v5563_v30 = vld [vmem:[%s7740_s2 + $0x148] ss:$16 sps:$4 sm:$0xff]   ;;  %8085 = vst [vmem:[#allocation39_spill] sm:$0xff] %v5577_v32 }
  0x78   : > { %8083 = vst [vmem:[#allocation37_spill] sm:$0xff] %v5563_v30  ;;  %1225 = vmatprep.subr.bf16.mxu0 %v5548_v2  ;;  %v5582_v2 = vld [vmem:[%s7740_s2 + $0x160] ss:$16 sps:$4 sm:$0xff]  }
  0x79   : > { %1265 = vmatpush1.bf16.msra.mxu1 %v5539_v31  ;;  %v5572_v31 = vld [vmem:[%s7740_s2 + $0x164] ss:$16 sps:$4 sm:$0xff]   ;;  %8086 = vst [vmem:[#allocation40_spill] sm:$0xff] %v5582_v2 }
  0x7a   : > { %1266 = vmatprep.subr.bf16.mxu1 %v5553_v29  ;;  %8084 = vst [vmem:[#allocation38_spill] sm:$0xff] %v5572_v31  ;;  %v5601_v29 = vld [vmem:[%s7740_s2 + $0x18c] ss:$16 sps:$4 sm:$0xff]  }
  0x7b   : > { %1226 = vmatpush1.bf16.msra.mxu0 %v5558_v35  ;;  %v5587_v35 = vld [vmem:[%s7740_s2 + $0x168] ss:$16 sps:$4 sm:$0xff]   ;;  %8089 = vst [vmem:[#allocation43_spill] sm:$0xff] %v5601_v29 }
  0x7c   : > { %8087 = vst [vmem:[#allocation41_spill] sm:$0xff] %v5587_v35  ;;  %1227 = vmatprep.subr.bf16.mxu0 %v5572_v31  ;;  %v5606_v31 = vld [vmem:[%s7740_s2 + $0x180] ss:$16 sps:$4 sm:$0xff]  }
  0x7d   : > { %1267 = vmatpush1.bf16.msra.mxu1 %v5563_v30  ;;  %v5596_v30 = vld [vmem:[%s7740_s2 + $0x184] ss:$16 sps:$4 sm:$0xff]   ;;  %8090 = vst [vmem:[#allocation44_spill] sm:$0xff] %v5606_v31 }
  0x7e   : > { %1268 = vmatprep.subr.bf16.mxu1 %v5577_v32  ;;  %8088 = vst [vmem:[#allocation42_spill] sm:$0xff] %v5596_v30  ;;  %v5625_v32 = vld [vmem:[%s7740_s2 + $0x1ac] ss:$16 sps:$4 sm:$0xff]  }
  0x7f   : > { %1228 = vmatpush1.bf16.msra.mxu0 %v5582_v2  ;;  %v5611_v2 = vld [vmem:[%s7740_s2 + $0x188] ss:$16 sps:$4 sm:$0xff]   ;;  %8093 = vst [vmem:[#allocation47_spill] sm:$0xff] %v5625_v32 }
  0x80   : > { %8091 = vst [vmem:[#allocation45_spill] sm:$0xff] %v5611_v2  ;;  %1229 = vmatprep.subr.bf16.mxu0 %v5596_v30  ;;  %v5630_v30 = vld [vmem:[%s7740_s2 + $0x1a0] ss:$16 sps:$4 sm:$0xff]  }
  0x81   : > { %1269 = vmatpush1.bf16.msra.mxu1 %v5587_v35  ;;  %v5620_v35 = vld [vmem:[%s7740_s2 + $0x1a4] ss:$16 sps:$4 sm:$0xff]   ;;  %8094 = vst [vmem:[#allocation48_spill] sm:$0xff] %v5630_v30 }
  0x82   : > { %1270 = vmatprep.subr.bf16.mxu1 %v5601_v29  ;;  %8092 = vst [vmem:[#allocation46_spill] sm:$0xff] %v5620_v35  ;;  %v5649_v29 = vld [vmem:[%s7740_s2 + $0x1cc] ss:$16 sps:$4 sm:$0xff]  }
  0x83   : > { %1230 = vmatpush1.bf16.msra.mxu0 %v5606_v31  ;;  %v5635_v31 = vld [vmem:[%s7740_s2 + $0x1a8] ss:$16 sps:$4 sm:$0xff]   ;;  %8097 = vst [vmem:[#allocation51_spill] sm:$0xff] %v5649_v29 }
  0x84   : > { %8095 = vst [vmem:[#allocation49_spill] sm:$0xff] %v5635_v31  ;;  %1231 = vmatprep.subr.bf16.mxu0 %v5620_v35  ;;  %v5654_v35 = vld [vmem:[%s7740_s2 + $0x1c0] ss:$16 sps:$4 sm:$0xff]  }
  0x85   : > { %1271 = vmatpush1.bf16.msra.mxu1 %v5611_v2  ;;  %v5644_v2 = vld [vmem:[%s7740_s2 + $0x1c4] ss:$16 sps:$4 sm:$0xff]   ;;  %8098 = vst [vmem:[#allocation52_spill] sm:$0xff] %v5654_v35 }
  0x86   : > { %1272 = vmatprep.subr.bf16.mxu1 %v5625_v32  ;;  %8096 = vst [vmem:[#allocation50_spill] sm:$0xff] %v5644_v2  ;;  %v5673_v32 = vld [vmem:[%s7740_s2 + $0x1ec] ss:$16 sps:$4 sm:$0xff]  }
  0x87   : > { %1232 = vmatpush1.bf16.msra.mxu0 %v5630_v30  ;;  %v5668_v30 = vld [vmem:[%s7740_s2 + $0x1e4] ss:$16 sps:$4 sm:$0xff]   ;;  %8101 = vst [vmem:[#allocation55_spill] sm:$0xff] %v5673_v32 }
  0x88   : > { %1233 = vmatprep.subr.bf16.mxu0 %v5644_v2  ;;  %8100 = vst [vmem:[#allocation54_spill] sm:$0xff] %v5668_v30  ;;  %v5678_v2 = vld [vmem:[%s7740_s2 + $0x1e0] ss:$16 sps:$4 sm:$0xff]  }
  0x89   : > { %1273 = vmatpush1.bf16.msra.mxu1 %v5635_v31  ;;  %v5659_v31 = vld [vmem:[%s7740_s2 + $0x1c8] ss:$16 sps:$4 sm:$0xff]   ;;  %8102 = vst [vmem:[#allocation56_spill] sm:$0xff] %v5678_v2 }
  0x8a   : > { %8099 = vst [vmem:[#allocation53_spill] sm:$0xff] %v5659_v31  ;;  %1274 = vmatprep.subr.bf16.mxu1 %v5649_v29  ;;  %v580_v29 = vld [vmem:[%s5692_s12 + $0x8] sm:$0xff] }
  0x8b   : > { %1234 = vmatpush1.bf16.msra.mxu0 %v5654_v35  ;;  %v5683_v35 = vld [vmem:[%s7740_s2 + $0x1e8] ss:$16 sps:$4 sm:$0xff]  }
  0x8c   : > { %8103 = vst [vmem:[#allocation57_spill] sm:$0xff] %v5683_v35  ;;  %1235 = vmatprep.subr.bf16.mxu0 %v5668_v30 }
  0x8d   : > { %1275 = vmatpush1.bf16.msra.mxu1 %v5659_v31  ;;  %v579_v31 = vld [vmem:[%s5692_s12] sm:$0xff] }
  0x8e   : > { %1276 = vmatprep.subr.bf16.mxu1 %v5673_v32 }
  0x8f   : > { %1236 = vmatpush1.bf16.msra.mxu0 %v5678_v2 }
  0x90   : > { %1320 = vmatprep.subr.bf16.mxu0 %v5111_v33 }
  0x91   : > { %1277 = vmatpush1.bf16.msra.mxu1 %v5683_v35 }
  0x92   : > { %1361 = vmatprep.subr.bf16.mxu1 %v5144_v39 }
 0x125   : > { %v778_v30 = vpop.f32.mrb[0].mxu0 }
 0x126   : > { %v826_v32 = vadd.f32 %v778_v30, %v579_v31  ;;  %v780_v28 = vpop.f32.mrb[1].mxu0 }
 0x127   : > { %v827_v2 = vadd.f32 %v780_v28, %v580_v29  ;;  %v782_v27 = vpop.f32.mrb[2].mxu0  ;;  %v819_v39 = vpop.f32.mrb[0].mxu1 }
 0x128   : > { %v3730_v35 = vmul.f32 -1.442695, %v826_v32  ;;  %v783_v26 = vpop.f32.mrb[3].mxu0  ;;  %v821_v24 = vpop.f32.mrb[1].mxu1  ;;  %v828_v18 = vadd.f32 %v819_v39, %v581_v20 }
 0x129   : > { %v3731_v33 = vmul.f32 -1.442695, %v827_v2  ;;  %v829_v23 = vadd.f32 %v821_v24, %v582_v25  ;;  %v823_v22 = vpop.f32.mrb[2].mxu1  ;;  %v8104_v25 = vmov 0   ;;  %v8128_v2 = vld [vmem:[#allocation31_spill] sm:$0xff] }
 0x12a   : > { %4424 = vpow2.f32 %v3730_v35  ;;  %v824_v21 = vpop.f32.mrb[3].mxu1 }
 0x12b   : > { %4426 = vpow2.f32 %v3731_v33  ;;  %v3732_v19 = vmul.f32 -1.442695, %v829_v23 }
 0x12d   : > { %4428 = vpow2.f32 %v3732_v19 }
 0x12e   : > { %4430 = vtanh.f32 %v828_v18 }
 0x134   : > { %v4425_v17 = vpop.eup %4424 }
 0x135   : > { %v4427_v30 = vpop.eup %4426  ;;  %v833_v31 = vadd.f32 1.0, %v4425_v17 }
 0x136   : > { %v839_v27 = vadd.f32 1.0, %v4427_v30  ;;  %v8129_v30 = vld [vmem:[#allocation32_spill] sm:$0xff] }
 0x137   : > { %4432 = vrcp.f32 %v833_v31  ;;  %v4429_v26 = vpop.eup %4428  ;;  %v8130_v31 = vld [vmem:[#allocation33_spill] sm:$0xff] }
 0x138   : > { %4434 = vrcp.f32 %v839_v27  ;;  %v4431_v28 = vpop.eup %4430  ;;  %v846_v29 = vadd.f32 1.0, %v4429_v26  ;;  %v8131_v27 = vld [vmem:[#allocation34_spill] sm:$0xff]  ;;  %v8132_v26 = vld [vmem:[#allocation35_spill] sm:$0xff] }
 0x13a   : > { %4436 = vrcp.f32 %v846_v29  ;;  %v8135_v29 = vld [vmem:[#allocation38_spill] sm:$0xff] }
 0x141   : > { %v4433_v35 = vpop.eup %4432 }
 0x142   : > { %v4435_v33 = vpop.eup %4434  ;;  %v850_v32 = vmul.f32 %v4433_v35, %v4431_v28  ;;  %v8133_v28 = vld [vmem:[#allocation36_spill] sm:$0xff]  ;;  %v8134_v35 = vld [vmem:[#allocation37_spill] sm:$0xff] }
 0x143   : > { %v849_v24 = vmul.f32 0.0, %v4435_v33  ;;  %v8136_v33 = vld [vmem:[#allocation39_spill] sm:$0xff] }
 0x144   : > { %v4437_v39 = vpop.eup %4436 }
 0x145   : > { %v5698_v22 = vadd.f32 %v850_v32, %v849_v24  ;;  %v8137_v32 = vld [vmem:[#allocation40_spill] sm:$0xff]  ;;  %v8138_v24 = vld [vmem:[#allocation41_spill] sm:$0xff] }
 0x147   : > { %4438 = vtanh.f32 %v5698_v22 }
 0x151   : > { %v4439_v19 = vpop.eup %4438 }
 0x152   : > { %v853_v20 = vmul.f32 %v4439_v19, %v4437_v39  ;;  %v8139_v39 = vld [vmem:[#allocation42_spill] sm:$0xff]  ;;  %v8140_v19 = vld [vmem:[#allocation43_spill] sm:$0xff] }
 0x154   : > { %v854_v17 = vpack.c.bf16 %v853_v20, %v853_v20  ;;  %v8141_v20 = vld [vmem:[#allocation44_spill] sm:$0xff] }
 0x156   : > { %855 = vst [vmem:[#allocation3] sm:$0xf] %v854_v17  ;;  %v8142_v17 = vld [vmem:[#allocation45_spill] sm:$0xff] }
 0x15d   : > { %v856_v18 = vld [vmem:[#allocation3] sm:$0xff] }
 0x15e   : > { %v3734_v21 = vcombine.high %v856_v18, %v856_v18  ;;  %v3733_v23 = vcombine.low %v856_v18, %v856_v18  ;;  %v8143_v18 = vld [vmem:[#allocation46_spill] sm:$0xff] }
 0x160   : > { %1237 = vmatprep.mubr.bf16.mxu0 %v3734_v21  ;;  %1278 = vmatprep.mubr.bf16.mxu1 %v3734_v21  ;;  %v8144_v21 = vld [vmem:[#allocation47_spill] sm:$0xff] }
 0x161   : > { %1238 = vmatmul.mubr.bf16.vlgmr.msra.gmra.mrb[4].mxu0 %v3733_v23  ;;  %1279 = vmatmul.mubr.bf16.vlgmr.msra.gmra.mrb[4].mxu1 %v3733_v23  ;;  %v8145_v23 = vld [vmem:[#allocation48_spill] sm:$0xff] }
 0x162   : > { %1321 = vmatpush1.bf16.msra.mxu0 %v5116_v34  ;;  %1362 = vmatpush1.bf16.msra.mxu1 %v5149_v40  ;;  %v1319_v34 = vld [vmem:[#allocation3] sm:$0xf]  ;;  %v8108_v40 = vld [vmem:[#allocation11_spill] sm:$0xff] }
 0x163   : > { %1322 = vmatprep.subr.bf16.mxu0 %v5125_v36  ;;  %1363 = vmatprep.subr.bf16.mxu1 %v5168_v43  ;;  %v8105_v36 = vld [vmem:[#allocation8_spill] sm:$0xff]  ;;  %v8111_v43 = vld [vmem:[#allocation14_spill] sm:$0xff] }
 0x164   : > { %1352 = vmatprep.mubr.bf16.mxu0 %v8104_v25  ;;  %1393 = vmatprep.mubr.bf16.mxu1 %v8104_v25 }
 0x166   : > { %1323 = vmatpush1.bf16.msra.mxu0 %v5132_v37  ;;  %1364 = vmatpush1.bf16.msra.mxu1 %v5173_v44  ;;  %v8106_v37 = vld [vmem:[#allocation9_spill] sm:$0xff]  ;;  %v8112_v44 = vld [vmem:[#allocation15_spill] sm:$0xff] }
 0x167   : > { %1324 = vmatprep.subr.bf16.mxu0 %v5139_v38  ;;  %1365 = vmatprep.subr.bf16.mxu1 %v5190_v47  ;;  %v8107_v38 = vld [vmem:[#allocation10_spill] sm:$0xff] }
 0x168   : > { %v8115_v47 = vld [vmem:[#allocation18_spill] sm:$0xff] }
 0x16a   : > { %1325 = vmatpush1.bf16.msra.mxu0 %v5155_v41  ;;  %1366 = vmatpush1.bf16.msra.mxu1 %v5197_v48  ;;  %v8109_v41 = vld [vmem:[#allocation12_spill] sm:$0xff]  ;;  %v8116_v48 = vld [vmem:[#allocation19_spill] sm:$0xff] }
 0x16b   : > { %1326 = vmatprep.subr.bf16.mxu0 %v5162_v42  ;;  %1367 = vmatprep.subr.bf16.mxu1 %v5203_v49  ;;  %v8110_v42 = vld [vmem:[#allocation13_spill] sm:$0xff]  ;;  %v8117_v49 = vld [vmem:[#allocation20_spill] sm:$0xff] }
 0x16e   : > { %1327 = vmatpush1.bf16.msra.mxu0 %v5180_v45  ;;  %1368 = vmatpush1.bf16.msra.mxu1 %v5221_v52  ;;  %v8113_v45 = vld [vmem:[#allocation16_spill] sm:$0xff]  ;;  %v8120_v52 = vld [vmem:[#allocation23_spill] sm:$0xff] }
 0x16f   : > { %1328 = vmatprep.subr.bf16.mxu0 %v5185_v46  ;;  %1369 = vmatprep.subr.bf16.mxu1 %v5227_v53  ;;  %v8114_v46 = vld [vmem:[#allocation17_spill] sm:$0xff]  ;;  %v8121_v53 = vld [vmem:[#allocation24_spill] sm:$0xff] }
 0x172   : > { %1329 = vmatpush1.bf16.msra.mxu0 %v5209_v50  ;;  %1370 = vmatpush1.bf16.msra.mxu1 %v5245_v56  ;;  %v8118_v50 = vld [vmem:[#allocation21_spill] sm:$0xff]  ;;  %v8124_v56 = vld [vmem:[#allocation27_spill] sm:$0xff] }
 0x173   : > { %1330 = vmatprep.subr.bf16.mxu0 %v5215_v51  ;;  %1371 = vmatprep.subr.bf16.mxu1 %v5251_v57  ;;  %v8119_v51 = vld [vmem:[#allocation22_spill] sm:$0xff]  ;;  %v8125_v57 = vld [vmem:[#allocation28_spill] sm:$0xff] }
 0x176   : > { %1331 = vmatpush1.bf16.msra.mxu0 %v5232_v54  ;;  %1372 = vmatpush1.bf16.msra.mxu1 %v5269_v60  ;;  %v8122_v54 = vld [vmem:[#allocation25_spill] sm:$0xff] }
 0x177   : > { %1332 = vmatprep.subr.bf16.mxu0 %v5238_v55  ;;  %1373 = vmatprep.subr.bf16.mxu1 %v5280_v62  ;;  %v8123_v55 = vld [vmem:[#allocation26_spill] sm:$0xff] }
 0x17a   : > { %1333 = vmatpush1.bf16.msra.mxu0 %v5257_v58  ;;  %1374 = vmatpush1.bf16.msra.mxu1 %v5285_v63  ;;  %v8126_v58 = vld [vmem:[#allocation29_spill] sm:$0xff] }
 0x17b   : > { %1334 = vmatprep.subr.bf16.mxu0 %v5262_v59  ;;  %1375 = vmatprep.subr.bf16.mxu1 %v5296_v1  ;;  %v8127_v59 = vld [vmem:[#allocation30_spill] sm:$0xff] }
 0x17e   : > { %1335 = vmatpush1.bf16.msra.mxu0 %v5274_v61  ;;  %1376 = vmatpush1.bf16.msra.mxu1 %v5309_v4 }
 0x17f   : > { %1440 = vmatprep.subr.bf16.mxu0 %v5290_v0  ;;  %1481 = vmatprep.subr.bf16.mxu1 %v5320_v6 }
 0x181   : > { %1353 = vmatmul.mubr.bf16.vlgmr.msra.gmra.mrb[8].mxu0 %v1319_v34  ;;  %1394 = vmatmul.mubr.bf16.vlgmr.msra.gmra.mrb[8].mxu1 %v1319_v34  ;;  %v8146_v34 = vld [vmem:[#allocation49_spill] sm:$0xff] }
 0x182   : > { %1441 = vmatpush1.bf16.msra.mxu0 %v5304_v3  ;;  %1482 = vmatpush1.bf16.msra.mxu1 %v5328_v7 }
 0x183   : > { %1442 = vmatprep.subr.bf16.mxu0 %v5314_v5  ;;  %1483 = vmatprep.subr.bf16.mxu1 %v5334_v8 }
 0x186   : > { %1443 = vmatpush1.bf16.msra.mxu0 %v5344_v9  ;;  %1484 = vmatpush1.bf16.msra.mxu1 %v5349_v10 }
 0x187   : > { %1444 = vmatprep.subr.bf16.mxu0 %v5356_v11  ;;  %1485 = vmatprep.subr.bf16.mxu1 %v5361_v12 }
 0x18a   : > { %1445 = vmatpush1.bf16.msra.mxu0 %v5366_v13  ;;  %1486 = vmatpush1.bf16.msra.mxu1 %v5371_v14 }
 0x18b   : > { %1446 = vmatprep.subr.bf16.mxu0 %v5380_v15  ;;  %1487 = vmatprep.subr.bf16.mxu1 %v5385_v16 }
 0x18e   : > { %1447 = vmatpush1.bf16.msra.mxu0 %v8105_v36  ;;  %1488 = vmatpush1.bf16.msra.mxu1 %v8106_v37 }
 0x18f   : > { %1448 = vmatprep.subr.bf16.mxu0 %v8107_v38  ;;  %1489 = vmatprep.subr.bf16.mxu1 %v8108_v40 }
 0x192   : > { %1449 = vmatpush1.bf16.msra.mxu0 %v8109_v41  ;;  %1490 = vmatpush1.bf16.msra.mxu1 %v8110_v42 }
 0x193   : > { %1450 = vmatprep.subr.bf16.mxu0 %v8111_v43  ;;  %1491 = vmatprep.subr.bf16.mxu1 %v8112_v44 }
 0x196   : > { %1451 = vmatpush1.bf16.msra.mxu0 %v8113_v45  ;;  %1492 = vmatpush1.bf16.msra.mxu1 %v8114_v46 }
 0x197   : > { %1452 = vmatprep.subr.bf16.mxu0 %v8115_v47  ;;  %1493 = vmatprep.subr.bf16.mxu1 %v8116_v48 }
 0x19a   : > { %1453 = vmatpush1.bf16.msra.mxu0 %v8117_v49  ;;  %1494 = vmatpush1.bf16.msra.mxu1 %v8118_v50 }
 0x19b   : > { %1454 = vmatprep.subr.bf16.mxu0 %v8119_v51  ;;  %1495 = vmatprep.subr.bf16.mxu1 %v8120_v52 }
 0x19e   : > { %1455 = vmatpush1.bf16.msra.mxu0 %v8121_v53  ;;  %1496 = vmatpush1.bf16.msra.mxu1 %v8122_v54 }
 0x19f   : > { %1456 = vmatprep.subr.bf16.mxu0 %v8123_v55  ;;  %1497 = vmatprep.subr.bf16.mxu1 %v8124_v56 }
 0x1a2   : > { %1457 = vmatpush1.bf16.msra.mxu0 %v8125_v57  ;;  %1498 = vmatpush1.bf16.msra.mxu1 %v8126_v58 }
 0x1a3   : > { %1458 = vmatprep.subr.bf16.mxu0 %v8127_v59  ;;  %1499 = vmatprep.subr.bf16.mxu1 %v8128_v2 }
 0x1a6   : > { %1459 = vmatpush1.bf16.msra.mxu0 %v8129_v30  ;;  %1500 = vmatpush1.bf16.msra.mxu1 %v8130_v31 }
 0x1a7   : > { %1460 = vmatprep.subr.bf16.mxu0 %v8131_v27  ;;  %1501 = vmatprep.subr.bf16.mxu1 %v8132_v26 }
 0x1aa   : > { %1461 = vmatpush1.bf16.msra.mxu0 %v8133_v28  ;;  %1502 = vmatpush1.bf16.msra.mxu1 %v8134_v35 }
 0x1ab   : > { %1462 = vmatprep.subr.bf16.mxu0 %v8135_v29  ;;  %1503 = vmatprep.subr.bf16.mxu1 %v8136_v33  ;;  %v8147_v33 = vld [vmem:[#allocation50_spill] sm:$0xff] }
 0x1ae   : > { %1463 = vmatpush1.bf16.msra.mxu0 %v8137_v32  ;;  %1504 = vmatpush1.bf16.msra.mxu1 %v8138_v24  ;;  %v8148_v32 = vld [vmem:[#allocation51_spill] sm:$0xff]  ;;  %v8149_v24 = vld [vmem:[#allocation52_spill] sm:$0xff] }
 0x1af   : > { %1464 = vmatprep.subr.bf16.mxu0 %v8139_v39  ;;  %1505 = vmatprep.subr.bf16.mxu1 %v8140_v19  ;;  %v8150_v39 = vld [vmem:[#allocation53_spill] sm:$0xff]  ;;  %v8151_v19 = vld [vmem:[#allocation54_spill] sm:$0xff] }
 0x1b2   : > { %1465 = vmatpush1.bf16.msra.mxu0 %v8141_v20  ;;  %1506 = vmatpush1.bf16.msra.mxu1 %v8142_v17  ;;  %v8152_v20 = vld [vmem:[#allocation55_spill] sm:$0xff]  ;;  %v8153_v17 = vld [vmem:[#allocation56_spill] sm:$0xff] }
 0x1b3   : > { %1466 = vmatprep.subr.bf16.mxu0 %v8143_v18  ;;  %1507 = vmatprep.subr.bf16.mxu1 %v8144_v21  ;;  %v8154_v18 = vld [vmem:[#allocation57_spill] sm:$0xff]  ;;  %v8155_v21 = vld [vmem:[#allocation6_spill] sm:$0xff] }
 0x1b6   : > { %1467 = vmatpush1.bf16.msra.mxu0 %v8145_v23  ;;  %1508 = vmatpush1.bf16.msra.mxu1 %v8146_v34  ;;  %v8156_v23 = vld [vmem:[#allocation7_spill] sm:$0xff]  ;;  %v858_v34 = vlaneseq }
 0x1b7   : > { %1468 = vmatprep.subr.bf16.mxu0 %v8147_v33  ;;  %1509 = vmatprep.subr.bf16.mxu1 %v8148_v32 }
 0x1b8   : > { %v859_v33 = vshrl.u32 %v858_v34, 7 }
 0x1ba   : > { %1469 = vmatpush1.bf16.msra.mxu0 %v8149_v24  ;;  %1510 = vmatpush1.bf16.msra.mxu1 %v8150_v39  ;;  %v860_v29 = vsub.s32 0, %v859_v33  ;;  %v577_v24 = vld [vmem:[%s7741_s3] sm:$0xf]  ;;  %v864_v39 = vsub.s32 1, %v859_v33  ;;  %v872_v35 = vsub.s32 3, %v859_v33 }
 0x1bb   : > { %1470 = vmatprep.subr.bf16.mxu0 %v8151_v19  ;;  %1511 = vmatprep.subr.bf16.mxu1 %v8152_v20 }
 0x1bc   : > { %v5802_v32 = vrot.slane %v577_v24, %v860_v29  ;;  %v5804_v19 = vrot.slane %v577_v24, %v864_v39  ;;  %v5808_v59 = vrot.slane %v577_v24, %v872_v35  ;;  %v868_v29 = vsub.s32 2, %v859_v33 }
 0x1be   : > { %1471 = vmatpush1.bf16.msra.mxu0 %v8153_v17  ;;  %1512 = vmatpush1.bf16.msra.mxu1 %v8154_v18  ;;  %8157 = vst [vmem:[#allocation8_spill] sm:$0xff] %v5802_v32  ;;  %8158 = vst [vmem:[#allocation9_spill] sm:$0xff] %v5804_v19  ;;  %v5811_v58 = vrot.slane %v577_v24, %v868_v29 }
 0x1bf   : > { %1555 = vmatprep.subr.bf16.mxu0 %v8155_v21  ;;  %1596 = vmatprep.subr.bf16.mxu1 %v8156_v23  ;;  %8159 = vst [vmem:[#allocation10_spill] sm:$0xff] %v5808_v59 }
 0x1c0   : > { %8160 = vst [vmem:[#allocation11_spill] sm:$0xff] %v5811_v58 }
 0x234   : > { %v1239_v20 = vpop.f32.mrb[4].mxu0  ;;  %v1280_v17 = vpop.f32.mrb[4].mxu1 }
 0x235   : > { %v1240_v18 = vadd.f32 %v1239_v20, %v5802_v32  ;;  %v1241_v21 = vpop.f32.mrb[5].mxu0  ;;  %v1282_v28 = vpop.f32.mrb[5].mxu1  ;;  %v1281_v32 = vadd.f32 %v1280_v17, %v5811_v58  ;;  %v3804_v58 = vld [vmem:[%s5692_s12 + $0x30] sm:$0xff] }
 0x236   : > { %v1242_v23 = vadd.f32 %v1241_v21, %v5804_v19  ;;  %v1243_v34 = vpop.f32.mrb[6].mxu0  ;;  %v1284_v26 = vpop.f32.mrb[6].mxu1  ;;  %v1283_v39 = vadd.f32 %v1282_v28, %v5808_v59 }
 0x237   : > { %v3799_v27 = vmul.f32 -1.442695, %v1240_v18  ;;  %v1244_v31 = vpop.f32.mrb[7].mxu0  ;;  %v1285_v30 = vpop.f32.mrb[7].mxu1  ;;  %v3803_v34 = vld [vmem:[%s5692_s12 + $0x28] sm:$0xff] }
 0x238   : > { %v3800_v2 = vmul.f32 -1.442695, %v1242_v23  ;;  %v3801_v20 = vmul.f32 -1.442695, %v1283_v39  ;;  %v3802_v23 = vld [vmem:[%s5692_s12 + $0x20] sm:$0xff] }
 0x239   : > { %4440 = vpow2.f32 %v3799_v27 }
 0x23a   : > { %4442 = vpow2.f32 %v3800_v2 }
 0x23b   : > { %4444 = vpow2.f32 %v3801_v20 }
 0x23c   : > { %4446 = vtanh.f32 %v1281_v32 }
 0x243   : > { %v4441_v21 = vpop.eup %4440 }
 0x244   : > { %v4443_v26 = vpop.eup %4442  ;;  %v1290_v18 = vadd.f32 1.0, %v4441_v21 }
 0x245   : > { %v1296_v30 = vadd.f32 1.0, %v4443_v26  ;;  %v4445_v31 = vpop.eup %4444 }
 0x246   : > { %4448 = vrcp.f32 %v1290_v18  ;;  %v4447_v27 = vpop.eup %4446  ;;  %v1303_v33 = vadd.f32 1.0, %v4445_v31 }
 0x247   : > { %4450 = vrcp.f32 %v1296_v30 }
 0x248   : > { %4452 = vrcp.f32 %v1303_v33 }
 0x250   : > { %v4449_v2 = vpop.eup %4448 }
 0x251   : > { %v4451_v35 = vpop.eup %4450  ;;  %v1307_v28 = vmul.f32 %v4449_v2, %v4447_v27 }
 0x252   : > { %v1306_v24 = vmul.f32 0.0, %v4451_v35  ;;  %v4453_v59 = vpop.eup %4452 }
 0x254   : > { %v5816_v17 = vadd.f32 %v1307_v28, %v1306_v24  ;;  %v1354_v29 = vpop.f32.mrb[8].mxu0  ;;  %v1395_v39 = vpop.f32.mrb[8].mxu1  ;;  %v3805_v28 = vld [vmem:[%s5692_s12 + $0x38] sm:$0xff] }
 0x255   : > { %v1402_v32 = vadd.f32 %v3802_v23, %v1354_v29  ;;  %v1356_v20 = vpop.f32.mrb[9].mxu0  ;;  %v1397_v21 = vpop.f32.mrb[9].mxu1  ;;  %v1404_v29 = vadd.f32 %v3804_v58, %v1395_v39 }
 0x256   : > { %4454 = vtanh.f32 %v5816_v17  ;;  %v1403_v26 = vadd.f32 %v3803_v34, %v1356_v20  ;;  %v1358_v18 = vpop.f32.mrb[10].mxu0  ;;  %v1399_v30 = vpop.f32.mrb[10].mxu1  ;;  %v1405_v24 = vadd.f32 %v3805_v28, %v1397_v21 }
 0x257   : > { %v3806_v27 = vmul.f32 -1.442695, %v1402_v32  ;;  %v1359_v31 = vpop.f32.mrb[11].mxu0  ;;  %v1400_v2 = vpop.f32.mrb[11].mxu1 }
 0x258   : > { %v3807_v35 = vmul.f32 -1.442695, %v1403_v26  ;;  %v3808_v19 = vmul.f32 -1.442695, %v1405_v24 }
 0x259   : > { %4456 = vpow2.f32 %v3806_v27 }
 0x25a   : > { %4458 = vpow2.f32 %v3807_v35 }
 0x25b   : > { %4460 = vpow2.f32 %v3808_v19 }
 0x25c   : > { %4462 = vtanh.f32 %v1404_v29  ;;  %v5838_v29 = vld [vmem:[%s7739_s1 + $0x8] ss:$16 sps:$4 sm:$0xff]  }
 0x260   : > { %v4455_v33 = vpop.eup %4454 }
 0x261   : > { %v5821_v23 = vmul.f32 %v4455_v33, %v4453_v59 }
 0x263   : > { %8161 = vst [vmem:[#allocation12_spill] sm:$0xff] %v5821_v23  ;;  %v4457_v57 = vpop.eup %4456  ;;  %v1311_v34 = vpack.c.bf16 %v5821_v23, %v5821_v23  ;;  %v5954_v23 = vld [vmem:[%s7739_s1 + $0xa0] ss:$16 sps:$4 sm:$0xff]  }
 0x264   : > { %v4459_v20 = vpop.eup %4458  ;;  %v1409_v32 = vadd.f32 1.0, %v4457_v57 }
 0x265   : > { %1312 = vst [vmem:[#allocation3 + $0x4] sm:$0xf] %v1311_v34  ;;  %v1415_v26 = vadd.f32 1.0, %v4459_v20  ;;  %v4461_v21 = vpop.eup %4460  ;;  %v5844_v34 = vld [vmem:[%s7739_s1 + $0x24] ss:$16 sps:$4 sm:$0xff]  }
 0x266   : > { %4464 = vrcp.f32 %v1409_v32  ;;  %v4463_v18 = vpop.eup %4462  ;;  %v1422_v59 = vadd.f32 1.0, %v4461_v21  ;;  %v5850_v20 = vld [vmem:[%s7739_s1 + $0x2c] ss:$16 sps:$4 sm:$0xff]   ;;  %v5858_v32 = vld [vmem:[%s7739_s1 + $0x20] ss:$16 sps:$4 sm:$0xff]  }
 0x267   : > { %4466 = vrcp.f32 %v1415_v26  ;;  %v5864_v26 = vld [vmem:[%s7739_s1 + $0x28] ss:$16 sps:$4 sm:$0xff]   ;;  %v5870_v21 = vld [vmem:[%s7739_s1 + $0x44] ss:$16 sps:$4 sm:$0xff]  }
 0x268   : > { %4468 = vrcp.f32 %v1422_v59  ;;  %v5900_v59 = vld [vmem:[%s7739_s1 + $0x6c] ss:$16 sps:$4 sm:$0xff]  }
 0x270   : > { %v4465_v30 = vpop.eup %4464 }
 0x271   : > { %v4467_v27 = vpop.eup %4466  ;;  %v1426_v31 = vmul.f32 %v4465_v30, %v4463_v18  ;;  %v5876_v18 = vld [vmem:[%s7739_s1 + $0x4c] ss:$16 sps:$4 sm:$0xff]   ;;  %v5882_v30 = vld [vmem:[%s7739_s1 + $0x40] ss:$16 sps:$4 sm:$0xff]  }
 0x272   : > { %v1425_v58 = vmul.f32 %v4467_v27, %v5698_v22  ;;  %v4469_v57 = vpop.eup %4468  ;;  %v5832_v22 = vld [vmem:[%s7739_s1] ss:$16 sps:$4 sm:$0xff]   ;;  %v5888_v27 = vld [vmem:[%s7739_s1 + $0x48] ss:$16 sps:$4 sm:$0xff]  }
 0x274   : > { %v5826_v39 = vadd.f32 %v1426_v31, %v1425_v58  ;;  %v5894_v31 = vld [vmem:[%s7739_s1 + $0x64] ss:$16 sps:$4 sm:$0xff]   ;;  %v5906_v58 = vld [vmem:[%s7739_s1 + $0x60] ss:$16 sps:$4 sm:$0xff]  }
 0x276   : > { %4470 = vtanh.f32 %v5826_v39 }
 0x280   : > { %v4471_v19 = vpop.eup %4470 }
 0x281   : > { %v1429_v2 = vmul.f32 %v4471_v19, %v4469_v57  ;;  %v5912_v57 = vld [vmem:[%s7739_s1 + $0x68] ss:$16 sps:$4 sm:$0xff]   ;;  %v5918_v19 = vld [vmem:[%s7739_s1 + $0x84] ss:$16 sps:$4 sm:$0xff]  }
 0x283   : > { %v1430_v35 = vpack.c.bf16 %v1429_v2, %v1429_v2  ;;  %v5924_v2 = vld [vmem:[%s7739_s1 + $0x8c] ss:$16 sps:$4 sm:$0xff]  }
 0x285   : > { %1431 = vst [vmem:[#allocation3] sm:$0xf] %v1430_v35  ;;  %v5930_v35 = vld [vmem:[%s7739_s1 + $0x80] ss:$16 sps:$4 sm:$0xff]  }
 0x28c   : > { %v1432_v28 = vld [vmem:[#allocation3] sm:$0xff] }
 0x28d   : > { %v3810_v24 = vcombine.high %v1432_v28, %v1432_v28  ;;  %v3809_v33 = vcombine.low %v1432_v28, %v1432_v28  ;;  %v5936_v28 = vld [vmem:[%s7739_s1 + $0x88] ss:$16 sps:$4 sm:$0xff]  }
 0x28f   : > { %1472 = vmatprep.mubr.bf16.mxu0 %v3810_v24  ;;  %1513 = vmatprep.mubr.bf16.mxu1 %v3810_v24  ;;  %v5942_v24 = vld [vmem:[%s7739_s1 + $0xa4] ss:$16 sps:$4 sm:$0xff]  }
 0x290   : > { %1473 = vmatmul.mubr.bf16.vlgmr.msra.gmra.mrb[12].mxu0 %v3809_v33  ;;  %1514 = vmatmul.mubr.bf16.vlgmr.msra.gmra.mrb[12].mxu1 %v3809_v33  ;;  %8162 = vst [vmem:[#allocation13_spill] sm:$0xff] %v5942_v24  ;;  %v5948_v33 = vld [vmem:[%s7739_s1 + $0xac] ss:$16 sps:$4 sm:$0xff]  }
 0x291   : > { %1556 = vmatpush1.bf16.msra.mxu0 %v5832_v22  ;;  %1597 = vmatpush1.bf16.msra.mxu1 %v5838_v29  ;;  %8163 = vst [vmem:[#allocation14_spill] sm:$0xff] %v5948_v33 }
 0x292   : > { %1557 = vmatprep.subr.bf16.mxu0 %v5844_v34  ;;  %1598 = vmatprep.subr.bf16.mxu1 %v5850_v20 }
 0x293   : > { %1587 = vmatprep.mubr.bf16.mxu0 %v8104_v25  ;;  %1628 = vmatprep.mubr.bf16.mxu1 %v8104_v25 }
 0x295   : > { %1558 = vmatpush1.bf16.msra.mxu0 %v5858_v32  ;;  %1599 = vmatpush1.bf16.msra.mxu1 %v5864_v26 }
 0x296   : > { %1559 = vmatprep.subr.bf16.mxu0 %v5870_v21  ;;  %1600 = vmatprep.subr.bf16.mxu1 %v5876_v18 }
 0x299   : > { %1560 = vmatpush1.bf16.msra.mxu0 %v5882_v30  ;;  %1601 = vmatpush1.bf16.msra.mxu1 %v5888_v27 }
 0x29a   : > { %1561 = vmatprep.subr.bf16.mxu0 %v5894_v31  ;;  %1602 = vmatprep.subr.bf16.mxu1 %v5900_v59 }
 0x29d   : > { %1562 = vmatpush1.bf16.msra.mxu0 %v5906_v58  ;;  %1603 = vmatpush1.bf16.msra.mxu1 %v5912_v57 }
 0x29e   : > { %1563 = vmatprep.subr.bf16.mxu0 %v5918_v19  ;;  %1604 = vmatprep.subr.bf16.mxu1 %v5924_v2 }
 0x2a1   : > { %1564 = vmatpush1.bf16.msra.mxu0 %v5930_v35  ;;  %1605 = vmatpush1.bf16.msra.mxu1 %v5936_v28 }
 0x2a2   : > { %1565 = vmatprep.subr.bf16.mxu0 %v5942_v24  ;;  %1606 = vmatprep.subr.bf16.mxu1 %v5948_v33  ;;  %v5961_v24 = vld [vmem:[%s7739_s1 + $0xc4] ss:$16 sps:$4 sm:$0xff]   ;;  %v5968_v33 = vld [vmem:[%s7739_s1 + $0xc0] ss:$16 sps:$4 sm:$0xff]  }
 0x2a5   : > { %1566 = vmatpush1.bf16.msra.mxu0 %v5954_v23  ;;  %1607 = vmatpush1.bf16.msra.mxu1 %v5269_v60  ;;  %v5975_v60 = vld [vmem:[%s7739_s1 + $0xe4] ss:$16 sps:$4 sm:$0xff]  }
 0x2a6   : > { %1567 = vmatprep.subr.bf16.mxu0 %v5961_v24  ;;  %1608 = vmatprep.subr.bf16.mxu1 %v5280_v62  ;;  %v1554_v62 = vld [vmem:[#allocation3] sm:$0xf] }
 0x2a9   : > { %1568 = vmatpush1.bf16.msra.mxu0 %v5968_v33  ;;  %1609 = vmatpush1.bf16.msra.mxu1 %v5285_v63  ;;  %v8165_v63 = vld [vmem:[#allocation29_spill] sm:$0xff] }
 0x2aa   : > { %1569 = vmatprep.subr.bf16.mxu0 %v5975_v60  ;;  %1610 = vmatprep.subr.bf16.mxu1 %v5296_v1  ;;  %v8167_v1 = vld [vmem:[#allocation31_spill] sm:$0xff] }
 0x2ad   : > { %1570 = vmatpush1.bf16.msra.mxu0 %v5274_v61  ;;  %1611 = vmatpush1.bf16.msra.mxu1 %v5309_v4  ;;  %v8164_v61 = vld [vmem:[#allocation28_spill] sm:$0xff]  ;;  %v8169_v4 = vld [vmem:[#allocation33_spill] sm:$0xff] }
 0x2ae   : > { %1675 = vmatprep.subr.bf16.mxu0 %v5290_v0  ;;  %1716 = vmatprep.subr.bf16.mxu1 %v5320_v6  ;;  %v8166_v0 = vld [vmem:[#allocation30_spill] sm:$0xff]  ;;  %v8171_v6 = vld [vmem:[#allocation35_spill] sm:$0xff] }
 0x2b0   : > { %1588 = vmatmul.mubr.bf16.vlgmr.msra.gmra.mrb[16].mxu0 %v1554_v62  ;;  %1629 = vmatmul.mubr.bf16.vlgmr.msra.gmra.mrb[16].mxu1 %v1554_v62  ;;  %v8197_v62 = vld [vmem:[#allocation9_spill] sm:$0xff] }
 0x2b1   : > { %1676 = vmatpush1.bf16.msra.mxu0 %v5304_v3  ;;  %1717 = vmatpush1.bf16.msra.mxu1 %v5328_v7  ;;  %v8168_v3 = vld [vmem:[#allocation32_spill] sm:$0xff] }
 0x2b2   : > { %1677 = vmatprep.subr.bf16.mxu0 %v5314_v5  ;;  %1718 = vmatprep.subr.bf16.mxu1 %v5334_v8  ;;  %v8170_v5 = vld [vmem:[#allocation34_spill] sm:$0xff]  ;;  %v8172_v7 = vld [vmem:[#allocation36_spill] sm:$0xff]  ;;  %v8173_v8 = vld [vmem:[#allocation37_spill] sm:$0xff] }
 0x2b5   : > { %1678 = vmatpush1.bf16.msra.mxu0 %v5344_v9  ;;  %1719 = vmatpush1.bf16.msra.mxu1 %v5349_v10  ;;  %v8174_v9 = vld [vmem:[#allocation38_spill] sm:$0xff]  ;;  %v8175_v10 = vld [vmem:[#allocation39_spill] sm:$0xff] }
 0x2b6   : > { %1679 = vmatprep.subr.bf16.mxu0 %v5356_v11  ;;  %1720 = vmatprep.subr.bf16.mxu1 %v5361_v12  ;;  %v8176_v11 = vld [vmem:[#allocation40_spill] sm:$0xff]  ;;  %v8177_v12 = vld [vmem:[#allocation41_spill] sm:$0xff] }
 0x2b9   : > { %1680 = vmatpush1.bf16.msra.mxu0 %v5366_v13  ;;  %1721 = vmatpush1.bf16.msra.mxu1 %v5371_v14  ;;  %v8178_v13 = vld [vmem:[#allocation42_spill] sm:$0xff]  ;;  %v8179_v14 = vld [vmem:[#allocation43_spill] sm:$0xff] }
 0x2ba   : > { %1681 = vmatprep.subr.bf16.mxu0 %v5380_v15  ;;  %1722 = vmatprep.subr.bf16.mxu1 %v5385_v16  ;;  %v8180_v15 = vld [vmem:[#allocation44_spill] sm:$0xff]  ;;  %v8181_v16 = vld [vmem:[#allocation45_spill] sm:$0xff] }
 0x2bd   : > { %1682 = vmatpush1.bf16.msra.mxu0 %v8105_v36  ;;  %1723 = vmatpush1.bf16.msra.mxu1 %v8106_v37  ;;  %v8182_v36 = vld [vmem:[#allocation46_spill] sm:$0xff]  ;;  %v8183_v37 = vld [vmem:[#allocation47_spill] sm:$0xff] }
 0x2be   : > { %1683 = vmatprep.subr.bf16.mxu0 %v8107_v38  ;;  %1724 = vmatprep.subr.bf16.mxu1 %v8108_v40  ;;  %v8184_v38 = vld [vmem:[#allocation48_spill] sm:$0xff]  ;;  %v8185_v40 = vld [vmem:[#allocation49_spill] sm:$0xff] }
 0x2c1   : > { %1684 = vmatpush1.bf16.msra.mxu0 %v8109_v41  ;;  %1725 = vmatpush1.bf16.msra.mxu1 %v8110_v42  ;;  %v8186_v41 = vld [vmem:[#allocation50_spill] sm:$0xff]  ;;  %v8187_v42 = vld [vmem:[#allocation51_spill] sm:$0xff] }
 0x2c2   : > { %1685 = vmatprep.subr.bf16.mxu0 %v8111_v43  ;;  %1726 = vmatprep.subr.bf16.mxu1 %v8112_v44  ;;  %v8188_v43 = vld [vmem:[#allocation52_spill] sm:$0xff]  ;;  %v8189_v44 = vld [vmem:[#allocation53_spill] sm:$0xff] }
 0x2c5   : > { %1686 = vmatpush1.bf16.msra.mxu0 %v8113_v45  ;;  %1727 = vmatpush1.bf16.msra.mxu1 %v8114_v46  ;;  %v8190_v45 = vld [vmem:[#allocation54_spill] sm:$0xff]  ;;  %v8191_v46 = vld [vmem:[#allocation55_spill] sm:$0xff] }
 0x2c6   : > { %1687 = vmatprep.subr.bf16.mxu0 %v8115_v47  ;;  %1728 = vmatprep.subr.bf16.mxu1 %v8116_v48  ;;  %v8192_v47 = vld [vmem:[#allocation56_spill] sm:$0xff]  ;;  %v8193_v48 = vld [vmem:[#allocation57_spill] sm:$0xff] }
 0x2c9   : > { %1688 = vmatpush1.bf16.msra.mxu0 %v8117_v49  ;;  %1729 = vmatpush1.bf16.msra.mxu1 %v8118_v50  ;;  %v6048_v49 = vld [vmem:[%s7739_s1 + $0x4] ss:$16 sps:$4 sm:$0xff]   ;;  %v6054_v50 = vld [vmem:[%s7739_s1 + $0xc] ss:$16 sps:$4 sm:$0xff]  }
 0x2ca   : > { %1689 = vmatprep.subr.bf16.mxu0 %v8119_v51  ;;  %1730 = vmatprep.subr.bf16.mxu1 %v8120_v52  ;;  %8194 = vst [vmem:[#allocation15_spill] sm:$0xff] %v6048_v49  ;;  %8195 = vst [vmem:[#allocation16_spill] sm:$0xff] %v6054_v50 }
 0x2cd   : > { %1690 = vmatpush1.bf16.msra.mxu0 %v8121_v53  ;;  %1731 = vmatpush1.bf16.msra.mxu1 %v8122_v54  ;;  %v8196_v53 = vld [vmem:[#allocation8_spill] sm:$0xff] }
 0x2ce   : > { %1691 = vmatprep.subr.bf16.mxu0 %v8123_v55  ;;  %1732 = vmatprep.subr.bf16.mxu1 %v8124_v56 }
 0x2d1   : > { %1692 = vmatpush1.bf16.msra.mxu0 %v8164_v61  ;;  %1733 = vmatpush1.bf16.msra.mxu1 %v8165_v63 }
 0x2d2   : > { %1693 = vmatprep.subr.bf16.mxu0 %v8166_v0  ;;  %1734 = vmatprep.subr.bf16.mxu1 %v8167_v1 }
 0x2d5   : > { %1694 = vmatpush1.bf16.msra.mxu0 %v8168_v3  ;;  %1735 = vmatpush1.bf16.msra.mxu1 %v8169_v4 }
 0x2d6   : > { %1695 = vmatprep.subr.bf16.mxu0 %v8170_v5  ;;  %1736 = vmatprep.subr.bf16.mxu1 %v8171_v6  ;;  %v8198_v6 = vld [vmem:[#allocation10_spill] sm:$0xff] }
 0x2d9   : > { %1696 = vmatpush1.bf16.msra.mxu0 %v8172_v7  ;;  %1737 = vmatpush1.bf16.msra.mxu1 %v8173_v8 }
 0x2da   : > { %1697 = vmatprep.subr.bf16.mxu0 %v8174_v9  ;;  %1738 = vmatprep.subr.bf16.mxu1 %v8175_v10  ;;  %v8199_v9 = vld [vmem:[#allocation11_spill] sm:$0xff] }
 0x2dd   : > { %1698 = vmatpush1.bf16.msra.mxu0 %v8176_v11  ;;  %1739 = vmatpush1.bf16.msra.mxu1 %v8177_v12 }
 0x2de   : > { %1699 = vmatprep.subr.bf16.mxu0 %v8178_v13  ;;  %1740 = vmatprep.subr.bf16.mxu1 %v8179_v14 }
 0x2e1   : > { %1700 = vmatpush1.bf16.msra.mxu0 %v8180_v15  ;;  %1741 = vmatpush1.bf16.msra.mxu1 %v8181_v16 }
 0x2e2   : > { %1701 = vmatprep.subr.bf16.mxu0 %v8182_v36  ;;  %1742 = vmatprep.subr.bf16.mxu1 %v8183_v37 }
 0x2e5   : > { %1702 = vmatpush1.bf16.msra.mxu0 %v8184_v38  ;;  %1743 = vmatpush1.bf16.msra.mxu1 %v8185_v40 }
 0x2e6   : > { %1703 = vmatprep.subr.bf16.mxu0 %v8186_v41  ;;  %1744 = vmatprep.subr.bf16.mxu1 %v8187_v42  ;;  %v3814_v42 = vld [vmem:[%s5692_s12 + $0x40] sm:$0xff] }
 0x2e9   : > { %1704 = vmatpush1.bf16.msra.mxu0 %v8188_v43  ;;  %1745 = vmatpush1.bf16.msra.mxu1 %v8189_v44  ;;  %v3815_v43 = vld [vmem:[%s5692_s12 + $0x48] sm:$0xff] }
 0x2ea   : > { %1705 = vmatprep.subr.bf16.mxu0 %v8190_v45  ;;  %1746 = vmatprep.subr.bf16.mxu1 %v8191_v46 }
 0x2ed   : > { %1706 = vmatpush1.bf16.msra.mxu0 %v8192_v47  ;;  %1747 = vmatpush1.bf16.msra.mxu1 %v8193_v48 }
 0x2ee   : > { %1790 = vmatprep.subr.bf16.mxu0 %v6048_v49  ;;  %1831 = vmatprep.subr.bf16.mxu1 %v6054_v50 }
 0x363   : > { %v1474_v51 = vpop.f32.mrb[12].mxu0  ;;  %v1515_v52 = vpop.f32.mrb[12].mxu1 }
 0x364   : > { %v1475_v54 = vadd.f32 %v1474_v51, %v8196_v53  ;;  %v1476_v55 = vpop.f32.mrb[13].mxu0  ;;  %v1517_v56 = vpop.f32.mrb[13].mxu1  ;;  %v1516_v10 = vadd.f32 %v1515_v52, %v8199_v9 }
 0x365   : > { %v1477_v61 = vadd.f32 %v1476_v55, %v8197_v62  ;;  %v1478_v63 = vpop.f32.mrb[14].mxu0  ;;  %v1519_v0 = vpop.f32.mrb[14].mxu1  ;;  %v1518_v7 = vadd.f32 %v1517_v56, %v8198_v6 }
 0x366   : > { %v3811_v1 = vmul.f32 -1.442695, %v1475_v54  ;;  %v1479_v3 = vpop.f32.mrb[15].mxu0  ;;  %v1520_v4 = vpop.f32.mrb[15].mxu1  ;;  %v3817_v0 = vld [vmem:[%s5692_s12 + $0x58] sm:$0xff] }
 0x367   : > { %v3812_v5 = vmul.f32 -1.442695, %v1477_v61  ;;  %v3813_v8 = vmul.f32 -1.442695, %v1518_v7  ;;  %v3816_v3 = vld [vmem:[%s5692_s12 + $0x50] sm:$0xff] }
 0x368   : > { %4472 = vpow2.f32 %v3811_v1 }
 0x369   : > { %4474 = vpow2.f32 %v3812_v5 }
 0x36a   : > { %4476 = vpow2.f32 %v3813_v8 }
 0x36b   : > { %4478 = vtanh.f32 %v1516_v10 }
 0x372   : > { %v4473_v11 = vpop.eup %4472 }
 0x373   : > { %v4475_v12 = vpop.eup %4474  ;;  %v1525_v13 = vadd.f32 1.0, %v4473_v11 }
 0x374   : > { %v1531_v14 = vadd.f32 1.0, %v4475_v12  ;;  %v4477_v15 = vpop.eup %4476 }
 0x375   : > { %4480 = vrcp.f32 %v1525_v13  ;;  %v4479_v16 = vpop.eup %4478  ;;  %v1538_v40 = vadd.f32 1.0, %v4477_v15 }
 0x376   : > { %4482 = vrcp.f32 %v1531_v14 }
 0x377   : > { %4484 = vrcp.f32 %v1538_v40 }
 0x37f   : > { %v4481_v36 = vpop.eup %4480 }
 0x380   : > { %v4483_v37 = vpop.eup %4482  ;;  %v1542_v38 = vmul.f32 %v4481_v36, %v4479_v16 }
 0x381   : > { %v1541_v41 = vmul.f32 %v4483_v37, %v5816_v17  ;;  %v4485_v4 = vpop.eup %4484 }
 0x383   : > { %v6064_v44 = vadd.f32 %v1542_v38, %v1541_v41  ;;  %v1589_v45 = vpop.f32.mrb[16].mxu0  ;;  %v1630_v46 = vpop.f32.mrb[16].mxu1 }
 0x384   : > { %v1637_v47 = vadd.f32 %v3814_v42, %v1589_v45  ;;  %v1591_v48 = vpop.f32.mrb[17].mxu0  ;;  %v1632_v51 = vpop.f32.mrb[17].mxu1  ;;  %v1639_v10 = vadd.f32 %v3816_v3, %v1630_v46  ;;  %v6142_v3 = vld [vmem:[%s7740_s2 + $0x4] ss:$16 sps:$4 sm:$0xff]  }
 0x385   : > { %4486 = vtanh.f32 %v6064_v44  ;;  %v1638_v52 = vadd.f32 %v3815_v43, %v1591_v48  ;;  %v1593_v54 = vpop.f32.mrb[18].mxu0  ;;  %v1634_v55 = vpop.f32.mrb[18].mxu1  ;;  %v1640_v1 = vadd.f32 %v3817_v0, %v1632_v51  ;;  %v6130_v0 = vld [vmem:[%s7739_s1 + $0xe0] ss:$16 sps:$4 sm:$0xff]  }
 0x386   : > { %v3818_v56 = vmul.f32 -1.442695, %v1637_v47  ;;  %v1594_v61 = vpop.f32.mrb[19].mxu0  ;;  %v1635_v17 = vpop.f32.mrb[19].mxu1  ;;  %v8202_v55 = vld [vmem:[#allocation14_spill] sm:$0xff] }
 0x387   : > { %v3819_v63 = vmul.f32 -1.442695, %v1638_v52  ;;  %v3820_v7 = vmul.f32 -1.442695, %v1640_v1  ;;  %v6110_v61 = vld [vmem:[%s7739_s1 + $0xcc] ss:$16 sps:$4 sm:$0xff]  }
 0x388   : > { %4488 = vpow2.f32 %v3818_v56  ;;  %v6103_v56 = vld [vmem:[%s7739_s1 + $0xa8] ss:$16 sps:$4 sm:$0xff]  }
 0x389   : > { %4490 = vpow2.f32 %v3819_v63  ;;  %v6117_v17 = vld [vmem:[%s7739_s1 + $0xc8] ss:$16 sps:$4 sm:$0xff]   ;;  %v6124_v63 = vld [vmem:[%s7739_s1 + $0xec] ss:$16 sps:$4 sm:$0xff]  }
 0x38a   : > { %4492 = vpow2.f32 %v3820_v7  ;;  %v6136_v1 = vld [vmem:[%s7739_s1 + $0xe8] ss:$16 sps:$4 sm:$0xff]   ;;  %v6154_v7 = vld [vmem:[%s7740_s2] ss:$16 sps:$4 sm:$0xff]  }
 0x38b   : > { %4494 = vtanh.f32 %v1639_v10  ;;  %v6160_v10 = vld [vmem:[%s7740_s2 + $0x8] ss:$16 sps:$4 sm:$0xff]  }
 0x38f   : > { %v4487_v5 = vpop.eup %4486 }
 0x390   : > { %v6069_v8 = vmul.f32 %v4487_v5, %v4485_v4  ;;  %v6148_v4 = vld [vmem:[%s7740_s2 + $0xc] ss:$16 sps:$4 sm:$0xff]  }
 0x392   : > { %8200 = vst [vmem:[#allocation17_spill] sm:$0xff] %v6069_v8  ;;  %v4489_v11 = vpop.eup %4488  ;;  %v1546_v12 = vpack.c.bf16 %v6069_v8, %v6069_v8  ;;  %v6286_v8 = vld [vmem:[%s7740_s2 + $0xc4] ss:$16 sps:$4 sm:$0xff]  }
 0x393   : > { %v4491_v13 = vpop.eup %4490  ;;  %v1644_v14 = vadd.f32 1.0, %v4489_v11  ;;  %v6166_v11 = vld [vmem:[%s7740_s2 + $0x24] ss:$16 sps:$4 sm:$0xff]   ;;  %8217 = vst [vmem:[#allocation30_spill] sm:$0xff] %v6286_v8 }
 0x394   : > { %1547 = vst [vmem:[#allocation3 + $0x4] sm:$0xf] %v1546_v12  ;;  %v1650_v15 = vadd.f32 1.0, %v4491_v13  ;;  %v4493_v16 = vpop.eup %4492  ;;  %v6172_v12 = vld [vmem:[%s7740_s2 + $0x2c] ss:$16 sps:$4 sm:$0xff]  }
 0x395   : > { %4496 = vrcp.f32 %v1644_v14  ;;  %v4495_v36 = vpop.eup %4494  ;;  %v1657_v41 = vadd.f32 1.0, %v4493_v16  ;;  %v6178_v13 = vld [vmem:[%s7740_s2 + $0x20] ss:$16 sps:$4 sm:$0xff]   ;;  %v6184_v14 = vld [vmem:[%s7740_s2 + $0x28] ss:$16 sps:$4 sm:$0xff]  }
 0x396   : > { %4498 = vrcp.f32 %v1650_v15  ;;  %v6190_v15 = vld [vmem:[%s7740_s2 + $0x44] ss:$16 sps:$4 sm:$0xff]   ;;  %v6196_v16 = vld [vmem:[%s7740_s2 + $0x4c] ss:$16 sps:$4 sm:$0xff]  }
 0x397   : > { %4500 = vrcp.f32 %v1657_v41  ;;  %v6226_v41 = vld [vmem:[%s7740_s2 + $0x60] ss:$16 sps:$4 sm:$0xff]  }
 0x398   : > { %8207 = vst [vmem:[#allocation22_spill] sm:$0xff] %v6226_v41 }
 0x39f   : > { %v4497_v37 = vpop.eup %4496 }
 0x3a0   : > { %v4499_v38 = vpop.eup %4498  ;;  %v1661_v40 = vmul.f32 %v4497_v37, %v4495_v36  ;;  %v6202_v36 = vld [vmem:[%s7740_s2 + $0x40] ss:$16 sps:$4 sm:$0xff]   ;;  %v6208_v37 = vld [vmem:[%s7740_s2 + $0x48] ss:$16 sps:$4 sm:$0xff]  }
 0x3a1   : > { %v1660_v42 = vmul.f32 %v4499_v38, %v5826_v39  ;;  %v4501_v45 = vpop.eup %4500  ;;  %v8201_v39 = vld [vmem:[#allocation13_spill] sm:$0xff]  ;;  %8203 = vst [vmem:[#allocation18_spill] sm:$0xff] %v6202_v36  ;;  %8204 = vst [vmem:[#allocation19_spill] sm:$0xff] %v6208_v37 }
 0x3a2   : > { %v6214_v38 = vld [vmem:[%s7740_s2 + $0x64] ss:$16 sps:$4 sm:$0xff]  }
 0x3a3   : > { %v6074_v43 = vadd.f32 %v1661_v40, %v1660_v42  ;;  %8205 = vst [vmem:[#allocation20_spill] sm:$0xff] %v6214_v38  ;;  %v6220_v40 = vld [vmem:[%s7740_s2 + $0x6c] ss:$16 sps:$4 sm:$0xff]   ;;  %v6232_v42 = vld [vmem:[%s7740_s2 + $0x68] ss:$16 sps:$4 sm:$0xff]  }
 0x3a4   : > { %8206 = vst [vmem:[#allocation21_spill] sm:$0xff] %v6220_v40  ;;  %8208 = vst [vmem:[#allocation23_spill] sm:$0xff] %v6232_v42 }
 0x3a5   : > { %4502 = vtanh.f32 %v6074_v43 }
 0x3af   : > { %v4503_v46 = vpop.eup %4502 }
 0x3b0   : > { %v1664_v47 = vmul.f32 %v4503_v46, %v4501_v45  ;;  %v6238_v45 = vld [vmem:[%s7740_s2 + $0x84] ss:$16 sps:$4 sm:$0xff]   ;;  %v6244_v46 = vld [vmem:[%s7740_s2 + $0x8c] ss:$16 sps:$4 sm:$0xff]  }
 0x3b1   : > { %8209 = vst [vmem:[#allocation24_spill] sm:$0xff] %v6238_v45  ;;  %8210 = vst [vmem:[#allocation25_spill] sm:$0xff] %v6244_v46 }
 0x3b2   : > { %v1665_v48 = vpack.c.bf16 %v1664_v47, %v1664_v47  ;;  %v6250_v47 = vld [vmem:[%s7740_s2 + $0x80] ss:$16 sps:$4 sm:$0xff]  }
 0x3b3   : > { %8211 = vst [vmem:[#allocation26_spill] sm:$0xff] %v6250_v47 }
 0x3b4   : > { %1666 = vst [vmem:[#allocation3] sm:$0xf] %v1665_v48  ;;  %v6256_v48 = vld [vmem:[%s7740_s2 + $0x88] ss:$16 sps:$4 sm:$0xff]  }
 0x3b5   : > { %8212 = vst [vmem:[#allocation27_spill] sm:$0xff] %v6256_v48 }
 0x3bb   : > { %v1667_v51 = vld [vmem:[#allocation3] sm:$0xff] }
 0x3bc   : > { %v3822_v52 = vcombine.high %v1667_v51, %v1667_v51  ;;  %v3821_v54 = vcombine.low %v1667_v51, %v1667_v51  ;;  %v1789_v5 = vld [vmem:[#allocation3] sm:$0xf]  ;;  %v6262_v51 = vld [vmem:[%s7740_s2 + $0xa4] ss:$16 sps:$4 sm:$0xff]  }
 0x3bd   : > { %8213 = vst [vmem:[#allocation6_spill] sm:$0xff] %v6262_v51 }
 0x3be   : > { %1707 = vmatprep.mubr.bf16.mxu0 %v3822_v52  ;;  %1748 = vmatprep.mubr.bf16.mxu1 %v3822_v52  ;;  %v6268_v52 = vld [vmem:[%s7740_s2 + $0xac] ss:$16 sps:$4 sm:$0xff]  }
 0x3bf   : > { %1708 = vmatmul.mubr.bf16.vlgmr.msra.gmra.mrb[20].mxu0 %v3821_v54  ;;  %1749 = vmatmul.mubr.bf16.vlgmr.msra.gmra.mrb[20].mxu1 %v3821_v54  ;;  %8214 = vst [vmem:[#allocation7_spill] sm:$0xff] %v6268_v52  ;;  %v6274_v54 = vld [vmem:[%s7740_s2 + $0xa0] ss:$16 sps:$4 sm:$0xff]  }
 0x3c0   : > { %1791 = vmatpush1.bf16.msra.mxu0 %v5832_v22  ;;  %1832 = vmatpush1.bf16.msra.mxu1 %v5838_v29  ;;  %8215 = vst [vmem:[#allocation28_spill] sm:$0xff] %v6274_v54 }
 0x3c1   : > { %1792 = vmatprep.subr.bf16.mxu0 %v5844_v34  ;;  %1833 = vmatprep.subr.bf16.mxu1 %v5850_v20 }
 0x3c2   : > { %1822 = vmatprep.mubr.bf16.mxu0 %v8104_v25  ;;  %1863 = vmatprep.mubr.bf16.mxu1 %v8104_v25 }
 0x3c4   : > { %1793 = vmatpush1.bf16.msra.mxu0 %v5858_v32  ;;  %1834 = vmatpush1.bf16.msra.mxu1 %v5864_v26 }
 0x3c5   : > { %1794 = vmatprep.subr.bf16.mxu0 %v5870_v21  ;;  %1835 = vmatprep.subr.bf16.mxu1 %v5876_v18 }
 0x3c8   : > { %1795 = vmatpush1.bf16.msra.mxu0 %v5882_v30  ;;  %1836 = vmatpush1.bf16.msra.mxu1 %v5888_v27 }
 0x3c9   : > { %1796 = vmatprep.subr.bf16.mxu0 %v5894_v31  ;;  %1837 = vmatprep.subr.bf16.mxu1 %v5900_v59 }
 0x3cc   : > { %1797 = vmatpush1.bf16.msra.mxu0 %v5906_v58  ;;  %1838 = vmatpush1.bf16.msra.mxu1 %v5912_v57 }
 0x3cd   : > { %1798 = vmatprep.subr.bf16.mxu0 %v5918_v19  ;;  %1839 = vmatprep.subr.bf16.mxu1 %v5924_v2 }
 0x3d0   : > { %1799 = vmatpush1.bf16.msra.mxu0 %v5930_v35  ;;  %1840 = vmatpush1.bf16.msra.mxu1 %v5936_v28 }
 0x3d1   : > { %1800 = vmatprep.subr.bf16.mxu0 %v8201_v39  ;;  %1841 = vmatprep.subr.bf16.mxu1 %v8202_v55 }
 0x3d4   : > { %1801 = vmatpush1.bf16.msra.mxu0 %v5954_v23  ;;  %1842 = vmatpush1.bf16.msra.mxu1 %v6103_v56 }
 0x3d5   : > { %1802 = vmatprep.subr.bf16.mxu0 %v5961_v24  ;;  %1843 = vmatprep.subr.bf16.mxu1 %v6110_v61 }
 0x3d8   : > { %1803 = vmatpush1.bf16.msra.mxu0 %v5968_v33  ;;  %1844 = vmatpush1.bf16.msra.mxu1 %v6117_v17 }
 0x3d9   : > { %1804 = vmatprep.subr.bf16.mxu0 %v5975_v60  ;;  %1845 = vmatprep.subr.bf16.mxu1 %v6124_v63 }
 0x3dc   : > { %1805 = vmatpush1.bf16.msra.mxu0 %v6130_v0  ;;  %1846 = vmatpush1.bf16.msra.mxu1 %v6136_v1 }
 0x3dd   : > { %1910 = vmatprep.subr.bf16.mxu0 %v6142_v3  ;;  %1951 = vmatprep.subr.bf16.mxu1 %v6148_v4 }
 0x3df   : > { %1823 = vmatmul.mubr.bf16.vlgmr.msra.gmra.mrb[24].mxu0 %v1789_v5  ;;  %1864 = vmatmul.mubr.bf16.vlgmr.msra.gmra.mrb[24].mxu1 %v1789_v5  ;;  %v6280_v5 = vld [vmem:[%s7740_s2 + $0xa8] ss:$16 sps:$4 sm:$0xff]  }
 0x3e0   : > { %1911 = vmatpush1.bf16.msra.mxu0 %v6154_v7  ;;  %1952 = vmatpush1.bf16.msra.mxu1 %v6160_v10  ;;  %8216 = vst [vmem:[#allocation29_spill] sm:$0xff] %v6280_v5 }
 0x3e1   : > { %1912 = vmatprep.subr.bf16.mxu0 %v6166_v11  ;;  %1953 = vmatprep.subr.bf16.mxu1 %v6172_v12 }
 0x3e4   : > { %1913 = vmatpush1.bf16.msra.mxu0 %v6178_v13  ;;  %1954 = vmatpush1.bf16.msra.mxu1 %v6184_v14 }
 0x3e5   : > { %1914 = vmatprep.subr.bf16.mxu0 %v6190_v15  ;;  %1955 = vmatprep.subr.bf16.mxu1 %v6196_v16 }
 0x3e8   : > { %1915 = vmatpush1.bf16.msra.mxu0 %v6202_v36  ;;  %1956 = vmatpush1.bf16.msra.mxu1 %v6208_v37 }
 0x3e9   : > { %1916 = vmatprep.subr.bf16.mxu0 %v6214_v38  ;;  %1957 = vmatprep.subr.bf16.mxu1 %v6220_v40 }
 0x3ec   : > { %1917 = vmatpush1.bf16.msra.mxu0 %v6226_v41  ;;  %1958 = vmatpush1.bf16.msra.mxu1 %v6232_v42 }
 0x3ed   : > { %1918 = vmatprep.subr.bf16.mxu0 %v6238_v45  ;;  %1959 = vmatprep.subr.bf16.mxu1 %v6244_v46 }
 0x3f0   : > { %1919 = vmatpush1.bf16.msra.mxu0 %v6250_v47  ;;  %1960 = vmatpush1.bf16.msra.mxu1 %v6256_v48 }
 0x3f1   : > { %1920 = vmatprep.subr.bf16.mxu0 %v6262_v51  ;;  %1961 = vmatprep.subr.bf16.mxu1 %v6268_v52  ;;  %v6292_v52 = vld [vmem:[%s7740_s2 + $0xcc] ss:$16 sps:$4 sm:$0xff]  }
 0x3f2   : > { %8218 = vst [vmem:[#allocation31_spill] sm:$0xff] %v6292_v52 }
 0x3f4   : > { %1921 = vmatpush1.bf16.msra.mxu0 %v6274_v54  ;;  %1962 = vmatpush1.bf16.msra.mxu1 %v6280_v5  ;;  %v6298_v54 = vld [vmem:[%s7740_s2 + $0xc0] ss:$16 sps:$4 sm:$0xff]   ;;  %v6304_v5 = vld [vmem:[%s7740_s2 + $0xc8] ss:$16 sps:$4 sm:$0xff]  }
 0x3f5   : > { %1922 = vmatprep.subr.bf16.mxu0 %v6286_v8  ;;  %1963 = vmatprep.subr.bf16.mxu1 %v6292_v52  ;;  %8219 = vst [vmem:[#allocation32_spill] sm:$0xff] %v6298_v54  ;;  %8220 = vst [vmem:[#allocation33_spill] sm:$0xff] %v6304_v5  ;;  %v6310_v8 = vld [vmem:[%s7740_s2 + $0xe4] ss:$16 sps:$4 sm:$0xff]   ;;  %v6316_v52 = vld [vmem:[%s7740_s2 + $0xec] ss:$16 sps:$4 sm:$0xff]  }
 0x3f6   : > { %8221 = vst [vmem:[#allocation34_spill] sm:$0xff] %v6310_v8  ;;  %8222 = vst [vmem:[#allocation35_spill] sm:$0xff] %v6316_v52 }
 0x3f8   : > { %1923 = vmatpush1.bf16.msra.mxu0 %v6298_v54  ;;  %1964 = vmatpush1.bf16.msra.mxu1 %v6304_v5  ;;  %v6322_v54 = vld [vmem:[%s7740_s2 + $0xe0] ss:$16 sps:$4 sm:$0xff]   ;;  %v6328_v5 = vld [vmem:[%s7740_s2 + $0xe8] ss:$16 sps:$4 sm:$0xff]  }
 0x3f9   : > { %1924 = vmatprep.subr.bf16.mxu0 %v6310_v8  ;;  %1965 = vmatprep.subr.bf16.mxu1 %v6316_v52  ;;  %8223 = vst [vmem:[#allocation36_spill] sm:$0xff] %v6322_v54  ;;  %8224 = vst [vmem:[#allocation37_spill] sm:$0xff] %v6328_v5  ;;  %v6334_v8 = vld [vmem:[%s7740_s2 + $0x104] ss:$16 sps:$4 sm:$0xff]   ;;  %v6340_v52 = vld [vmem:[%s7740_s2 + $0x10c] ss:$16 sps:$4 sm:$0xff]  }
 0x3fa   : > { %8225 = vst [vmem:[#allocation38_spill] sm:$0xff] %v6334_v8  ;;  %8226 = vst [vmem:[#allocation39_spill] sm:$0xff] %v6340_v52 }
 0x3fc   : > { %1925 = vmatpush1.bf16.msra.mxu0 %v6322_v54  ;;  %1966 = vmatpush1.bf16.msra.mxu1 %v6328_v5  ;;  %v6346_v54 = vld [vmem:[%s7740_s2 + $0x100] ss:$16 sps:$4 sm:$0xff]   ;;  %v6352_v5 = vld [vmem:[%s7740_s2 + $0x108] ss:$16 sps:$4 sm:$0xff]  }
 0x3fd   : > { %1926 = vmatprep.subr.bf16.mxu0 %v6334_v8  ;;  %1967 = vmatprep.subr.bf16.mxu1 %v6340_v52  ;;  %8227 = vst [vmem:[#allocation40_spill] sm:$0xff] %v6346_v54  ;;  %8228 = vst [vmem:[#allocation41_spill] sm:$0xff] %v6352_v5  ;;  %v6358_v8 = vld [vmem:[%s7740_s2 + $0x124] ss:$16 sps:$4 sm:$0xff]   ;;  %v6364_v52 = vld [vmem:[%s7740_s2 + $0x12c] ss:$16 sps:$4 sm:$0xff]  }
 0x3fe   : > { %8229 = vst [vmem:[#allocation42_spill] sm:$0xff] %v6358_v8  ;;  %8230 = vst [vmem:[#allocation43_spill] sm:$0xff] %v6364_v52 }
 0x400   : > { %1927 = vmatpush1.bf16.msra.mxu0 %v6346_v54  ;;  %1968 = vmatpush1.bf16.msra.mxu1 %v6352_v5  ;;  %v6370_v54 = vld [vmem:[%s7740_s2 + $0x120] ss:$16 sps:$4 sm:$0xff]   ;;  %v6376_v5 = vld [vmem:[%s7740_s2 + $0x128] ss:$16 sps:$4 sm:$0xff]  }
 0x401   : > { %1928 = vmatprep.subr.bf16.mxu0 %v6358_v8  ;;  %1969 = vmatprep.subr.bf16.mxu1 %v6364_v52  ;;  %8231 = vst [vmem:[#allocation44_spill] sm:$0xff] %v6370_v54  ;;  %8232 = vst [vmem:[#allocation45_spill] sm:$0xff] %v6376_v5  ;;  %v6382_v8 = vld [vmem:[%s7740_s2 + $0x144] ss:$16 sps:$4 sm:$0xff]   ;;  %v6388_v52 = vld [vmem:[%s7740_s2 + $0x14c] ss:$16 sps:$4 sm:$0xff]  }
 0x402   : > { %8233 = vst [vmem:[#allocation46_spill] sm:$0xff] %v6382_v8  ;;  %8234 = vst [vmem:[#allocation47_spill] sm:$0xff] %v6388_v52 }
 0x404   : > { %1929 = vmatpush1.bf16.msra.mxu0 %v6370_v54  ;;  %1970 = vmatpush1.bf16.msra.mxu1 %v6376_v5  ;;  %v6394_v54 = vld [vmem:[%s7740_s2 + $0x140] ss:$16 sps:$4 sm:$0xff]   ;;  %v6400_v5 = vld [vmem:[%s7740_s2 + $0x148] ss:$16 sps:$4 sm:$0xff]  }
 0x405   : > { %1930 = vmatprep.subr.bf16.mxu0 %v6382_v8  ;;  %1971 = vmatprep.subr.bf16.mxu1 %v6388_v52  ;;  %8235 = vst [vmem:[#allocation48_spill] sm:$0xff] %v6394_v54  ;;  %8236 = vst [vmem:[#allocation49_spill] sm:$0xff] %v6400_v5  ;;  %v6406_v8 = vld [vmem:[%s7740_s2 + $0x164] ss:$16 sps:$4 sm:$0xff]   ;;  %v6412_v52 = vld [vmem:[%s7740_s2 + $0x16c] ss:$16 sps:$4 sm:$0xff]  }
 0x406   : > { %8237 = vst [vmem:[#allocation50_spill] sm:$0xff] %v6406_v8  ;;  %8238 = vst [vmem:[#allocation51_spill] sm:$0xff] %v6412_v52 }
 0x408   : > { %1931 = vmatpush1.bf16.msra.mxu0 %v6394_v54  ;;  %1972 = vmatpush1.bf16.msra.mxu1 %v6400_v5  ;;  %v6418_v54 = vld [vmem:[%s7740_s2 + $0x160] ss:$16 sps:$4 sm:$0xff]   ;;  %v6424_v5 = vld [vmem:[%s7740_s2 + $0x168] ss:$16 sps:$4 sm:$0xff]  }
 0x409   : > { %1932 = vmatprep.subr.bf16.mxu0 %v6406_v8  ;;  %1973 = vmatprep.subr.bf16.mxu1 %v6412_v52  ;;  %8239 = vst [vmem:[#allocation52_spill] sm:$0xff] %v6418_v54  ;;  %8240 = vst [vmem:[#allocation53_spill] sm:$0xff] %v6424_v5  ;;  %v6430_v8 = vld [vmem:[%s7740_s2 + $0x184] ss:$16 sps:$4 sm:$0xff]   ;;  %v6436_v52 = vld [vmem:[%s7740_s2 + $0x18c] ss:$16 sps:$4 sm:$0xff]  }
 0x40a   : > { %8241 = vst [vmem:[#allocation54_spill] sm:$0xff] %v6430_v8  ;;  %8242 = vst [vmem:[#allocation55_spill] sm:$0xff] %v6436_v52 }
 0x40c   : > { %1933 = vmatpush1.bf16.msra.mxu0 %v6418_v54  ;;  %1974 = vmatpush1.bf16.msra.mxu1 %v6424_v5  ;;  %v6442_v54 = vld [vmem:[%s7740_s2 + $0x180] ss:$16 sps:$4 sm:$0xff]   ;;  %v6448_v5 = vld [vmem:[%s7740_s2 + $0x188] ss:$16 sps:$4 sm:$0xff]  }
 0x40d   : > { %1934 = vmatprep.subr.bf16.mxu0 %v6430_v8  ;;  %1975 = vmatprep.subr.bf16.mxu1 %v6436_v52  ;;  %8243 = vst [vmem:[#allocation56_spill] sm:$0xff] %v6442_v54  ;;  %8244 = vst [vmem:[#allocation57_spill] sm:$0xff] %v6448_v5  ;;  %v6454_v8 = vld [vmem:[%s7740_s2 + $0x1a4] ss:$16 sps:$4 sm:$0xff]   ;;  %v6460_v52 = vld [vmem:[%s7740_s2 + $0x1ac] ss:$16 sps:$4 sm:$0xff]  }
 0x40e   : > { %8245 = vst [vmem:[#allocation13_spill] sm:$0xff] %v6454_v8  ;;  %8246 = vst [vmem:[#allocation14_spill] sm:$0xff] %v6460_v52 }
 0x410   : > { %1935 = vmatpush1.bf16.msra.mxu0 %v6442_v54  ;;  %1976 = vmatpush1.bf16.msra.mxu1 %v6448_v5  ;;  %v6466_v54 = vld [vmem:[%s7740_s2 + $0x1a0] ss:$16 sps:$4 sm:$0xff]   ;;  %v6472_v5 = vld [vmem:[%s7740_s2 + $0x1a8] ss:$16 sps:$4 sm:$0xff]  }
 0x411   : > { %1936 = vmatprep.subr.bf16.mxu0 %v6454_v8  ;;  %1977 = vmatprep.subr.bf16.mxu1 %v6460_v52  ;;  %8247 = vst [vmem:[#allocation58_spill] sm:$0xff] %v6466_v54  ;;  %8248 = vst [vmem:[#allocation59_spill] sm:$0xff] %v6472_v5  ;;  %v6478_v8 = vld [vmem:[%s7740_s2 + $0x1c4] ss:$16 sps:$4 sm:$0xff]   ;;  %v6484_v52 = vld [vmem:[%s7740_s2 + $0x1cc] ss:$16 sps:$4 sm:$0xff]  }
 0x412   : > { %8249 = vst [vmem:[#allocation60_spill] sm:$0xff] %v6478_v8  ;;  %8250 = vst [vmem:[#allocation61_spill] sm:$0xff] %v6484_v52 }
 0x414   : > { %1937 = vmatpush1.bf16.msra.mxu0 %v6466_v54  ;;  %1978 = vmatpush1.bf16.msra.mxu1 %v6472_v5  ;;  %v6490_v54 = vld [vmem:[%s7740_s2 + $0x1c0] ss:$16 sps:$4 sm:$0xff]   ;;  %v6496_v5 = vld [vmem:[%s7740_s2 + $0x1c8] ss:$16 sps:$4 sm:$0xff]  }
 0x415   : > { %1938 = vmatprep.subr.bf16.mxu0 %v6478_v8  ;;  %1979 = vmatprep.subr.bf16.mxu1 %v6484_v52  ;;  %8251 = vst [vmem:[#allocation62_spill] sm:$0xff] %v6490_v54  ;;  %8252 = vst [vmem:[#allocation63_spill] sm:$0xff] %v6496_v5  ;;  %v6502_v8 = vld [vmem:[%s7740_s2 + $0x1e4] ss:$16 sps:$4 sm:$0xff]   ;;  %v6508_v52 = vld [vmem:[%s7740_s2 + $0x1ec] ss:$16 sps:$4 sm:$0xff]  }
 0x416   : > { %8253 = vst [vmem:[#allocation64_spill] sm:$0xff] %v6502_v8  ;;  %8254 = vst [vmem:[#allocation65_spill] sm:$0xff] %v6508_v52 }
 0x418   : > { %1939 = vmatpush1.bf16.msra.mxu0 %v6490_v54  ;;  %1980 = vmatpush1.bf16.msra.mxu1 %v6496_v5  ;;  %v6514_v54 = vld [vmem:[%s7740_s2 + $0x1e0] ss:$16 sps:$4 sm:$0xff]   ;;  %v6520_v5 = vld [vmem:[%s7740_s2 + $0x1e8] ss:$16 sps:$4 sm:$0xff]  }
 0x419   : > { %1940 = vmatprep.subr.bf16.mxu0 %v6502_v8  ;;  %1981 = vmatprep.subr.bf16.mxu1 %v6508_v52  ;;  %8255 = vst [vmem:[#allocation66_spill] sm:$0xff] %v6514_v54  ;;  %8256 = vst [vmem:[#allocation67_spill] sm:$0xff] %v6520_v5 }
 0x41c   : > { %1941 = vmatpush1.bf16.msra.mxu0 %v6514_v54  ;;  %1982 = vmatpush1.bf16.msra.mxu1 %v6520_v5 }
 0x41d   : > { %2025 = vmatprep.subr.bf16.mxu0 %v6048_v49  ;;  %2066 = vmatprep.subr.bf16.mxu1 %v6054_v50 }
 0x492   : > { %v1709_v8 = vpop.f32.mrb[20].mxu0  ;;  %v1750_v52 = vpop.f32.mrb[20].mxu1 }
 0x493   : > { %v1710_v51 = vadd.f32 %v1709_v8, %v8196_v53  ;;  %v1711_v48 = vpop.f32.mrb[21].mxu0  ;;  %v1752_v47 = vpop.f32.mrb[21].mxu1  ;;  %v1751_v50 = vadd.f32 %v1750_v52, %v8199_v9  ;;  %v3828_v9 = vld [vmem:[%s5692_s12 + $0x70] sm:$0xff] }
 0x494   : > { %v1712_v46 = vadd.f32 %v1711_v48, %v8197_v62  ;;  %v1713_v54 = vpop.f32.mrb[22].mxu0  ;;  %v1754_v45 = vpop.f32.mrb[22].mxu1  ;;  %v1753_v49 = vadd.f32 %v1752_v47, %v8198_v6  ;;  %v3826_v47 = vld [vmem:[%s5692_s12 + $0x60] sm:$0xff] }
 0x495   : > { %v3823_v42 = vmul.f32 -1.442695, %v1710_v51  ;;  %v1714_v41 = vpop.f32.mrb[23].mxu0  ;;  %v1755_v40 = vpop.f32.mrb[23].mxu1  ;;  %v3827_v51 = vld [vmem:[%s5692_s12 + $0x68] sm:$0xff] }
 0x496   : > { %v3824_v38 = vmul.f32 -1.442695, %v1712_v46  ;;  %v3825_v5 = vmul.f32 -1.442695, %v1753_v49 }
 0x497   : > { %4504 = vpow2.f32 %v3823_v42 }
 0x498   : > { %4506 = vpow2.f32 %v3824_v38 }
 0x499   : > { %4508 = vpow2.f32 %v3825_v5 }
 0x49a   : > { %4510 = vtanh.f32 %v1751_v50 }
 0x4a1   : > { %v4505_v37 = vpop.eup %4504 }
 0x4a2   : > { %v4507_v8 = vpop.eup %4506  ;;  %v1760_v53 = vadd.f32 1.0, %v4505_v37 }
 0x4a3   : > { %v1766_v48 = vadd.f32 1.0, %v4507_v8  ;;  %v4509_v41 = vpop.eup %4508 }
 0x4a4   : > { %4512 = vrcp.f32 %v1760_v53  ;;  %v4511_v40 = vpop.eup %4510  ;;  %v1773_v46 = vadd.f32 1.0, %v4509_v41 }
 0x4a5   : > { %4514 = vrcp.f32 %v1766_v48 }
 0x4a6   : > { %4516 = vrcp.f32 %v1773_v46 }
 0x4ae   : > { %v4513_v45 = vpop.eup %4512 }
 0x4af   : > { %v4515_v42 = vpop.eup %4514  ;;  %v1777_v38 = vmul.f32 %v4513_v45, %v4511_v40 }
 0x4b0   : > { %v1776_v49 = vmul.f32 %v4515_v42, %v6064_v44  ;;  %v4517_v6 = vpop.eup %4516 }
 0x4b2   : > { %v6532_v52 = vadd.f32 %v1777_v38, %v1776_v49  ;;  %v1824_v54 = vpop.f32.mrb[24].mxu0  ;;  %v1865_v37 = vpop.f32.mrb[24].mxu1  ;;  %v3829_v38 = vld [vmem:[%s5692_s12 + $0x78] sm:$0xff] }
 0x4b3   : > { %v1872_v50 = vadd.f32 %v3826_v47, %v1824_v54  ;;  %v1826_v53 = vpop.f32.mrb[25].mxu0  ;;  %v1867_v5 = vpop.f32.mrb[25].mxu1  ;;  %v1874_v54 = vadd.f32 %v3828_v9, %v1865_v37 }
 0x4b4   : > { %4518 = vtanh.f32 %v6532_v52  ;;  %v1873_v8 = vadd.f32 %v3827_v51, %v1826_v53  ;;  %v1828_v48 = vpop.f32.mrb[26].mxu0  ;;  %v1869_v40 = vpop.f32.mrb[26].mxu1  ;;  %v1875_v49 = vadd.f32 %v3829_v38, %v1867_v5 }
 0x4b5   : > { %v3830_v41 = vmul.f32 -1.442695, %v1872_v50  ;;  %v1829_v45 = vpop.f32.mrb[27].mxu0  ;;  %v1870_v44 = vpop.f32.mrb[27].mxu1 }
 0x4b6   : > { %v3831_v42 = vmul.f32 -1.442695, %v1873_v8  ;;  %v3832_v62 = vmul.f32 -1.442695, %v1875_v49 }
 0x4b7   : > { %4520 = vpow2.f32 %v3830_v41 }
 0x4b8   : > { %4522 = vpow2.f32 %v3831_v42 }
 0x4b9   : > { %4524 = vpow2.f32 %v3832_v62 }
 0x4ba   : > { %4526 = vtanh.f32 %v1874_v54  ;;  %v8282_v54 = vld [vmem:[#allocation40_spill] sm:$0xff] }
 0x4be   : > { %v4519_v46 = vpop.eup %4518 }
 0x4bf   : > { %v6537_v47 = vmul.f32 %v4519_v46, %v4517_v6 }
 0x4c1   : > { %8257 = vst [vmem:[#allocation68_spill] sm:$0xff] %v6537_v47  ;;  %v4521_v36 = vpop.eup %4520  ;;  %v1781_v51 = vpack.c.bf16 %v6537_v47, %v6537_v47  ;;  %v8302_v47 = vld [vmem:[#allocation58_spill] sm:$0xff] }
 0x4c2   : > { %v4523_v53 = vpop.eup %4522  ;;  %v1879_v50 = vadd.f32 1.0, %v4521_v36 }
 0x4c3   : > { %1782 = vst [vmem:[#allocation3 + $0x4] sm:$0xf] %v1781_v51  ;;  %v1885_v8 = vadd.f32 1.0, %v4523_v53  ;;  %v4525_v5 = vpop.eup %4524  ;;  %v8283_v51 = vld [vmem:[#allocation41_spill] sm:$0xff]  ;;  %v8284_v53 = vld [vmem:[#allocation42_spill] sm:$0xff] }
 0x4c4   : > { %4528 = vrcp.f32 %v1879_v50  ;;  %v4527_v48 = vpop.eup %4526  ;;  %v1892_v6 = vadd.f32 1.0, %v4525_v5  ;;  %v8285_v50 = vld [vmem:[#allocation43_spill] sm:$0xff]  ;;  %v8287_v5 = vld [vmem:[#allocation45_spill] sm:$0xff] }
 0x4c5   : > { %4530 = vrcp.f32 %v1885_v8  ;;  %v8286_v8 = vld [vmem:[#allocation44_spill] sm:$0xff] }
 0x4c6   : > { %4532 = vrcp.f32 %v1892_v6  ;;  %v8292_v6 = vld [vmem:[#allocation50_spill] sm:$0xff] }
 0x4ce   : > { %v4529_v40 = vpop.eup %4528 }
 0x4cf   : > { %v4531_v41 = vpop.eup %4530  ;;  %v1896_v45 = vmul.f32 %v4529_v40, %v4527_v48  ;;  %v8288_v48 = vld [vmem:[#allocation46_spill] sm:$0xff]  ;;  %v8289_v40 = vld [vmem:[#allocation47_spill] sm:$0xff] }
 0x4d0   : > { %v1895_v9 = vmul.f32 %v4531_v41, %v6074_v43  ;;  %v4533_v36 = vpop.eup %4532  ;;  %v8279_v43 = vld [vmem:[#allocation37_spill] sm:$0xff]  ;;  %v8290_v41 = vld [vmem:[#allocation48_spill] sm:$0xff] }
 0x4d2   : > { %v6542_v37 = vadd.f32 %v1896_v45, %v1895_v9  ;;  %v8291_v45 = vld [vmem:[#allocation49_spill] sm:$0xff]  ;;  %v8293_v9 = vld [vmem:[#allocation51_spill] sm:$0xff] }
 0x4d4   : > { %4534 = vtanh.f32 %v6542_v37 }
 0x4de   : > { %v4535_v62 = vpop.eup %4534 }
 0x4df   : > { %v1899_v44 = vmul.f32 %v4535_v62, %v4533_v36  ;;  %v8294_v36 = vld [vmem:[#allocation52_spill] sm:$0xff]  ;;  %v8295_v62 = vld [vmem:[#allocation53_spill] sm:$0xff] }
 0x4e1   : > { %v1900_v42 = vpack.c.bf16 %v1899_v44, %v1899_v44  ;;  %v8296_v44 = vld [vmem:[#allocation54_spill] sm:$0xff] }
 0x4e3   : > { %1901 = vst [vmem:[#allocation3] sm:$0xf] %v1900_v42  ;;  %v8297_v42 = vld [vmem:[#allocation55_spill] sm:$0xff] }
 0x4ea   : > { %v1902_v38 = vld [vmem:[#allocation3] sm:$0xff] }
 0x4eb   : > { %v3834_v49 = vcombine.high %v1902_v38, %v1902_v38  ;;  %v3833_v46 = vcombine.low %v1902_v38, %v1902_v38  ;;  %v8298_v38 = vld [vmem:[#allocation56_spill] sm:$0xff] }
 0x4ed   : > { %1942 = vmatprep.mubr.bf16.mxu0 %v3834_v49  ;;  %1983 = vmatprep.mubr.bf16.mxu1 %v3834_v49  ;;  %v8299_v49 = vld [vmem:[#allocation57_spill] sm:$0xff] }
 0x4ee   : > { %1943 = vmatmul.mubr.bf16.vlgmr.msra.gmra.mrb[28].mxu0 %v3833_v46  ;;  %1984 = vmatmul.mubr.bf16.vlgmr.msra.gmra.mrb[28].mxu1 %v3833_v46  ;;  %v8300_v46 = vld [vmem:[#allocation13_spill] sm:$0xff] }
 0x4ef   : > { %2026 = vmatpush1.bf16.msra.mxu0 %v5832_v22  ;;  %2067 = vmatpush1.bf16.msra.mxu1 %v5838_v29  ;;  %v8258_v22 = vld [vmem:[#allocation18_spill] sm:$0xff]  ;;  %v8259_v29 = vld [vmem:[#allocation19_spill] sm:$0xff] }
 0x4f0   : > { %2027 = vmatprep.subr.bf16.mxu0 %v5844_v34  ;;  %2068 = vmatprep.subr.bf16.mxu1 %v5850_v20  ;;  %v8260_v34 = vld [vmem:[#allocation20_spill] sm:$0xff]  ;;  %v8261_v20 = vld [vmem:[#allocation21_spill] sm:$0xff] }
 0x4f1   : > { %2057 = vmatprep.mubr.bf16.mxu0 %v8104_v25  ;;  %2098 = vmatprep.mubr.bf16.mxu1 %v8104_v25 }
 0x4f3   : > { %2028 = vmatpush1.bf16.msra.mxu0 %v5858_v32  ;;  %2069 = vmatpush1.bf16.msra.mxu1 %v5864_v26  ;;  %v8262_v32 = vld [vmem:[#allocation22_spill] sm:$0xff]  ;;  %v8263_v26 = vld [vmem:[#allocation23_spill] sm:$0xff] }
 0x4f4   : > { %2029 = vmatprep.subr.bf16.mxu0 %v5870_v21  ;;  %2070 = vmatprep.subr.bf16.mxu1 %v5876_v18  ;;  %v8264_v21 = vld [vmem:[#allocation24_spill] sm:$0xff]  ;;  %v8265_v18 = vld [vmem:[#allocation25_spill] sm:$0xff] }
 0x4f7   : > { %2030 = vmatpush1.bf16.msra.mxu0 %v5882_v30  ;;  %2071 = vmatpush1.bf16.msra.mxu1 %v5888_v27  ;;  %v8266_v30 = vld [vmem:[#allocation26_spill] sm:$0xff]  ;;  %v8267_v27 = vld [vmem:[#allocation27_spill] sm:$0xff] }
 0x4f8   : > { %2031 = vmatprep.subr.bf16.mxu0 %v5894_v31  ;;  %2072 = vmatprep.subr.bf16.mxu1 %v5900_v59  ;;  %v8268_v31 = vld [vmem:[#allocation6_spill] sm:$0xff]  ;;  %v8269_v59 = vld [vmem:[#allocation7_spill] sm:$0xff] }
 0x4fb   : > { %2032 = vmatpush1.bf16.msra.mxu0 %v5906_v58  ;;  %2073 = vmatpush1.bf16.msra.mxu1 %v5912_v57  ;;  %v8270_v58 = vld [vmem:[#allocation28_spill] sm:$0xff]  ;;  %v8271_v57 = vld [vmem:[#allocation29_spill] sm:$0xff] }
 0x4fc   : > { %2033 = vmatprep.subr.bf16.mxu0 %v5918_v19  ;;  %2074 = vmatprep.subr.bf16.mxu1 %v5924_v2  ;;  %v8272_v19 = vld [vmem:[#allocation30_spill] sm:$0xff]  ;;  %v8273_v2 = vld [vmem:[#allocation31_spill] sm:$0xff] }
 0x4ff   : > { %2034 = vmatpush1.bf16.msra.mxu0 %v5930_v35  ;;  %2075 = vmatpush1.bf16.msra.mxu1 %v5936_v28  ;;  %v8274_v35 = vld [vmem:[#allocation32_spill] sm:$0xff]  ;;  %v8275_v28 = vld [vmem:[#allocation33_spill] sm:$0xff] }
 0x500   : > { %2035 = vmatprep.subr.bf16.mxu0 %v8201_v39  ;;  %2076 = vmatprep.subr.bf16.mxu1 %v8202_v55  ;;  %v8280_v39 = vld [vmem:[#allocation38_spill] sm:$0xff]  ;;  %v8281_v55 = vld [vmem:[#allocation39_spill] sm:$0xff] }
 0x503   : > { %2036 = vmatpush1.bf16.msra.mxu0 %v5954_v23  ;;  %2077 = vmatpush1.bf16.msra.mxu1 %v6103_v56  ;;  %v2024_v23 = vld [vmem:[#allocation3] sm:$0xf] }
 0x504   : > { %2037 = vmatprep.subr.bf16.mxu0 %v5961_v24  ;;  %2078 = vmatprep.subr.bf16.mxu1 %v6110_v61  ;;  %v8276_v24 = vld [vmem:[#allocation34_spill] sm:$0xff] }
 0x507   : > { %2038 = vmatpush1.bf16.msra.mxu0 %v5968_v33  ;;  %2079 = vmatpush1.bf16.msra.mxu1 %v6117_v17  ;;  %v8277_v33 = vld [vmem:[#allocation35_spill] sm:$0xff] }
 0x508   : > { %2039 = vmatprep.subr.bf16.mxu0 %v5975_v60  ;;  %2080 = vmatprep.subr.bf16.mxu1 %v6124_v63  ;;  %v8278_v60 = vld [vmem:[#allocation36_spill] sm:$0xff] }
 0x50b   : > { %2040 = vmatpush1.bf16.msra.mxu0 %v6130_v0  ;;  %2081 = vmatpush1.bf16.msra.mxu1 %v6136_v1 }
 0x50c   : > { %2145 = vmatprep.subr.bf16.mxu0 %v6142_v3  ;;  %2186 = vmatprep.subr.bf16.mxu1 %v6148_v4 }
 0x50e   : > { %2058 = vmatmul.mubr.bf16.vlgmr.msra.gmra.mrb[32].mxu0 %v2024_v23  ;;  %2099 = vmatmul.mubr.bf16.vlgmr.msra.gmra.mrb[32].mxu1 %v2024_v23  ;;  %v8301_v23 = vld [vmem:[#allocation14_spill] sm:$0xff] }
 0x50f   : > { %2146 = vmatpush1.bf16.msra.mxu0 %v6154_v7  ;;  %2187 = vmatpush1.bf16.msra.mxu1 %v6160_v10 }
 0x510   : > { %2147 = vmatprep.subr.bf16.mxu0 %v6166_v11  ;;  %2188 = vmatprep.subr.bf16.mxu1 %v6172_v12 }
 0x513   : > { %2148 = vmatpush1.bf16.msra.mxu0 %v6178_v13  ;;  %2189 = vmatpush1.bf16.msra.mxu1 %v6184_v14 }
 0x514   : > { %2149 = vmatprep.subr.bf16.mxu0 %v6190_v15  ;;  %2190 = vmatprep.subr.bf16.mxu1 %v6196_v16 }
 0x517   : > { %2150 = vmatpush1.bf16.msra.mxu0 %v8258_v22  ;;  %2191 = vmatpush1.bf16.msra.mxu1 %v8259_v29 }
 0x518   : > { %2151 = vmatprep.subr.bf16.mxu0 %v8260_v34  ;;  %2192 = vmatprep.subr.bf16.mxu1 %v8261_v20 }
 0x51b   : > { %2152 = vmatpush1.bf16.msra.mxu0 %v8262_v32  ;;  %2193 = vmatpush1.bf16.msra.mxu1 %v8263_v26 }
 0x51c   : > { %2153 = vmatprep.subr.bf16.mxu0 %v8264_v21  ;;  %2194 = vmatprep.subr.bf16.mxu1 %v8265_v18 }
 0x51f   : > { %2154 = vmatpush1.bf16.msra.mxu0 %v8266_v30  ;;  %2195 = vmatpush1.bf16.msra.mxu1 %v8267_v27 }
 0x520   : > { %2155 = vmatprep.subr.bf16.mxu0 %v8268_v31  ;;  %2196 = vmatprep.subr.bf16.mxu1 %v8269_v59 }
 0x523   : > { %2156 = vmatpush1.bf16.msra.mxu0 %v8270_v58  ;;  %2197 = vmatpush1.bf16.msra.mxu1 %v8271_v57 }
 0x524   : > { %2157 = vmatprep.subr.bf16.mxu0 %v8272_v19  ;;  %2198 = vmatprep.subr.bf16.mxu1 %v8273_v2 }
 0x527   : > { %2158 = vmatpush1.bf16.msra.mxu0 %v8274_v35  ;;  %2199 = vmatpush1.bf16.msra.mxu1 %v8275_v28 }
 0x528   : > { %2159 = vmatprep.subr.bf16.mxu0 %v8276_v24  ;;  %2200 = vmatprep.subr.bf16.mxu1 %v8277_v33 }
 0x52b   : > { %2160 = vmatpush1.bf16.msra.mxu0 %v8278_v60  ;;  %2201 = vmatpush1.bf16.msra.mxu1 %v8279_v43 }
 0x52c   : > { %2161 = vmatprep.subr.bf16.mxu0 %v8280_v39  ;;  %2202 = vmatprep.subr.bf16.mxu1 %v8281_v55 }
 0x52f   : > { %2162 = vmatpush1.bf16.msra.mxu0 %v8282_v54  ;;  %2203 = vmatpush1.bf16.msra.mxu1 %v8283_v51 }
 0x530   : > { %2163 = vmatprep.subr.bf16.mxu0 %v8284_v53  ;;  %2204 = vmatprep.subr.bf16.mxu1 %v8285_v50 }
 0x533   : > { %2164 = vmatpush1.bf16.msra.mxu0 %v8286_v8  ;;  %2205 = vmatpush1.bf16.msra.mxu1 %v8287_v5 }
 0x534   : > { %2165 = vmatprep.subr.bf16.mxu0 %v8288_v48  ;;  %2206 = vmatprep.subr.bf16.mxu1 %v8289_v40  ;;  %v8315_v40 = vld [vmem:[#allocation9_spill] sm:$0xff] }
 0x537   : > { %2166 = vmatpush1.bf16.msra.mxu0 %v8290_v41  ;;  %2207 = vmatpush1.bf16.msra.mxu1 %v8291_v45  ;;  %v8314_v45 = vld [vmem:[#allocation8_spill] sm:$0xff] }
 0x538   : > { %2167 = vmatprep.subr.bf16.mxu0 %v8292_v6  ;;  %2208 = vmatprep.subr.bf16.mxu1 %v8293_v9  ;;  %v8303_v6 = vld [vmem:[#allocation59_spill] sm:$0xff]  ;;  %v8304_v9 = vld [vmem:[#allocation60_spill] sm:$0xff] }
 0x53b   : > { %2168 = vmatpush1.bf16.msra.mxu0 %v8294_v36  ;;  %2209 = vmatpush1.bf16.msra.mxu1 %v8295_v62  ;;  %v8305_v36 = vld [vmem:[#allocation61_spill] sm:$0xff]  ;;  %v8306_v62 = vld [vmem:[#allocation62_spill] sm:$0xff] }
 0x53c   : > { %2169 = vmatprep.subr.bf16.mxu0 %v8296_v44  ;;  %2210 = vmatprep.subr.bf16.mxu1 %v8297_v42  ;;  %v8307_v44 = vld [vmem:[#allocation63_spill] sm:$0xff]  ;;  %v8308_v42 = vld [vmem:[#allocation64_spill] sm:$0xff] }
 0x53f   : > { %2170 = vmatpush1.bf16.msra.mxu0 %v8298_v38  ;;  %2211 = vmatpush1.bf16.msra.mxu1 %v8299_v49  ;;  %v8309_v38 = vld [vmem:[#allocation65_spill] sm:$0xff]  ;;  %v8310_v49 = vld [vmem:[#allocation66_spill] sm:$0xff] }
 0x540   : > { %2171 = vmatprep.subr.bf16.mxu0 %v8300_v46  ;;  %2212 = vmatprep.subr.bf16.mxu1 %v8301_v23  ;;  %v8311_v46 = vld [vmem:[#allocation67_spill] sm:$0xff] }
 0x541   : > { %v8312_v23 = vld [vmem:[#allocation15_spill] sm:$0xff] }
 0x543   : > { %2172 = vmatpush1.bf16.msra.mxu0 %v8302_v47  ;;  %2213 = vmatpush1.bf16.msra.mxu1 %v8303_v6  ;;  %v8313_v47 = vld [vmem:[#allocation16_spill] sm:$0xff] }
 0x544   : > { %2173 = vmatprep.subr.bf16.mxu0 %v8304_v9  ;;  %2214 = vmatprep.subr.bf16.mxu1 %v8305_v36 }
 0x547   : > { %2174 = vmatpush1.bf16.msra.mxu0 %v8306_v62  ;;  %2215 = vmatpush1.bf16.msra.mxu1 %v8307_v44 }
 0x548   : > { %2175 = vmatprep.subr.bf16.mxu0 %v8308_v42  ;;  %2216 = vmatprep.subr.bf16.mxu1 %v8309_v38 }
 0x54b   : > { %2176 = vmatpush1.bf16.msra.mxu0 %v8310_v49  ;;  %2217 = vmatpush1.bf16.msra.mxu1 %v8311_v46  ;;  %v8316_v46 = vld [vmem:[#allocation10_spill] sm:$0xff] }
 0x54c   : > { %2260 = vmatprep.subr.bf16.mxu0 %v8312_v23  ;;  %2301 = vmatprep.subr.bf16.mxu1 %v8313_v47  ;;  %v8317_v47 = vld [vmem:[#allocation11_spill] sm:$0xff] }
 0x5c1   : > { %v1944_v6 = vpop.f32.mrb[28].mxu0  ;;  %v1985_v9 = vpop.f32.mrb[28].mxu1 }
 0x5c2   : > { %v1945_v36 = vadd.f32 %v1944_v6, %v8314_v45  ;;  %v1946_v41 = vpop.f32.mrb[29].mxu0  ;;  %v1987_v62 = vpop.f32.mrb[29].mxu1  ;;  %v1986_v53 = vadd.f32 %v1985_v9, %v8317_v47  ;;  %v3839_v9 = vld [vmem:[%s5692_s12 + $0x88] sm:$0xff]  ;;  %v3840_v47 = vld [vmem:[%s5692_s12 + $0x90] sm:$0xff] }
 0x5c3   : > { %v1947_v44 = vadd.f32 %v1946_v41, %v8315_v40  ;;  %v1948_v48 = vpop.f32.mrb[30].mxu0  ;;  %v1989_v42 = vpop.f32.mrb[30].mxu1  ;;  %v1988_v23 = vadd.f32 %v1987_v62, %v8316_v46 }
 0x5c4   : > { %v3835_v5 = vmul.f32 -1.442695, %v1945_v36  ;;  %v1949_v38 = vpop.f32.mrb[31].mxu0  ;;  %v1990_v8 = vpop.f32.mrb[31].mxu1 }
 0x5c5   : > { %v3836_v49 = vmul.f32 -1.442695, %v1947_v44  ;;  %v3837_v50 = vmul.f32 -1.442695, %v1988_v23  ;;  %v3838_v38 = vld [vmem:[%s5692_s12 + $0x80] sm:$0xff] }
 0x5c6   : > { %4536 = vpow2.f32 %v3835_v5 }
 0x5c7   : > { %4538 = vpow2.f32 %v3836_v49 }
 0x5c8   : > { %4540 = vpow2.f32 %v3837_v50 }
 0x5c9   : > { %4542 = vtanh.f32 %v1986_v53 }
 0x5d0   : > { %v4537_v51 = vpop.eup %4536 }
 0x5d1   : > { %v4539_v6 = vpop.eup %4538  ;;  %v1995_v45 = vadd.f32 1.0, %v4537_v51 }
 0x5d2   : > { %v2001_v48 = vadd.f32 1.0, %v4539_v6  ;;  %v4541_v41 = vpop.eup %4540 }
 0x5d3   : > { %4544 = vrcp.f32 %v1995_v45  ;;  %v4543_v8 = vpop.eup %4542  ;;  %v2008_v42 = vadd.f32 1.0, %v4541_v41 }
 0x5d4   : > { %4546 = vrcp.f32 %v2001_v48 }
 0x5d5   : > { %4548 = vrcp.f32 %v2008_v42 }
 0x5dd   : > { %v4545_v36 = vpop.eup %4544 }
 0x5de   : > { %v4547_v5 = vpop.eup %4546  ;;  %v2012_v44 = vmul.f32 %v4545_v36, %v4543_v8 }
 0x5df   : > { %v2011_v62 = vmul.f32 %v4547_v5, %v6532_v52  ;;  %v4549_v46 = vpop.eup %4548 }
 0x5e1   : > { %v6650_v49 = vadd.f32 %v2012_v44, %v2011_v62  ;;  %v2059_v23 = vpop.f32.mrb[32].mxu0  ;;  %v2100_v51 = vpop.f32.mrb[32].mxu1  ;;  %v3841_v44 = vld [vmem:[%s5692_s12 + $0x98] sm:$0xff] }
 0x5e2   : > { %v2107_v53 = vadd.f32 %v3838_v38, %v2059_v23  ;;  %v2061_v50 = vpop.f32.mrb[33].mxu0  ;;  %v2102_v45 = vpop.f32.mrb[33].mxu1  ;;  %v2109_v23 = vadd.f32 %v3840_v47, %v2100_v51 }
 0x5e3   : > { %4550 = vtanh.f32 %v6650_v49  ;;  %v2108_v6 = vadd.f32 %v3839_v9, %v2061_v50  ;;  %v2063_v48 = vpop.f32.mrb[34].mxu0  ;;  %v2104_v8 = vpop.f32.mrb[34].mxu1  ;;  %v2110_v62 = vadd.f32 %v3841_v44, %v2102_v45 }
 0x5e4   : > { %v3842_v41 = vmul.f32 -1.442695, %v2107_v53  ;;  %v2064_v36 = vpop.f32.mrb[35].mxu0  ;;  %v2105_v52 = vpop.f32.mrb[35].mxu1 }
 0x5e5   : > { %v3843_v5 = vmul.f32 -1.442695, %v2108_v6  ;;  %v3844_v40 = vmul.f32 -1.442695, %v2110_v62 }
 0x5e6   : > { %4552 = vpow2.f32 %v3842_v41 }
 0x5e7   : > { %4554 = vpow2.f32 %v3843_v5 }
 0x5e8   : > { %4556 = vpow2.f32 %v3844_v40 }
 0x5e9   : > { %4558 = vtanh.f32 %v2109_v23  ;;  %v6672_v23 = vld [vmem:[%s7739_s1 + $0x8] ss:$16 sps:$4 sm:$0xff]  }
 0x5ed   : > { %v4551_v42 = vpop.eup %4550 }
 0x5ee   : > { %v6655_v38 = vmul.f32 %v4551_v42, %v4549_v46 }
 0x5f0   : > { %8318 = vst [vmem:[#allocation18_spill] sm:$0xff] %v6655_v38  ;;  %v4553_v54 = vpop.eup %4552  ;;  %v2016_v9 = vpack.c.bf16 %v6655_v38, %v6655_v38  ;;  %v6788_v38 = vld [vmem:[%s7739_s1 + $0xa0] ss:$16 sps:$4 sm:$0xff]  }
 0x5f1   : > { %v4555_v50 = vpop.eup %4554  ;;  %v2114_v53 = vadd.f32 1.0, %v4553_v54 }
 0x5f2   : > { %2017 = vst [vmem:[#allocation3 + $0x4] sm:$0xf] %v2016_v9  ;;  %v2120_v6 = vadd.f32 1.0, %v4555_v50  ;;  %v4557_v45 = vpop.eup %4556  ;;  %v6678_v9 = vld [vmem:[%s7739_s1 + $0x24] ss:$16 sps:$4 sm:$0xff]  }
 0x5f3   : > { %4560 = vrcp.f32 %v2114_v53  ;;  %v4559_v48 = vpop.eup %4558  ;;  %v2127_v46 = vadd.f32 1.0, %v4557_v45  ;;  %v6684_v50 = vld [vmem:[%s7739_s1 + $0x2c] ss:$16 sps:$4 sm:$0xff]   ;;  %v6692_v53 = vld [vmem:[%s7739_s1 + $0x20] ss:$16 sps:$4 sm:$0xff]  }
 0x5f4   : > { %4562 = vrcp.f32 %v2120_v6  ;;  %v6698_v6 = vld [vmem:[%s7739_s1 + $0x28] ss:$16 sps:$4 sm:$0xff]   ;;  %v6704_v45 = vld [vmem:[%s7739_s1 + $0x44] ss:$16 sps:$4 sm:$0xff]  }
 0x5f5   : > { %4564 = vrcp.f32 %v2127_v46  ;;  %v6734_v46 = vld [vmem:[%s7739_s1 + $0x6c] ss:$16 sps:$4 sm:$0xff]  }
 0x5fd   : > { %v4561_v8 = vpop.eup %4560 }
 0x5fe   : > { %v4563_v41 = vpop.eup %4562  ;;  %v2131_v36 = vmul.f32 %v4561_v8, %v4559_v48  ;;  %v6710_v48 = vld [vmem:[%s7739_s1 + $0x4c] ss:$16 sps:$4 sm:$0xff]   ;;  %v6716_v8 = vld [vmem:[%s7739_s1 + $0x40] ss:$16 sps:$4 sm:$0xff]  }
 0x5ff   : > { %v2130_v47 = vmul.f32 %v4563_v41, %v6542_v37  ;;  %v4565_v54 = vpop.eup %4564  ;;  %v6666_v37 = vld [vmem:[%s7739_s1] ss:$16 sps:$4 sm:$0xff]   ;;  %v6722_v41 = vld [vmem:[%s7739_s1 + $0x48] ss:$16 sps:$4 sm:$0xff]  }
 0x601   : > { %v6660_v51 = vadd.f32 %v2131_v36, %v2130_v47  ;;  %v6728_v36 = vld [vmem:[%s7739_s1 + $0x64] ss:$16 sps:$4 sm:$0xff]   ;;  %v6740_v47 = vld [vmem:[%s7739_s1 + $0x60] ss:$16 sps:$4 sm:$0xff]  }
 0x603   : > { %4566 = vtanh.f32 %v6660_v51 }
 0x60d   : > { %v4567_v40 = vpop.eup %4566 }
 0x60e   : > { %v2134_v52 = vmul.f32 %v4567_v40, %v4565_v54  ;;  %v6746_v54 = vld [vmem:[%s7739_s1 + $0x68] ss:$16 sps:$4 sm:$0xff]   ;;  %v6752_v40 = vld [vmem:[%s7739_s1 + $0x84] ss:$16 sps:$4 sm:$0xff]  }
 0x610   : > { %v2135_v5 = vpack.c.bf16 %v2134_v52, %v2134_v52  ;;  %v6758_v52 = vld [vmem:[%s7739_s1 + $0x8c] ss:$16 sps:$4 sm:$0xff]  }
 0x612   : > { %2136 = vst [vmem:[#allocation3] sm:$0xf] %v2135_v5  ;;  %v6764_v5 = vld [vmem:[%s7739_s1 + $0x80] ss:$16 sps:$4 sm:$0xff]  }
 0x619   : > { %v2137_v44 = vld [vmem:[#allocation3] sm:$0xff] }
 0x61a   : > { %v3846_v62 = vcombine.high %v2137_v44, %v2137_v44  ;;  %v3845_v42 = vcombine.low %v2137_v44, %v2137_v44  ;;  %v6770_v44 = vld [vmem:[%s7739_s1 + $0x88] ss:$16 sps:$4 sm:$0xff]  }
 0x61c   : > { %2177 = vmatprep.mubr.bf16.mxu0 %v3846_v62  ;;  %2218 = vmatprep.mubr.bf16.mxu1 %v3846_v62  ;;  %v6776_v62 = vld [vmem:[%s7739_s1 + $0xa4] ss:$16 sps:$4 sm:$0xff]  }
 0x61d   : > { %2178 = vmatmul.mubr.bf16.vlgmr.msra.gmra.mrb[36].mxu0 %v3845_v42  ;;  %2219 = vmatmul.mubr.bf16.vlgmr.msra.gmra.mrb[36].mxu1 %v3845_v42  ;;  %8319 = vst [vmem:[#allocation19_spill] sm:$0xff] %v6776_v62  ;;  %v6782_v42 = vld [vmem:[%s7739_s1 + $0xac] ss:$16 sps:$4 sm:$0xff]  }
 0x61e   : > { %2261 = vmatpush1.bf16.msra.mxu0 %v6666_v37  ;;  %2302 = vmatpush1.bf16.msra.mxu1 %v6672_v23  ;;  %8320 = vst [vmem:[#allocation20_spill] sm:$0xff] %v6782_v42 }
 0x61f   : > { %2262 = vmatprep.subr.bf16.mxu0 %v6678_v9  ;;  %2303 = vmatprep.subr.bf16.mxu1 %v6684_v50 }
 0x620   : > { %2292 = vmatprep.mubr.bf16.mxu0 %v8104_v25  ;;  %2333 = vmatprep.mubr.bf16.mxu1 %v8104_v25 }
 0x622   : > { %2263 = vmatpush1.bf16.msra.mxu0 %v6692_v53  ;;  %2304 = vmatpush1.bf16.msra.mxu1 %v6698_v6 }
 0x623   : > { %2264 = vmatprep.subr.bf16.mxu0 %v6704_v45  ;;  %2305 = vmatprep.subr.bf16.mxu1 %v6710_v48 }
 0x626   : > { %2265 = vmatpush1.bf16.msra.mxu0 %v6716_v8  ;;  %2306 = vmatpush1.bf16.msra.mxu1 %v6722_v41 }
 0x627   : > { %2266 = vmatprep.subr.bf16.mxu0 %v6728_v36  ;;  %2307 = vmatprep.subr.bf16.mxu1 %v6734_v46 }
 0x62a   : > { %2267 = vmatpush1.bf16.msra.mxu0 %v6740_v47  ;;  %2308 = vmatpush1.bf16.msra.mxu1 %v6746_v54 }
 0x62b   : > { %2268 = vmatprep.subr.bf16.mxu0 %v6752_v40  ;;  %2309 = vmatprep.subr.bf16.mxu1 %v6758_v52 }
 0x62e   : > { %2269 = vmatpush1.bf16.msra.mxu0 %v6764_v5  ;;  %2310 = vmatpush1.bf16.msra.mxu1 %v6770_v44 }
 0x62f   : > { %2270 = vmatprep.subr.bf16.mxu0 %v6776_v62  ;;  %2311 = vmatprep.subr.bf16.mxu1 %v6782_v42  ;;  %v6795_v62 = vld [vmem:[%s7739_s1 + $0xc4] ss:$16 sps:$4 sm:$0xff]   ;;  %v6802_v42 = vld [vmem:[%s7739_s1 + $0xc0] ss:$16 sps:$4 sm:$0xff]  }
 0x632   : > { %2271 = vmatpush1.bf16.msra.mxu0 %v6788_v38  ;;  %2312 = vmatpush1.bf16.msra.mxu1 %v6103_v56  ;;  %v6809_v56 = vld [vmem:[%s7739_s1 + $0xe4] ss:$16 sps:$4 sm:$0xff]  }
 0x633   : > { %2272 = vmatprep.subr.bf16.mxu0 %v6795_v62  ;;  %2313 = vmatprep.subr.bf16.mxu1 %v6110_v61  ;;  %v2259_v61 = vld [vmem:[#allocation3] sm:$0xf] }
 0x636   : > { %2273 = vmatpush1.bf16.msra.mxu0 %v6802_v42  ;;  %2314 = vmatpush1.bf16.msra.mxu1 %v6117_v17  ;;  %v8321_v17 = vld [vmem:[#allocation40_spill] sm:$0xff] }
 0x637   : > { %2274 = vmatprep.subr.bf16.mxu0 %v6809_v56  ;;  %2315 = vmatprep.subr.bf16.mxu1 %v6124_v63  ;;  %v8322_v63 = vld [vmem:[#allocation41_spill] sm:$0xff] }
 0x63a   : > { %2275 = vmatpush1.bf16.msra.mxu0 %v6130_v0  ;;  %2316 = vmatpush1.bf16.msra.mxu1 %v6136_v1  ;;  %v8323_v0 = vld [vmem:[#allocation42_spill] sm:$0xff]  ;;  %v8324_v1 = vld [vmem:[#allocation43_spill] sm:$0xff] }
 0x63b   : > { %2380 = vmatprep.subr.bf16.mxu0 %v6142_v3  ;;  %2421 = vmatprep.subr.bf16.mxu1 %v6148_v4  ;;  %v8325_v3 = vld [vmem:[#allocation44_spill] sm:$0xff]  ;;  %v8326_v4 = vld [vmem:[#allocation45_spill] sm:$0xff] }
 0x63d   : > { %2293 = vmatmul.mubr.bf16.vlgmr.msra.gmra.mrb[40].mxu0 %v2259_v61  ;;  %2334 = vmatmul.mubr.bf16.vlgmr.msra.gmra.mrb[40].mxu1 %v2259_v61  ;;  %v8352_v61 = vld [vmem:[#allocation9_spill] sm:$0xff] }
 0x63e   : > { %2381 = vmatpush1.bf16.msra.mxu0 %v6154_v7  ;;  %2422 = vmatpush1.bf16.msra.mxu1 %v6160_v10  ;;  %v8327_v7 = vld [vmem:[#allocation46_spill] sm:$0xff]  ;;  %v8328_v10 = vld [vmem:[#allocation47_spill] sm:$0xff] }
 0x63f   : > { %2382 = vmatprep.subr.bf16.mxu0 %v6166_v11  ;;  %2423 = vmatprep.subr.bf16.mxu1 %v6172_v12  ;;  %v8329_v11 = vld [vmem:[#allocation48_spill] sm:$0xff]  ;;  %v8330_v12 = vld [vmem:[#allocation49_spill] sm:$0xff] }
 0x642   : > { %2383 = vmatpush1.bf16.msra.mxu0 %v6178_v13  ;;  %2424 = vmatpush1.bf16.msra.mxu1 %v6184_v14  ;;  %v8331_v13 = vld [vmem:[#allocation50_spill] sm:$0xff]  ;;  %v8332_v14 = vld [vmem:[#allocation51_spill] sm:$0xff] }
 0x643   : > { %2384 = vmatprep.subr.bf16.mxu0 %v6190_v15  ;;  %2425 = vmatprep.subr.bf16.mxu1 %v6196_v16  ;;  %v8333_v15 = vld [vmem:[#allocation52_spill] sm:$0xff]  ;;  %v8334_v16 = vld [vmem:[#allocation53_spill] sm:$0xff] }
 0x646   : > { %2385 = vmatpush1.bf16.msra.mxu0 %v8258_v22  ;;  %2426 = vmatpush1.bf16.msra.mxu1 %v8259_v29  ;;  %v8335_v22 = vld [vmem:[#allocation54_spill] sm:$0xff]  ;;  %v8336_v29 = vld [vmem:[#allocation55_spill] sm:$0xff] }
 0x647   : > { %2386 = vmatprep.subr.bf16.mxu0 %v8260_v34  ;;  %2427 = vmatprep.subr.bf16.mxu1 %v8261_v20  ;;  %v8337_v34 = vld [vmem:[#allocation56_spill] sm:$0xff]  ;;  %v8338_v20 = vld [vmem:[#allocation57_spill] sm:$0xff] }
 0x64a   : > { %2387 = vmatpush1.bf16.msra.mxu0 %v8262_v32  ;;  %2428 = vmatpush1.bf16.msra.mxu1 %v8263_v26  ;;  %v8339_v32 = vld [vmem:[#allocation13_spill] sm:$0xff]  ;;  %v8340_v26 = vld [vmem:[#allocation14_spill] sm:$0xff] }
 0x64b   : > { %2388 = vmatprep.subr.bf16.mxu0 %v8264_v21  ;;  %2429 = vmatprep.subr.bf16.mxu1 %v8265_v18  ;;  %v8341_v21 = vld [vmem:[#allocation58_spill] sm:$0xff]  ;;  %v8342_v18 = vld [vmem:[#allocation59_spill] sm:$0xff] }
 0x64e   : > { %2389 = vmatpush1.bf16.msra.mxu0 %v8266_v30  ;;  %2430 = vmatpush1.bf16.msra.mxu1 %v8267_v27  ;;  %v8343_v30 = vld [vmem:[#allocation60_spill] sm:$0xff]  ;;  %v8344_v27 = vld [vmem:[#allocation61_spill] sm:$0xff] }
 0x64f   : > { %2390 = vmatprep.subr.bf16.mxu0 %v8268_v31  ;;  %2431 = vmatprep.subr.bf16.mxu1 %v8269_v59  ;;  %v8345_v31 = vld [vmem:[#allocation62_spill] sm:$0xff]  ;;  %v8346_v59 = vld [vmem:[#allocation63_spill] sm:$0xff] }
 0x652   : > { %2391 = vmatpush1.bf16.msra.mxu0 %v8270_v58  ;;  %2432 = vmatpush1.bf16.msra.mxu1 %v8271_v57  ;;  %v8347_v58 = vld [vmem:[#allocation64_spill] sm:$0xff]  ;;  %v8348_v57 = vld [vmem:[#allocation65_spill] sm:$0xff] }
 0x653   : > { %2392 = vmatprep.subr.bf16.mxu0 %v8272_v19  ;;  %2433 = vmatprep.subr.bf16.mxu1 %v8273_v2  ;;  %v8349_v19 = vld [vmem:[#allocation66_spill] sm:$0xff]  ;;  %v8350_v2 = vld [vmem:[#allocation67_spill] sm:$0xff] }
 0x656   : > { %2393 = vmatpush1.bf16.msra.mxu0 %v8274_v35  ;;  %2434 = vmatpush1.bf16.msra.mxu1 %v8275_v28  ;;  %v6882_v35 = vld [vmem:[%s7739_s1 + $0x4] ss:$16 sps:$4 sm:$0xff]   ;;  %v6888_v28 = vld [vmem:[%s7739_s1 + $0xc] ss:$16 sps:$4 sm:$0xff]  }
 0x657   : > { %2394 = vmatprep.subr.bf16.mxu0 %v8276_v24  ;;  %2435 = vmatprep.subr.bf16.mxu1 %v8277_v33 }
 0x65a   : > { %2395 = vmatpush1.bf16.msra.mxu0 %v8278_v60  ;;  %2436 = vmatpush1.bf16.msra.mxu1 %v8279_v43  ;;  %v8351_v60 = vld [vmem:[#allocation8_spill] sm:$0xff] }
 0x65b   : > { %2396 = vmatprep.subr.bf16.mxu0 %v8280_v39  ;;  %2437 = vmatprep.subr.bf16.mxu1 %v8281_v55 }
 0x65e   : > { %2397 = vmatpush1.bf16.msra.mxu0 %v8321_v17  ;;  %2438 = vmatpush1.bf16.msra.mxu1 %v8322_v63 }
 0x65f   : > { %2398 = vmatprep.subr.bf16.mxu0 %v8323_v0  ;;  %2439 = vmatprep.subr.bf16.mxu1 %v8324_v1 }
 0x662   : > { %2399 = vmatpush1.bf16.msra.mxu0 %v8325_v3  ;;  %2440 = vmatpush1.bf16.msra.mxu1 %v8326_v4 }
 0x663   : > { %2400 = vmatprep.subr.bf16.mxu0 %v8327_v7  ;;  %2441 = vmatprep.subr.bf16.mxu1 %v8328_v10  ;;  %v8353_v10 = vld [vmem:[#allocation10_spill] sm:$0xff] }
 0x666   : > { %2401 = vmatpush1.bf16.msra.mxu0 %v8329_v11  ;;  %2442 = vmatpush1.bf16.msra.mxu1 %v8330_v12 }
 0x667   : > { %2402 = vmatprep.subr.bf16.mxu0 %v8331_v13  ;;  %2443 = vmatprep.subr.bf16.mxu1 %v8332_v14  ;;  %v8354_v13 = vld [vmem:[#allocation11_spill] sm:$0xff] }
 0x66a   : > { %2403 = vmatpush1.bf16.msra.mxu0 %v8333_v15  ;;  %2444 = vmatpush1.bf16.msra.mxu1 %v8334_v16 }
 0x66b   : > { %2404 = vmatprep.subr.bf16.mxu0 %v8335_v22  ;;  %2445 = vmatprep.subr.bf16.mxu1 %v8336_v29 }
 0x66e   : > { %2405 = vmatpush1.bf16.msra.mxu0 %v8337_v34  ;;  %2446 = vmatpush1.bf16.msra.mxu1 %v8338_v20 }
 0x66f   : > { %2406 = vmatprep.subr.bf16.mxu0 %v8339_v32  ;;  %2447 = vmatprep.subr.bf16.mxu1 %v8340_v26 }
 0x672   : > { %2407 = vmatpush1.bf16.msra.mxu0 %v8341_v21  ;;  %2448 = vmatpush1.bf16.msra.mxu1 %v8342_v18 }
 0x673   : > { %2408 = vmatprep.subr.bf16.mxu0 %v8343_v30  ;;  %2449 = vmatprep.subr.bf16.mxu1 %v8344_v27  ;;  %v3850_v27 = vld [vmem:[%s5692_s12 + $0xa0] sm:$0xff] }
 0x676   : > { %2409 = vmatpush1.bf16.msra.mxu0 %v8345_v31  ;;  %2450 = vmatpush1.bf16.msra.mxu1 %v8346_v59  ;;  %v3851_v31 = vld [vmem:[%s5692_s12 + $0xa8] sm:$0xff] }
 0x677   : > { %2410 = vmatprep.subr.bf16.mxu0 %v8347_v58  ;;  %2451 = vmatprep.subr.bf16.mxu1 %v8348_v57 }
 0x67a   : > { %2411 = vmatpush1.bf16.msra.mxu0 %v8349_v19  ;;  %2452 = vmatpush1.bf16.msra.mxu1 %v8350_v2 }
 0x67b   : > { %2495 = vmatprep.subr.bf16.mxu0 %v6882_v35  ;;  %2536 = vmatprep.subr.bf16.mxu1 %v6888_v28 }
 0x6f0   : > { %v2179_v24 = vpop.f32.mrb[36].mxu0  ;;  %v2220_v33 = vpop.f32.mrb[36].mxu1 }
 0x6f1   : > { %v2180_v43 = vadd.f32 %v2179_v24, %v8351_v60  ;;  %v2181_v39 = vpop.f32.mrb[37].mxu0  ;;  %v2222_v55 = vpop.f32.mrb[37].mxu1  ;;  %v2221_v14 = vadd.f32 %v2220_v33, %v8354_v13 }
 0x6f2   : > { %v2182_v17 = vadd.f32 %v2181_v39, %v8352_v61  ;;  %v2183_v63 = vpop.f32.mrb[38].mxu0  ;;  %v2224_v0 = vpop.f32.mrb[38].mxu1  ;;  %v2223_v11 = vadd.f32 %v2222_v55, %v8353_v10 }
 0x6f3   : > { %v3847_v1 = vmul.f32 -1.442695, %v2180_v43  ;;  %v2184_v3 = vpop.f32.mrb[39].mxu0  ;;  %v2225_v4 = vpop.f32.mrb[39].mxu1  ;;  %v3853_v0 = vld [vmem:[%s5692_s12 + $0xb8] sm:$0xff] }
 0x6f4   : > { %v3848_v7 = vmul.f32 -1.442695, %v2182_v17  ;;  %v3849_v12 = vmul.f32 -1.442695, %v2223_v11  ;;  %v3852_v3 = vld [vmem:[%s5692_s12 + $0xb0] sm:$0xff] }
 0x6f5   : > { %4568 = vpow2.f32 %v3847_v1 }
 0x6f6   : > { %4570 = vpow2.f32 %v3848_v7 }
 0x6f7   : > { %4572 = vpow2.f32 %v3849_v12 }
 0x6f8   : > { %4574 = vtanh.f32 %v2221_v14 }
 0x6ff   : > { %v4569_v15 = vpop.eup %4568 }
 0x700   : > { %v4571_v16 = vpop.eup %4570  ;;  %v2230_v22 = vadd.f32 1.0, %v4569_v15 }
 0x701   : > { %v2236_v29 = vadd.f32 1.0, %v4571_v16  ;;  %v4573_v34 = vpop.eup %4572 }
 0x702   : > { %4576 = vrcp.f32 %v2230_v22  ;;  %v4575_v20 = vpop.eup %4574  ;;  %v2243_v18 = vadd.f32 1.0, %v4573_v34 }
 0x703   : > { %4578 = vrcp.f32 %v2236_v29 }
 0x704   : > { %4580 = vrcp.f32 %v2243_v18 }
 0x70c   : > { %v4577_v32 = vpop.eup %4576 }
 0x70d   : > { %v4579_v26 = vpop.eup %4578  ;;  %v2247_v21 = vmul.f32 %v4577_v32, %v4575_v20 }
 0x70e   : > { %v2246_v30 = vmul.f32 %v4579_v26, %v6650_v49  ;;  %v4581_v4 = vpop.eup %4580 }
 0x710   : > { %v6898_v59 = vadd.f32 %v2247_v21, %v2246_v30  ;;  %v2294_v58 = vpop.f32.mrb[40].mxu0  ;;  %v2335_v57 = vpop.f32.mrb[40].mxu1 }
 0x711   : > { %v2342_v19 = vadd.f32 %v3850_v27, %v2294_v58  ;;  %v2296_v2 = vpop.f32.mrb[41].mxu0  ;;  %v2337_v24 = vpop.f32.mrb[41].mxu1  ;;  %v2344_v14 = vadd.f32 %v3852_v3, %v2335_v57  ;;  %v6976_v3 = vld [vmem:[%s7740_s2 + $0x4] ss:$16 sps:$4 sm:$0xff]  }
 0x712   : > { %4582 = vtanh.f32 %v6898_v59  ;;  %v2343_v33 = vadd.f32 %v3851_v31, %v2296_v2  ;;  %v2298_v43 = vpop.f32.mrb[42].mxu0  ;;  %v2339_v39 = vpop.f32.mrb[42].mxu1  ;;  %v2345_v1 = vadd.f32 %v3853_v0, %v2337_v24  ;;  %v6964_v0 = vld [vmem:[%s7739_s1 + $0xe0] ss:$16 sps:$4 sm:$0xff]  }
 0x713   : > { %v3854_v55 = vmul.f32 -1.442695, %v2342_v19  ;;  %v2299_v17 = vpop.f32.mrb[43].mxu0  ;;  %v2340_v49 = vpop.f32.mrb[43].mxu1  ;;  %v8357_v39 = vld [vmem:[#allocation20_spill] sm:$0xff] }
 0x714   : > { %v3855_v63 = vmul.f32 -1.442695, %v2343_v33  ;;  %v3856_v11 = vmul.f32 -1.442695, %v2345_v1  ;;  %v6944_v17 = vld [vmem:[%s7739_s1 + $0xcc] ss:$16 sps:$4 sm:$0xff]  }
 0x715   : > { %4584 = vpow2.f32 %v3854_v55  ;;  %v6937_v55 = vld [vmem:[%s7739_s1 + $0xa8] ss:$16 sps:$4 sm:$0xff]  }
 0x716   : > { %4586 = vpow2.f32 %v3855_v63  ;;  %v6951_v49 = vld [vmem:[%s7739_s1 + $0xc8] ss:$16 sps:$4 sm:$0xff]   ;;  %v6958_v63 = vld [vmem:[%s7739_s1 + $0xec] ss:$16 sps:$4 sm:$0xff]  }
 0x717   : > { %4588 = vpow2.f32 %v3856_v11  ;;  %v6970_v1 = vld [vmem:[%s7739_s1 + $0xe8] ss:$16 sps:$4 sm:$0xff]   ;;  %v6988_v11 = vld [vmem:[%s7740_s2] ss:$16 sps:$4 sm:$0xff]  }
 0x718   : > { %4590 = vtanh.f32 %v2344_v14  ;;  %v6994_v14 = vld [vmem:[%s7740_s2 + $0x8] ss:$16 sps:$4 sm:$0xff]  }
 0x71c   : > { %v4583_v7 = vpop.eup %4582 }
 0x71d   : > { %v6903_v12 = vmul.f32 %v4583_v7, %v4581_v4  ;;  %v6982_v4 = vld [vmem:[%s7740_s2 + $0xc] ss:$16 sps:$4 sm:$0xff]  }
 0x71f   : > { %8355 = vst [vmem:[#allocation21_spill] sm:$0xff] %v6903_v12  ;;  %v4585_v15 = vpop.eup %4584  ;;  %v2251_v16 = vpack.c.bf16 %v6903_v12, %v6903_v12  ;;  %v7120_v12 = vld [vmem:[%s7740_s2 + $0xc4] ss:$16 sps:$4 sm:$0xff]  }
 0x720   : > { %v4587_v22 = vpop.eup %4586  ;;  %v2349_v29 = vadd.f32 1.0, %v4585_v15  ;;  %v7000_v15 = vld [vmem:[%s7740_s2 + $0x24] ss:$16 sps:$4 sm:$0xff]   ;;  %8372 = vst [vmem:[#allocation34_spill] sm:$0xff] %v7120_v12 }
 0x721   : > { %2252 = vst [vmem:[#allocation3 + $0x4] sm:$0xf] %v2251_v16  ;;  %v2355_v34 = vadd.f32 1.0, %v4587_v22  ;;  %v4589_v20 = vpop.eup %4588  ;;  %v7006_v16 = vld [vmem:[%s7740_s2 + $0x2c] ss:$16 sps:$4 sm:$0xff]  }
 0x722   : > { %4592 = vrcp.f32 %v2349_v29  ;;  %v4591_v32 = vpop.eup %4590  ;;  %v2362_v30 = vadd.f32 1.0, %v4589_v20  ;;  %v7012_v22 = vld [vmem:[%s7740_s2 + $0x20] ss:$16 sps:$4 sm:$0xff]   ;;  %v7018_v29 = vld [vmem:[%s7740_s2 + $0x28] ss:$16 sps:$4 sm:$0xff]  }
 0x723   : > { %4594 = vrcp.f32 %v2355_v34  ;;  %v7024_v34 = vld [vmem:[%s7740_s2 + $0x44] ss:$16 sps:$4 sm:$0xff]   ;;  %v7030_v20 = vld [vmem:[%s7740_s2 + $0x4c] ss:$16 sps:$4 sm:$0xff]  }
 0x724   : > { %4596 = vrcp.f32 %v2362_v30  ;;  %v7060_v30 = vld [vmem:[%s7740_s2 + $0x60] ss:$16 sps:$4 sm:$0xff]  }
 0x725   : > { %8362 = vst [vmem:[#allocation26_spill] sm:$0xff] %v7060_v30 }
 0x72c   : > { %v4593_v26 = vpop.eup %4592 }
 0x72d   : > { %v4595_v21 = vpop.eup %4594  ;;  %v2366_v18 = vmul.f32 %v4593_v26, %v4591_v32  ;;  %v7036_v32 = vld [vmem:[%s7740_s2 + $0x40] ss:$16 sps:$4 sm:$0xff]   ;;  %v7042_v26 = vld [vmem:[%s7740_s2 + $0x48] ss:$16 sps:$4 sm:$0xff]  }
 0x72e   : > { %v2365_v27 = vmul.f32 %v4595_v21, %v6660_v51  ;;  %v4597_v58 = vpop.eup %4596  ;;  %v8356_v51 = vld [vmem:[#allocation19_spill] sm:$0xff]  ;;  %8358 = vst [vmem:[#allocation22_spill] sm:$0xff] %v7036_v32  ;;  %8359 = vst [vmem:[#allocation23_spill] sm:$0xff] %v7042_v26 }
 0x72f   : > { %v7048_v21 = vld [vmem:[%s7740_s2 + $0x64] ss:$16 sps:$4 sm:$0xff]  }
 0x730   : > { %v6908_v31 = vadd.f32 %v2366_v18, %v2365_v27  ;;  %8360 = vst [vmem:[#allocation24_spill] sm:$0xff] %v7048_v21  ;;  %v7054_v18 = vld [vmem:[%s7740_s2 + $0x6c] ss:$16 sps:$4 sm:$0xff]   ;;  %v7066_v27 = vld [vmem:[%s7740_s2 + $0x68] ss:$16 sps:$4 sm:$0xff]  }
 0x731   : > { %8361 = vst [vmem:[#allocation25_spill] sm:$0xff] %v7054_v18  ;;  %8363 = vst [vmem:[#allocation27_spill] sm:$0xff] %v7066_v27 }
 0x732   : > { %4598 = vtanh.f32 %v6908_v31 }
 0x73c   : > { %v4599_v57 = vpop.eup %4598 }
 0x73d   : > { %v2369_v19 = vmul.f32 %v4599_v57, %v4597_v58  ;;  %v7072_v58 = vld [vmem:[%s7740_s2 + $0x84] ss:$16 sps:$4 sm:$0xff]   ;;  %v7078_v57 = vld [vmem:[%s7740_s2 + $0x8c] ss:$16 sps:$4 sm:$0xff]  }
 0x73e   : > { %8364 = vst [vmem:[#allocation6_spill] sm:$0xff] %v7072_v58  ;;  %8365 = vst [vmem:[#allocation7_spill] sm:$0xff] %v7078_v57 }
 0x73f   : > { %v2370_v2 = vpack.c.bf16 %v2369_v19, %v2369_v19  ;;  %v7084_v19 = vld [vmem:[%s7740_s2 + $0x80] ss:$16 sps:$4 sm:$0xff]  }
 0x740   : > { %8366 = vst [vmem:[#allocation28_spill] sm:$0xff] %v7084_v19 }
 0x741   : > { %2371 = vst [vmem:[#allocation3] sm:$0xf] %v2370_v2  ;;  %v7090_v2 = vld [vmem:[%s7740_s2 + $0x88] ss:$16 sps:$4 sm:$0xff]  }
 0x742   : > { %8367 = vst [vmem:[#allocation29_spill] sm:$0xff] %v7090_v2 }
 0x748   : > { %v2372_v24 = vld [vmem:[#allocation3] sm:$0xff] }
 0x749   : > { %v3858_v33 = vcombine.high %v2372_v24, %v2372_v24  ;;  %v3857_v43 = vcombine.low %v2372_v24, %v2372_v24  ;;  %v2494_v7 = vld [vmem:[#allocation3] sm:$0xf]  ;;  %v7096_v24 = vld [vmem:[%s7740_s2 + $0xa4] ss:$16 sps:$4 sm:$0xff]  }
 0x74a   : > { %8368 = vst [vmem:[#allocation30_spill] sm:$0xff] %v7096_v24 }
 0x74b   : > { %2412 = vmatprep.mubr.bf16.mxu0 %v3858_v33  ;;  %2453 = vmatprep.mubr.bf16.mxu1 %v3858_v33  ;;  %v7102_v33 = vld [vmem:[%s7740_s2 + $0xac] ss:$16 sps:$4 sm:$0xff]  }
 0x74c   : > { %2413 = vmatmul.mubr.bf16.vlgmr.msra.gmra.mrb[44].mxu0 %v3857_v43  ;;  %2454 = vmatmul.mubr.bf16.vlgmr.msra.gmra.mrb[44].mxu1 %v3857_v43  ;;  %8369 = vst [vmem:[#allocation31_spill] sm:$0xff] %v7102_v33  ;;  %v7108_v43 = vld [vmem:[%s7740_s2 + $0xa0] ss:$16 sps:$4 sm:$0xff]  }
 0x74d   : > { %2496 = vmatpush1.bf16.msra.mxu0 %v6666_v37  ;;  %2537 = vmatpush1.bf16.msra.mxu1 %v6672_v23  ;;  %8370 = vst [vmem:[#allocation32_spill] sm:$0xff] %v7108_v43 }
 0x74e   : > { %2497 = vmatprep.subr.bf16.mxu0 %v6678_v9  ;;  %2538 = vmatprep.subr.bf16.mxu1 %v6684_v50 }
 0x74f   : > { %2527 = vmatprep.mubr.bf16.mxu0 %v8104_v25  ;;  %2568 = vmatprep.mubr.bf16.mxu1 %v8104_v25 }
 0x751   : > { %2498 = vmatpush1.bf16.msra.mxu0 %v6692_v53  ;;  %2539 = vmatpush1.bf16.msra.mxu1 %v6698_v6 }
 0x752   : > { %2499 = vmatprep.subr.bf16.mxu0 %v6704_v45  ;;  %2540 = vmatprep.subr.bf16.mxu1 %v6710_v48 }
 0x755   : > { %2500 = vmatpush1.bf16.msra.mxu0 %v6716_v8  ;;  %2541 = vmatpush1.bf16.msra.mxu1 %v6722_v41 }
 0x756   : > { %2501 = vmatprep.subr.bf16.mxu0 %v6728_v36  ;;  %2542 = vmatprep.subr.bf16.mxu1 %v6734_v46 }
 0x759   : > { %2502 = vmatpush1.bf16.msra.mxu0 %v6740_v47  ;;  %2543 = vmatpush1.bf16.msra.mxu1 %v6746_v54 }
 0x75a   : > { %2503 = vmatprep.subr.bf16.mxu0 %v6752_v40  ;;  %2544 = vmatprep.subr.bf16.mxu1 %v6758_v52 }
 0x75d   : > { %2504 = vmatpush1.bf16.msra.mxu0 %v6764_v5  ;;  %2545 = vmatpush1.bf16.msra.mxu1 %v6770_v44 }
 0x75e   : > { %2505 = vmatprep.subr.bf16.mxu0 %v8356_v51  ;;  %2546 = vmatprep.subr.bf16.mxu1 %v8357_v39 }
 0x761   : > { %2506 = vmatpush1.bf16.msra.mxu0 %v6788_v38  ;;  %2547 = vmatpush1.bf16.msra.mxu1 %v6937_v55 }
 0x762   : > { %2507 = vmatprep.subr.bf16.mxu0 %v6795_v62  ;;  %2548 = vmatprep.subr.bf16.mxu1 %v6944_v17 }
 0x765   : > { %2508 = vmatpush1.bf16.msra.mxu0 %v6802_v42  ;;  %2549 = vmatpush1.bf16.msra.mxu1 %v6951_v49 }
 0x766   : > { %2509 = vmatprep.subr.bf16.mxu0 %v6809_v56  ;;  %2550 = vmatprep.subr.bf16.mxu1 %v6958_v63 }
 0x769   : > { %2510 = vmatpush1.bf16.msra.mxu0 %v6964_v0  ;;  %2551 = vmatpush1.bf16.msra.mxu1 %v6970_v1 }
 0x76a   : > { %2615 = vmatprep.subr.bf16.mxu0 %v6976_v3  ;;  %2656 = vmatprep.subr.bf16.mxu1 %v6982_v4 }
 0x76c   : > { %2528 = vmatmul.mubr.bf16.vlgmr.msra.gmra.mrb[48].mxu0 %v2494_v7  ;;  %2569 = vmatmul.mubr.bf16.vlgmr.msra.gmra.mrb[48].mxu1 %v2494_v7  ;;  %v7114_v7 = vld [vmem:[%s7740_s2 + $0xa8] ss:$16 sps:$4 sm:$0xff]  }
 0x76d   : > { %2616 = vmatpush1.bf16.msra.mxu0 %v6988_v11  ;;  %2657 = vmatpush1.bf16.msra.mxu1 %v6994_v14  ;;  %8371 = vst [vmem:[#allocation33_spill] sm:$0xff] %v7114_v7 }
 0x76e   : > { %2617 = vmatprep.subr.bf16.mxu0 %v7000_v15  ;;  %2658 = vmatprep.subr.bf16.mxu1 %v7006_v16 }
 0x771   : > { %2618 = vmatpush1.bf16.msra.mxu0 %v7012_v22  ;;  %2659 = vmatpush1.bf16.msra.mxu1 %v7018_v29 }
 0x772   : > { %2619 = vmatprep.subr.bf16.mxu0 %v7024_v34  ;;  %2660 = vmatprep.subr.bf16.mxu1 %v7030_v20 }
 0x775   : > { %2620 = vmatpush1.bf16.msra.mxu0 %v7036_v32  ;;  %2661 = vmatpush1.bf16.msra.mxu1 %v7042_v26 }
 0x776   : > { %2621 = vmatprep.subr.bf16.mxu0 %v7048_v21  ;;  %2662 = vmatprep.subr.bf16.mxu1 %v7054_v18 }
 0x779   : > { %2622 = vmatpush1.bf16.msra.mxu0 %v7060_v30  ;;  %2663 = vmatpush1.bf16.msra.mxu1 %v7066_v27 }
 0x77a   : > { %2623 = vmatprep.subr.bf16.mxu0 %v7072_v58  ;;  %2664 = vmatprep.subr.bf16.mxu1 %v7078_v57 }
 0x77d   : > { %2624 = vmatpush1.bf16.msra.mxu0 %v7084_v19  ;;  %2665 = vmatpush1.bf16.msra.mxu1 %v7090_v2 }
 0x77e   : > { %2625 = vmatprep.subr.bf16.mxu0 %v7096_v24  ;;  %2666 = vmatprep.subr.bf16.mxu1 %v7102_v33  ;;  %v7126_v33 = vld [vmem:[%s7740_s2 + $0xcc] ss:$16 sps:$4 sm:$0xff]  }
 0x77f   : > { %8373 = vst [vmem:[#allocation35_spill] sm:$0xff] %v7126_v33 }
 0x781   : > { %2626 = vmatpush1.bf16.msra.mxu0 %v7108_v43  ;;  %2667 = vmatpush1.bf16.msra.mxu1 %v7114_v7  ;;  %v7132_v43 = vld [vmem:[%s7740_s2 + $0xc0] ss:$16 sps:$4 sm:$0xff]   ;;  %v7138_v7 = vld [vmem:[%s7740_s2 + $0xc8] ss:$16 sps:$4 sm:$0xff]  }
 0x782   : > { %2627 = vmatprep.subr.bf16.mxu0 %v7120_v12  ;;  %2668 = vmatprep.subr.bf16.mxu1 %v7126_v33  ;;  %8374 = vst [vmem:[#allocation36_spill] sm:$0xff] %v7132_v43  ;;  %8375 = vst [vmem:[#allocation37_spill] sm:$0xff] %v7138_v7  ;;  %v7144_v12 = vld [vmem:[%s7740_s2 + $0xe4] ss:$16 sps:$4 sm:$0xff]   ;;  %v7150_v33 = vld [vmem:[%s7740_s2 + $0xec] ss:$16 sps:$4 sm:$0xff]  }
 0x783   : > { %8376 = vst [vmem:[#allocation38_spill] sm:$0xff] %v7144_v12  ;;  %8377 = vst [vmem:[#allocation39_spill] sm:$0xff] %v7150_v33 }
 0x785   : > { %2628 = vmatpush1.bf16.msra.mxu0 %v7132_v43  ;;  %2669 = vmatpush1.bf16.msra.mxu1 %v7138_v7  ;;  %v7156_v43 = vld [vmem:[%s7740_s2 + $0xe0] ss:$16 sps:$4 sm:$0xff]   ;;  %v7162_v7 = vld [vmem:[%s7740_s2 + $0xe8] ss:$16 sps:$4 sm:$0xff]  }
 0x786   : > { %2629 = vmatprep.subr.bf16.mxu0 %v7144_v12  ;;  %2670 = vmatprep.subr.bf16.mxu1 %v7150_v33  ;;  %8378 = vst [vmem:[#allocation15_spill] sm:$0xff] %v7156_v43  ;;  %8379 = vst [vmem:[#allocation16_spill] sm:$0xff] %v7162_v7  ;;  %v7168_v12 = vld [vmem:[%s7740_s2 + $0x104] ss:$16 sps:$4 sm:$0xff]   ;;  %v7174_v33 = vld [vmem:[%s7740_s2 + $0x10c] ss:$16 sps:$4 sm:$0xff]  }
 0x787   : > { %8380 = vst [vmem:[#allocation40_spill] sm:$0xff] %v7168_v12  ;;  %8381 = vst [vmem:[#allocation41_spill] sm:$0xff] %v7174_v33 }
 0x789   : > { %2630 = vmatpush1.bf16.msra.mxu0 %v7156_v43  ;;  %2671 = vmatpush1.bf16.msra.mxu1 %v7162_v7  ;;  %v7180_v43 = vld [vmem:[%s7740_s2 + $0x100] ss:$16 sps:$4 sm:$0xff]   ;;  %v7186_v7 = vld [vmem:[%s7740_s2 + $0x108] ss:$16 sps:$4 sm:$0xff]  }
 0x78a   : > { %2631 = vmatprep.subr.bf16.mxu0 %v7168_v12  ;;  %2672 = vmatprep.subr.bf16.mxu1 %v7174_v33  ;;  %8382 = vst [vmem:[#allocation42_spill] sm:$0xff] %v7180_v43  ;;  %8383 = vst [vmem:[#allocation43_spill] sm:$0xff] %v7186_v7  ;;  %v7192_v12 = vld [vmem:[%s7740_s2 + $0x124] ss:$16 sps:$4 sm:$0xff]   ;;  %v7198_v33 = vld [vmem:[%s7740_s2 + $0x12c] ss:$16 sps:$4 sm:$0xff]  }
 0x78b   : > { %8384 = vst [vmem:[#allocation44_spill] sm:$0xff] %v7192_v12  ;;  %8385 = vst [vmem:[#allocation45_spill] sm:$0xff] %v7198_v33 }
 0x78d   : > { %2632 = vmatpush1.bf16.msra.mxu0 %v7180_v43  ;;  %2673 = vmatpush1.bf16.msra.mxu1 %v7186_v7  ;;  %v7204_v43 = vld [vmem:[%s7740_s2 + $0x120] ss:$16 sps:$4 sm:$0xff]   ;;  %v7210_v7 = vld [vmem:[%s7740_s2 + $0x128] ss:$16 sps:$4 sm:$0xff]  }
 0x78e   : > { %2633 = vmatprep.subr.bf16.mxu0 %v7192_v12  ;;  %2674 = vmatprep.subr.bf16.mxu1 %v7198_v33  ;;  %8386 = vst [vmem:[#allocation46_spill] sm:$0xff] %v7204_v43  ;;  %8387 = vst [vmem:[#allocation47_spill] sm:$0xff] %v7210_v7  ;;  %v7216_v12 = vld [vmem:[%s7740_s2 + $0x144] ss:$16 sps:$4 sm:$0xff]   ;;  %v7222_v33 = vld [vmem:[%s7740_s2 + $0x14c] ss:$16 sps:$4 sm:$0xff]  }
 0x78f   : > { %8388 = vst [vmem:[#allocation48_spill] sm:$0xff] %v7216_v12  ;;  %8389 = vst [vmem:[#allocation49_spill] sm:$0xff] %v7222_v33 }
 0x791   : > { %2634 = vmatpush1.bf16.msra.mxu0 %v7204_v43  ;;  %2675 = vmatpush1.bf16.msra.mxu1 %v7210_v7  ;;  %v7228_v43 = vld [vmem:[%s7740_s2 + $0x140] ss:$16 sps:$4 sm:$0xff]   ;;  %v7234_v7 = vld [vmem:[%s7740_s2 + $0x148] ss:$16 sps:$4 sm:$0xff]  }
 0x792   : > { %2635 = vmatprep.subr.bf16.mxu0 %v7216_v12  ;;  %2676 = vmatprep.subr.bf16.mxu1 %v7222_v33  ;;  %8390 = vst [vmem:[#allocation50_spill] sm:$0xff] %v7228_v43  ;;  %8391 = vst [vmem:[#allocation51_spill] sm:$0xff] %v7234_v7  ;;  %v7240_v12 = vld [vmem:[%s7740_s2 + $0x164] ss:$16 sps:$4 sm:$0xff]   ;;  %v7246_v33 = vld [vmem:[%s7740_s2 + $0x16c] ss:$16 sps:$4 sm:$0xff]  }
 0x793   : > { %8392 = vst [vmem:[#allocation52_spill] sm:$0xff] %v7240_v12  ;;  %8393 = vst [vmem:[#allocation53_spill] sm:$0xff] %v7246_v33 }
 0x795   : > { %2636 = vmatpush1.bf16.msra.mxu0 %v7228_v43  ;;  %2677 = vmatpush1.bf16.msra.mxu1 %v7234_v7  ;;  %v7252_v43 = vld [vmem:[%s7740_s2 + $0x160] ss:$16 sps:$4 sm:$0xff]   ;;  %v7258_v7 = vld [vmem:[%s7740_s2 + $0x168] ss:$16 sps:$4 sm:$0xff]  }
 0x796   : > { %2637 = vmatprep.subr.bf16.mxu0 %v7240_v12  ;;  %2678 = vmatprep.subr.bf16.mxu1 %v7246_v33  ;;  %8394 = vst [vmem:[#allocation54_spill] sm:$0xff] %v7252_v43  ;;  %8395 = vst [vmem:[#allocation55_spill] sm:$0xff] %v7258_v7  ;;  %v7264_v12 = vld [vmem:[%s7740_s2 + $0x184] ss:$16 sps:$4 sm:$0xff]   ;;  %v7270_v33 = vld [vmem:[%s7740_s2 + $0x18c] ss:$16 sps:$4 sm:$0xff]  }
 0x797   : > { %8396 = vst [vmem:[#allocation56_spill] sm:$0xff] %v7264_v12  ;;  %8397 = vst [vmem:[#allocation57_spill] sm:$0xff] %v7270_v33 }
 0x799   : > { %2638 = vmatpush1.bf16.msra.mxu0 %v7252_v43  ;;  %2679 = vmatpush1.bf16.msra.mxu1 %v7258_v7  ;;  %v7276_v43 = vld [vmem:[%s7740_s2 + $0x180] ss:$16 sps:$4 sm:$0xff]   ;;  %v7282_v7 = vld [vmem:[%s7740_s2 + $0x188] ss:$16 sps:$4 sm:$0xff]  }
 0x79a   : > { %2639 = vmatprep.subr.bf16.mxu0 %v7264_v12  ;;  %2680 = vmatprep.subr.bf16.mxu1 %v7270_v33  ;;  %8398 = vst [vmem:[#allocation13_spill] sm:$0xff] %v7276_v43  ;;  %8399 = vst [vmem:[#allocation14_spill] sm:$0xff] %v7282_v7  ;;  %v7288_v12 = vld [vmem:[%s7740_s2 + $0x1a4] ss:$16 sps:$4 sm:$0xff]   ;;  %v7294_v33 = vld [vmem:[%s7740_s2 + $0x1ac] ss:$16 sps:$4 sm:$0xff]  }
 0x79b   : > { %8400 = vst [vmem:[#allocation58_spill] sm:$0xff] %v7288_v12  ;;  %8401 = vst [vmem:[#allocation59_spill] sm:$0xff] %v7294_v33 }
 0x79d   : > { %2640 = vmatpush1.bf16.msra.mxu0 %v7276_v43  ;;  %2681 = vmatpush1.bf16.msra.mxu1 %v7282_v7  ;;  %v7300_v43 = vld [vmem:[%s7740_s2 + $0x1a0] ss:$16 sps:$4 sm:$0xff]   ;;  %v7306_v7 = vld [vmem:[%s7740_s2 + $0x1a8] ss:$16 sps:$4 sm:$0xff]  }
 0x79e   : > { %2641 = vmatprep.subr.bf16.mxu0 %v7288_v12  ;;  %2682 = vmatprep.subr.bf16.mxu1 %v7294_v33  ;;  %8402 = vst [vmem:[#allocation60_spill] sm:$0xff] %v7300_v43  ;;  %8403 = vst [vmem:[#allocation61_spill] sm:$0xff] %v7306_v7  ;;  %v7312_v12 = vld [vmem:[%s7740_s2 + $0x1c4] ss:$16 sps:$4 sm:$0xff]   ;;  %v7318_v33 = vld [vmem:[%s7740_s2 + $0x1cc] ss:$16 sps:$4 sm:$0xff]  }
 0x79f   : > { %8404 = vst [vmem:[#allocation62_spill] sm:$0xff] %v7312_v12  ;;  %8405 = vst [vmem:[#allocation63_spill] sm:$0xff] %v7318_v33 }
 0x7a1   : > { %2642 = vmatpush1.bf16.msra.mxu0 %v7300_v43  ;;  %2683 = vmatpush1.bf16.msra.mxu1 %v7306_v7  ;;  %v7324_v43 = vld [vmem:[%s7740_s2 + $0x1c0] ss:$16 sps:$4 sm:$0xff]   ;;  %v7330_v7 = vld [vmem:[%s7740_s2 + $0x1c8] ss:$16 sps:$4 sm:$0xff]  }
 0x7a2   : > { %2643 = vmatprep.subr.bf16.mxu0 %v7312_v12  ;;  %2684 = vmatprep.subr.bf16.mxu1 %v7318_v33  ;;  %8406 = vst [vmem:[#allocation64_spill] sm:$0xff] %v7324_v43  ;;  %8407 = vst [vmem:[#allocation65_spill] sm:$0xff] %v7330_v7  ;;  %v7336_v12 = vld [vmem:[%s7740_s2 + $0x1e4] ss:$16 sps:$4 sm:$0xff]   ;;  %v7342_v33 = vld [vmem:[%s7740_s2 + $0x1ec] ss:$16 sps:$4 sm:$0xff]  }
 0x7a3   : > { %8408 = vst [vmem:[#allocation66_spill] sm:$0xff] %v7336_v12  ;;  %8409 = vst [vmem:[#allocation67_spill] sm:$0xff] %v7342_v33 }
 0x7a5   : > { %2644 = vmatpush1.bf16.msra.mxu0 %v7324_v43  ;;  %2685 = vmatpush1.bf16.msra.mxu1 %v7330_v7  ;;  %v7348_v43 = vld [vmem:[%s7740_s2 + $0x1e0] ss:$16 sps:$4 sm:$0xff]   ;;  %v7354_v7 = vld [vmem:[%s7740_s2 + $0x1e8] ss:$16 sps:$4 sm:$0xff]  }
 0x7a6   : > { %2645 = vmatprep.subr.bf16.mxu0 %v7336_v12  ;;  %2686 = vmatprep.subr.bf16.mxu1 %v7342_v33  ;;  %8410 = vst [vmem:[#allocation19_spill] sm:$0xff] %v7348_v43  ;;  %8411 = vst [vmem:[#allocation20_spill] sm:$0xff] %v7354_v7 }
 0x7a9   : > { %2646 = vmatpush1.bf16.msra.mxu0 %v7348_v43  ;;  %2687 = vmatpush1.bf16.msra.mxu1 %v7354_v7 }
 0x7aa   : > { %2730 = vmatprep.subr.bf16.mxu0 %v6882_v35  ;;  %2771 = vmatprep.subr.bf16.mxu1 %v6888_v28 }
 0x81f   : > { %v2414_v12 = vpop.f32.mrb[44].mxu0  ;;  %v2455_v33 = vpop.f32.mrb[44].mxu1 }
 0x820   : > { %v2415_v24 = vadd.f32 %v2414_v12, %v8351_v60  ;;  %v2416_v2 = vpop.f32.mrb[45].mxu0  ;;  %v2457_v19 = vpop.f32.mrb[45].mxu1  ;;  %v2456_v28 = vadd.f32 %v2455_v33, %v8354_v13  ;;  %v3863_v33 = vld [vmem:[%s5692_s12 + $0xc8] sm:$0xff]  ;;  %v3864_v13 = vld [vmem:[%s5692_s12 + $0xd0] sm:$0xff] }
 0x821   : > { %v2417_v57 = vadd.f32 %v2416_v2, %v8352_v61  ;;  %v2418_v43 = vpop.f32.mrb[46].mxu0  ;;  %v2459_v58 = vpop.f32.mrb[46].mxu1  ;;  %v2458_v35 = vadd.f32 %v2457_v19, %v8353_v10 }
 0x822   : > { %v3859_v27 = vmul.f32 -1.442695, %v2415_v24  ;;  %v2419_v30 = vpop.f32.mrb[47].mxu0  ;;  %v2460_v18 = vpop.f32.mrb[47].mxu1  ;;  %v3862_v24 = vld [vmem:[%s5692_s12 + $0xc0] sm:$0xff] }
 0x823   : > { %v3860_v21 = vmul.f32 -1.442695, %v2417_v57  ;;  %v3861_v7 = vmul.f32 -1.442695, %v2458_v35 }
 0x824   : > { %4600 = vpow2.f32 %v3859_v27 }
 0x825   : > { %4602 = vpow2.f32 %v3860_v21 }
 0x826   : > { %4604 = vpow2.f32 %v3861_v7 }
 0x827   : > { %4606 = vtanh.f32 %v2456_v28 }
 0x82e   : > { %v4601_v26 = vpop.eup %4600 }
 0x82f   : > { %v4603_v12 = vpop.eup %4602  ;;  %v2465_v60 = vadd.f32 1.0, %v4601_v26 }
 0x830   : > { %v2471_v2 = vadd.f32 1.0, %v4603_v12  ;;  %v4605_v30 = vpop.eup %4604 }
 0x831   : > { %4608 = vrcp.f32 %v2465_v60  ;;  %v4607_v18 = vpop.eup %4606  ;;  %v2478_v57 = vadd.f32 1.0, %v4605_v30 }
 0x832   : > { %4610 = vrcp.f32 %v2471_v2 }
 0x833   : > { %4612 = vrcp.f32 %v2478_v57 }
 0x83b   : > { %v4609_v58 = vpop.eup %4608 }
 0x83c   : > { %v4611_v27 = vpop.eup %4610  ;;  %v2482_v21 = vmul.f32 %v4609_v58, %v4607_v18 }
 0x83d   : > { %v2481_v19 = vmul.f32 %v4611_v27, %v6898_v59  ;;  %v4613_v10 = vpop.eup %4612 }
 0x83f   : > { %v7366_v43 = vadd.f32 %v2482_v21, %v2481_v19  ;;  %v2529_v35 = vpop.f32.mrb[48].mxu0  ;;  %v2570_v26 = vpop.f32.mrb[48].mxu1  ;;  %v3865_v21 = vld [vmem:[%s5692_s12 + $0xd8] sm:$0xff] }
 0x840   : > { %v2577_v7 = vadd.f32 %v3862_v24, %v2529_v35  ;;  %v2531_v60 = vpop.f32.mrb[49].mxu0  ;;  %v2572_v28 = vpop.f32.mrb[49].mxu1  ;;  %v2579_v35 = vadd.f32 %v3864_v13, %v2570_v26 }
 0x841   : > { %4614 = vtanh.f32 %v7366_v43  ;;  %v2578_v12 = vadd.f32 %v3863_v33, %v2531_v60  ;;  %v2533_v2 = vpop.f32.mrb[50].mxu0  ;;  %v2574_v18 = vpop.f32.mrb[50].mxu1  ;;  %v2580_v19 = vadd.f32 %v3865_v21, %v2572_v28 }
 0x842   : > { %v3866_v30 = vmul.f32 -1.442695, %v2577_v7  ;;  %v2534_v58 = vpop.f32.mrb[51].mxu0  ;;  %v2575_v59 = vpop.f32.mrb[51].mxu1 }
 0x843   : > { %v3867_v27 = vmul.f32 -1.442695, %v2578_v12  ;;  %v3868_v61 = vmul.f32 -1.442695, %v2580_v19 }
 0x844   : > { %4616 = vpow2.f32 %v3866_v30 }
 0x845   : > { %4618 = vpow2.f32 %v3867_v27 }
 0x846   : > { %4620 = vpow2.f32 %v3868_v61 }
 0x847   : > { %4622 = vtanh.f32 %v2579_v35  ;;  %v8453_v35 = vld [vmem:[#allocation14_spill] sm:$0xff] }
 0x84b   : > { %v4615_v57 = vpop.eup %4614 }
 0x84c   : > { %v7371_v24 = vmul.f32 %v4615_v57, %v4613_v10 }
 0x84e   : > { %v4617_v32 = vpop.eup %4616  ;;  %v2486_v33 = vpack.c.bf16 %v7371_v24, %v7371_v24 }
 0x84f   : > { %v4619_v60 = vpop.eup %4618  ;;  %v2584_v7 = vadd.f32 1.0, %v4617_v32 }
 0x850   : > { %2487 = vst [vmem:[#allocation3 + $0x4] sm:$0xf] %v2486_v33  ;;  %v2590_v12 = vadd.f32 1.0, %v4619_v60  ;;  %v4621_v28 = vpop.eup %4620  ;;  %v8454_v33 = vld [vmem:[#allocation58_spill] sm:$0xff]  ;;  %v8455_v60 = vld [vmem:[#allocation59_spill] sm:$0xff] }
 0x851   : > { %4624 = vrcp.f32 %v2584_v7  ;;  %v4623_v2 = vpop.eup %4622  ;;  %v2597_v10 = vadd.f32 1.0, %v4621_v28  ;;  %v8456_v7 = vld [vmem:[#allocation60_spill] sm:$0xff]  ;;  %v8458_v28 = vld [vmem:[#allocation62_spill] sm:$0xff] }
 0x852   : > { %4626 = vrcp.f32 %v2590_v12  ;;  %v8457_v12 = vld [vmem:[#allocation61_spill] sm:$0xff] }
 0x853   : > { %4628 = vrcp.f32 %v2597_v10  ;;  %v8463_v10 = vld [vmem:[#allocation67_spill] sm:$0xff] }
 0x85b   : > { %v4625_v18 = vpop.eup %4624 }
 0x85c   : > { %v4627_v30 = vpop.eup %4626  ;;  %v2601_v58 = vmul.f32 %v4625_v18, %v4623_v2  ;;  %v8459_v2 = vld [vmem:[#allocation63_spill] sm:$0xff]  ;;  %v8460_v18 = vld [vmem:[#allocation64_spill] sm:$0xff] }
 0x85d   : > { %v2600_v13 = vmul.f32 %v4627_v30, %v6908_v31  ;;  %v4629_v32 = vpop.eup %4628  ;;  %v8434_v31 = vld [vmem:[#allocation40_spill] sm:$0xff]  ;;  %v8461_v30 = vld [vmem:[#allocation65_spill] sm:$0xff] }
 0x85f   : > { %v7376_v26 = vadd.f32 %v2601_v58, %v2600_v13  ;;  %v8462_v58 = vld [vmem:[#allocation66_spill] sm:$0xff]  ;;  %v8464_v13 = vld [vmem:[#allocation19_spill] sm:$0xff] }
 0x861   : > { %4630 = vtanh.f32 %v7376_v26 }
 0x86b   : > { %v4631_v61 = vpop.eup %4630 }
 0x86c   : > { %v2604_v59 = vmul.f32 %v4631_v61, %v4629_v32  ;;  %v8465_v32 = vld [vmem:[#allocation20_spill] sm:$0xff] }
 0x86d   : > { %v3131_v61 = vld [vmem:[%s7745_s7] sm:$0xff] }
 0x86e   : > { %v2605_v27 = vpack.c.bf16 %v2604_v59, %v2604_v59  ;;  %v3132_v59 = vld [vmem:[%s7745_s7 + $0x8] sm:$0xff] }
 0x870   : > { %2606 = vst [vmem:[#allocation3] sm:$0xf] %v2605_v27  ;;  %v7484_v27 = vld [vmem:[%s7742_s4] sm:$0xff]  }
 0x877   : > { %v2607_v21 = vld [vmem:[#allocation3] sm:$0xff] }
 0x878   : > { %v3870_v19 = vcombine.high %v2607_v21, %v2607_v21  ;;  %v3869_v57 = vcombine.low %v2607_v21, %v2607_v21  ;;  %v7486_v21 = vpack.c.bf16 %v3132_v59, %v3131_v61 }
 0x87a   : > { %2647 = vmatprep.mubr.bf16.mxu0 %v3870_v19  ;;  %2688 = vmatprep.mubr.bf16.mxu1 %v3870_v19 }
 0x87b   : > { %2648 = vmatmul.mubr.bf16.vlgmr.msra.gmra.mrb[52].mxu0 %v3869_v57  ;;  %2689 = vmatmul.mubr.bf16.vlgmr.msra.gmra.mrb[52].mxu1 %v3869_v57 }
 0x87c   : > { %2731 = vmatpush1.bf16.msra.mxu0 %v6666_v37  ;;  %2772 = vmatpush1.bf16.msra.mxu1 %v6672_v23  ;;  %v8413_v37 = vld [vmem:[#allocation23_spill] sm:$0xff]  ;;  %v8414_v23 = vld [vmem:[#allocation24_spill] sm:$0xff] }
 0x87d   : > { %2732 = vmatprep.subr.bf16.mxu0 %v6678_v9  ;;  %2773 = vmatprep.subr.bf16.mxu1 %v6684_v50  ;;  %v8415_v9 = vld [vmem:[#allocation25_spill] sm:$0xff]  ;;  %v8416_v50 = vld [vmem:[#allocation26_spill] sm:$0xff] }
 0x87e   : > { %2762 = vmatprep.mubr.bf16.mxu0 %v8104_v25  ;;  %2803 = vmatprep.mubr.bf16.mxu1 %v8104_v25  ;;  %v2729_v25 = vld [vmem:[#allocation3] sm:$0xf] }
 0x880   : > { %2733 = vmatpush1.bf16.msra.mxu0 %v6692_v53  ;;  %2774 = vmatpush1.bf16.msra.mxu1 %v6698_v6  ;;  %v8417_v53 = vld [vmem:[#allocation27_spill] sm:$0xff]  ;;  %v8418_v6 = vld [vmem:[#allocation6_spill] sm:$0xff] }
 0x881   : > { %2734 = vmatprep.subr.bf16.mxu0 %v6704_v45  ;;  %2775 = vmatprep.subr.bf16.mxu1 %v6710_v48  ;;  %v8419_v45 = vld [vmem:[#allocation7_spill] sm:$0xff]  ;;  %v8420_v48 = vld [vmem:[#allocation28_spill] sm:$0xff] }
 0x884   : > { %2735 = vmatpush1.bf16.msra.mxu0 %v6716_v8  ;;  %2776 = vmatpush1.bf16.msra.mxu1 %v6722_v41  ;;  %v8421_v8 = vld [vmem:[#allocation29_spill] sm:$0xff]  ;;  %v8422_v41 = vld [vmem:[#allocation30_spill] sm:$0xff] }
 0x885   : > { %2736 = vmatprep.subr.bf16.mxu0 %v6728_v36  ;;  %2777 = vmatprep.subr.bf16.mxu1 %v6734_v46  ;;  %v8423_v36 = vld [vmem:[#allocation31_spill] sm:$0xff]  ;;  %v8424_v46 = vld [vmem:[#allocation32_spill] sm:$0xff] }
 0x888   : > { %2737 = vmatpush1.bf16.msra.mxu0 %v6740_v47  ;;  %2778 = vmatpush1.bf16.msra.mxu1 %v6746_v54  ;;  %v8425_v47 = vld [vmem:[#allocation33_spill] sm:$0xff]  ;;  %v8426_v54 = vld [vmem:[#allocation34_spill] sm:$0xff] }
 0x889   : > { %2738 = vmatprep.subr.bf16.mxu0 %v6752_v40  ;;  %2779 = vmatprep.subr.bf16.mxu1 %v6758_v52  ;;  %v8427_v40 = vld [vmem:[#allocation35_spill] sm:$0xff]  ;;  %v8428_v52 = vld [vmem:[#allocation36_spill] sm:$0xff] }
 0x88c   : > { %2739 = vmatpush1.bf16.msra.mxu0 %v6764_v5  ;;  %2780 = vmatpush1.bf16.msra.mxu1 %v6770_v44  ;;  %v8429_v5 = vld [vmem:[#allocation37_spill] sm:$0xff]  ;;  %v8430_v44 = vld [vmem:[#allocation38_spill] sm:$0xff] }
 0x88d   : > { %2740 = vmatprep.subr.bf16.mxu0 %v8356_v51  ;;  %2781 = vmatprep.subr.bf16.mxu1 %v8357_v39  ;;  %v8435_v51 = vld [vmem:[#allocation41_spill] sm:$0xff]  ;;  %v8436_v39 = vld [vmem:[#allocation42_spill] sm:$0xff] }
 0x890   : > { %2741 = vmatpush1.bf16.msra.mxu0 %v6788_v38  ;;  %2782 = vmatpush1.bf16.msra.mxu1 %v6937_v55  ;;  %v8412_v38 = vld [vmem:[#allocation22_spill] sm:$0xff]  ;;  %v8437_v55 = vld [vmem:[#allocation43_spill] sm:$0xff] }
 0x891   : > { %2742 = vmatprep.subr.bf16.mxu0 %v6795_v62  ;;  %2783 = vmatprep.subr.bf16.mxu1 %v6944_v17  ;;  %v8431_v62 = vld [vmem:[#allocation39_spill] sm:$0xff]  ;;  %v8438_v17 = vld [vmem:[#allocation44_spill] sm:$0xff] }
 0x894   : > { %2743 = vmatpush1.bf16.msra.mxu0 %v6802_v42  ;;  %2784 = vmatpush1.bf16.msra.mxu1 %v6951_v49  ;;  %v8432_v42 = vld [vmem:[#allocation15_spill] sm:$0xff]  ;;  %v8439_v49 = vld [vmem:[#allocation45_spill] sm:$0xff] }
 0x895   : > { %2744 = vmatprep.subr.bf16.mxu0 %v6809_v56  ;;  %2785 = vmatprep.subr.bf16.mxu1 %v6958_v63  ;;  %v8433_v56 = vld [vmem:[#allocation16_spill] sm:$0xff]  ;;  %v8440_v63 = vld [vmem:[#allocation46_spill] sm:$0xff] }
 0x898   : > { %2745 = vmatpush1.bf16.msra.mxu0 %v6964_v0  ;;  %2786 = vmatpush1.bf16.msra.mxu1 %v6970_v1  ;;  %v8441_v0 = vld [vmem:[#allocation47_spill] sm:$0xff]  ;;  %v8442_v1 = vld [vmem:[#allocation48_spill] sm:$0xff] }
 0x899   : > { %2850 = vmatprep.subr.bf16.mxu0 %v6976_v3  ;;  %2891 = vmatprep.subr.bf16.mxu1 %v6982_v4  ;;  %v8443_v3 = vld [vmem:[#allocation49_spill] sm:$0xff]  ;;  %v8444_v4 = vld [vmem:[#allocation50_spill] sm:$0xff] }
 0x89b   : > { %2763 = vmatmul.mubr.bf16.vlgmr.msra.gmra.mrb[56].mxu0 %v2729_v25  ;;  %2804 = vmatmul.mubr.bf16.vlgmr.msra.gmra.mrb[56].mxu1 %v2729_v25  ;;  %v8466_v25 = vld [vmem:[#allocation8_spill] sm:$0xff] }
 0x89c   : > { %2851 = vmatpush1.bf16.msra.mxu0 %v6988_v11  ;;  %2892 = vmatpush1.bf16.msra.mxu1 %v6994_v14  ;;  %v8445_v11 = vld [vmem:[#allocation51_spill] sm:$0xff]  ;;  %v8446_v14 = vld [vmem:[#allocation52_spill] sm:$0xff] }
 0x89d   : > { %2852 = vmatprep.subr.bf16.mxu0 %v7000_v15  ;;  %2893 = vmatprep.subr.bf16.mxu1 %v7006_v16  ;;  %v8447_v15 = vld [vmem:[#allocation53_spill] sm:$0xff]  ;;  %v8448_v16 = vld [vmem:[#allocation54_spill] sm:$0xff] }
 0x8a0   : > { %2853 = vmatpush1.bf16.msra.mxu0 %v7012_v22  ;;  %2894 = vmatpush1.bf16.msra.mxu1 %v7018_v29  ;;  %v8449_v22 = vld [vmem:[#allocation55_spill] sm:$0xff]  ;;  %v8450_v29 = vld [vmem:[#allocation56_spill] sm:$0xff] }
 0x8a1   : > { %2854 = vmatprep.subr.bf16.mxu0 %v7024_v34  ;;  %2895 = vmatprep.subr.bf16.mxu1 %v7030_v20  ;;  %v8451_v34 = vld [vmem:[#allocation57_spill] sm:$0xff] }
 0x8a2   : > { %v8452_v20 = vld [vmem:[#allocation13_spill] sm:$0xff] }
 0x8a4   : > { %2855 = vmatpush1.bf16.msra.mxu0 %v8412_v38  ;;  %2896 = vmatpush1.bf16.msra.mxu1 %v8413_v37 }
 0x8a5   : > { %2856 = vmatprep.subr.bf16.mxu0 %v8414_v23  ;;  %2897 = vmatprep.subr.bf16.mxu1 %v8415_v9  ;;  %v8467_v9 = vld [vmem:[#allocation9_spill] sm:$0xff] }
 0x8a8   : > { %2857 = vmatpush1.bf16.msra.mxu0 %v8416_v50  ;;  %2898 = vmatpush1.bf16.msra.mxu1 %v8417_v53 }
 0x8a9   : > { %2858 = vmatprep.subr.bf16.mxu0 %v8418_v6  ;;  %2899 = vmatprep.subr.bf16.mxu1 %v8419_v45 }
 0x8ac   : > { %2859 = vmatpush1.bf16.msra.mxu0 %v8420_v48  ;;  %2900 = vmatpush1.bf16.msra.mxu1 %v8421_v8 }
 0x8ad   : > { %2860 = vmatprep.subr.bf16.mxu0 %v8422_v41  ;;  %2901 = vmatprep.subr.bf16.mxu1 %v8423_v36  ;;  %v8468_v36 = vld [vmem:[#allocation10_spill] sm:$0xff] }
 0x8b0   : > { %2861 = vmatpush1.bf16.msra.mxu0 %v8424_v46  ;;  %2902 = vmatpush1.bf16.msra.mxu1 %v8425_v47 }
 0x8b1   : > { %2862 = vmatprep.subr.bf16.mxu0 %v8426_v54  ;;  %2903 = vmatprep.subr.bf16.mxu1 %v8427_v40  ;;  %v8469_v54 = vld [vmem:[#allocation11_spill] sm:$0xff] }
 0x8b4   : > { %2863 = vmatpush1.bf16.msra.mxu0 %v8428_v52  ;;  %2904 = vmatpush1.bf16.msra.mxu1 %v8429_v5 }
 0x8b5   : > { %2864 = vmatprep.subr.bf16.mxu0 %v8430_v44  ;;  %2905 = vmatprep.subr.bf16.mxu1 %v8431_v62 }
 0x8b8   : > { %2865 = vmatpush1.bf16.msra.mxu0 %v8432_v42  ;;  %2906 = vmatpush1.bf16.msra.mxu1 %v8433_v56 }
 0x8b9   : > { %2866 = vmatprep.subr.bf16.mxu0 %v8434_v31  ;;  %2907 = vmatprep.subr.bf16.mxu1 %v8435_v51 }
 0x8bc   : > { %2867 = vmatpush1.bf16.msra.mxu0 %v8436_v39  ;;  %2908 = vmatpush1.bf16.msra.mxu1 %v8437_v55 }
 0x8bd   : > { %2868 = vmatprep.subr.bf16.mxu0 %v8438_v17  ;;  %2909 = vmatprep.subr.bf16.mxu1 %v8439_v49  ;;  %v3874_v49 = vld [vmem:[%s5692_s12 + $0xe0] sm:$0xff] }
 0x8c0   : > { %2869 = vmatpush1.bf16.msra.mxu0 %v8440_v63  ;;  %2910 = vmatpush1.bf16.msra.mxu1 %v8441_v0  ;;  %v3875_v63 = vld [vmem:[%s5692_s12 + $0xe8] sm:$0xff] }
 0x8c1   : > { %2870 = vmatprep.subr.bf16.mxu0 %v8442_v1  ;;  %2911 = vmatprep.subr.bf16.mxu1 %v8443_v3 }
 0x8c4   : > { %2871 = vmatpush1.bf16.msra.mxu0 %v8444_v4  ;;  %2912 = vmatpush1.bf16.msra.mxu1 %v8445_v11 }
 0x8c5   : > { %2872 = vmatprep.subr.bf16.mxu0 %v8446_v14  ;;  %2913 = vmatprep.subr.bf16.mxu1 %v8447_v15 }
 0x8c8   : > { %2873 = vmatpush1.bf16.msra.mxu0 %v8448_v16  ;;  %2914 = vmatpush1.bf16.msra.mxu1 %v8449_v22 }
 0x8c9   : > { %2874 = vmatprep.subr.bf16.mxu0 %v8450_v29  ;;  %2915 = vmatprep.subr.bf16.mxu1 %v8451_v34 }
 0x8cc   : > { %2875 = vmatpush1.bf16.msra.mxu0 %v8452_v20  ;;  %2916 = vmatpush1.bf16.msra.mxu1 %v8453_v35  ;;  %v3877_v35 = vld [vmem:[%s5692_s12 + $0xf8] sm:$0xff] }
 0x8cd   : > { %2876 = vmatprep.subr.bf16.mxu0 %v8454_v33  ;;  %2917 = vmatprep.subr.bf16.mxu1 %v8455_v60  ;;  %v3876_v60 = vld [vmem:[%s5692_s12 + $0xf0] sm:$0xff] }
 0x8d0   : > { %2877 = vmatpush1.bf16.msra.mxu0 %v8456_v7  ;;  %2918 = vmatpush1.bf16.msra.mxu1 %v8457_v12 }
 0x8d1   : > { %2878 = vmatprep.subr.bf16.mxu0 %v8458_v28  ;;  %2919 = vmatprep.subr.bf16.mxu1 %v8459_v2 }
 0x8d4   : > { %2879 = vmatpush1.bf16.msra.mxu0 %v8460_v18  ;;  %2920 = vmatpush1.bf16.msra.mxu1 %v8461_v30 }
 0x8d5   : > { %2880 = vmatprep.subr.bf16.mxu0 %v8462_v58  ;;  %2921 = vmatprep.subr.bf16.mxu1 %v8463_v10 }
 0x8d8   : > { %2881 = vmatpush1.bf16.msra.mxu0 %v8464_v13  ;;  %2922 = vmatpush1.bf16.msra.mxu1 %v8465_v32 }
 0x8d9   : > { %3976 = vmatprep.subr.bf16.mxu0 %v7484_v27  ;;  %4124 = vmatprep.subr.bf16.mxu1 %v7486_v21 }
 0x94e   : > { %v2649_v19 = vpop.f32.mrb[52].mxu0  ;;  %v2690_v57 = vpop.f32.mrb[52].mxu1 }
 0x94f   : > { %v2650_v38 = vadd.f32 %v2649_v19, %v8466_v25  ;;  %v2651_v37 = vpop.f32.mrb[53].mxu0  ;;  %v2692_v23 = vpop.f32.mrb[53].mxu1  ;;  %v2691_v40 = vadd.f32 %v2690_v57, %v8469_v54 }
 0x950   : > { %v2652_v50 = vadd.f32 %v2651_v37, %v8467_v9  ;;  %v2653_v53 = vpop.f32.mrb[54].mxu0  ;;  %v2694_v6 = vpop.f32.mrb[54].mxu1  ;;  %v2693_v46 = vadd.f32 %v2692_v23, %v8468_v36 }
 0x951   : > { %v3871_v45 = vmul.f32 -1.442695, %v2650_v38  ;;  %v2654_v48 = vpop.f32.mrb[55].mxu0  ;;  %v2695_v8 = vpop.f32.mrb[55].mxu1 }
 0x952   : > { %v3872_v41 = vmul.f32 -1.442695, %v2652_v50  ;;  %v3873_v47 = vmul.f32 -1.442695, %v2693_v46  ;;  %v3134_v46 = vld [vmem:[%s7745_s7 + $0x18] sm:$0xff] }
 0x953   : > { %4632 = vpow2.f32 %v3871_v45 }
 0x954   : > { %4634 = vpow2.f32 %v3872_v41  ;;  %v3133_v41 = vld [vmem:[%s7745_s7 + $0x10] sm:$0xff] }
 0x955   : > { %4636 = vpow2.f32 %v3873_v47 }
 0x956   : > { %4638 = vtanh.f32 %v2691_v40 }
 0x95d   : > { %v4633_v52 = vpop.eup %4632 }
 0x95e   : > { %v4635_v5 = vpop.eup %4634  ;;  %v2700_v44 = vadd.f32 1.0, %v4633_v52  ;;  %v4127_v52 = vpack.c.bf16 %v3134_v46, %v3133_v41  ;;  %v3128_v41 = vld [vmem:[%s7744_s6 + $0x68] sm:$0xff] }
 0x95f   : > { %v2706_v62 = vadd.f32 1.0, %v4635_v5  ;;  %v4637_v42 = vpop.eup %4636  ;;  %v3135_v5 = vld [vmem:[%s7745_s7 + $0x20] sm:$0xff] }
 0x960   : > { %4640 = vrcp.f32 %v2700_v44  ;;  %v4639_v56 = vpop.eup %4638  ;;  %v2713_v55 = vadd.f32 1.0, %v4637_v42  ;;  %v3136_v44 = vld [vmem:[%s7745_s7 + $0x28] sm:$0xff] }
 0x961   : > { %4642 = vrcp.f32 %v2706_v62  ;;  %v8470_v62 = vld [vmem:[#allocation12_spill] sm:$0xff]  ;;  %v8471_v42 = vld [vmem:[#allocation17_spill] sm:$0xff] }
 0x962   : > { %4644 = vrcp.f32 %v2713_v55 }
 0x96a   : > { %v4641_v31 = vpop.eup %4640 }
 0x96b   : > { %v4643_v51 = vpop.eup %4642  ;;  %v2717_v39 = vmul.f32 %v4641_v31, %v4639_v56  ;;  %v2967_v56 = vpack.c.bf16 %v8471_v42, %v8470_v62  ;;  %v4418_v31 = vld [vmem:[%s7742_s4 + $0x10] sm:$0xff]  }
 0x96c   : > { %v2716_v17 = vmul.f32 %v4643_v51, %v7366_v43  ;;  %v4645_v7 = vpop.eup %4644  ;;  %v4131_v51 = vpack.c.bf16 %v3136_v44, %v3135_v5 }
 0x96e   : > { %v7497_v0 = vadd.f32 %v2717_v39, %v2716_v17  ;;  %v2764_v1 = vpop.f32.mrb[56].mxu0  ;;  %v2805_v3 = vpop.f32.mrb[56].mxu1  ;;  %v3137_v39 = vld [vmem:[%s7745_s7 + $0x30] sm:$0xff]  ;;  %v3139_v17 = vld [vmem:[%s7745_s7 + $0x40] sm:$0xff] }
 0x96f   : > { %v2812_v4 = vadd.f32 %v3874_v49, %v2764_v1  ;;  %v2766_v11 = vpop.f32.mrb[57].mxu0  ;;  %v2807_v14 = vpop.f32.mrb[57].mxu1  ;;  %v2814_v18 = vadd.f32 %v3876_v60, %v2805_v3  ;;  %v3140_v49 = vld [vmem:[%s7745_s7 + $0x48] sm:$0xff]  ;;  %v3141_v3 = vld [vmem:[%s7745_s7 + $0x50] sm:$0xff] }
 0x970   : > { %4646 = vtanh.f32 %v7497_v0  ;;  %v2813_v15 = vadd.f32 %v3875_v63, %v2766_v11  ;;  %v2768_v16 = vpop.f32.mrb[58].mxu0  ;;  %v2809_v22 = vpop.f32.mrb[58].mxu1  ;;  %v2815_v33 = vadd.f32 %v3877_v35, %v2807_v14  ;;  %v4420_v63 = vld [vmem:[%s7742_s4 + $0x20] sm:$0xff]   ;;  %v4139_v1 = vpack.c.bf16 %v3140_v49, %v3139_v17  ;;  %v4421_v11 = vld [vmem:[%s7742_s4 + $0x28] sm:$0xff]  }
 0x971   : > { %v3878_v29 = vmul.f32 -1.442695, %v2812_v4  ;;  %v2769_v34 = vpop.f32.mrb[59].mxu0  ;;  %v2810_v43 = vpop.f32.mrb[59].mxu1  ;;  %v3142_v4 = vld [vmem:[%s7745_s7 + $0x58] sm:$0xff]  ;;  %v3144_v16 = vld [vmem:[%s7745_s7 + $0x68] sm:$0xff] }
 0x972   : > { %v3879_v20 = vmul.f32 -1.442695, %v2813_v15  ;;  %v3880_v28 = vmul.f32 -1.442695, %v2815_v33  ;;  %v4143_v14 = vpack.c.bf16 %v3142_v4, %v3141_v3  ;;  %v3143_v15 = vld [vmem:[%s7745_s7 + $0x60] sm:$0xff]  ;;  %v4422_v22 = vld [vmem:[%s7742_s4 + $0x30] sm:$0xff]  }
 0x973   : > { %4648 = vpow2.f32 %v3878_v29  ;;  %v4147_v29 = vpack.c.bf16 %v3144_v16, %v3143_v15  ;;  %v3145_v34 = vld [vmem:[%s7745_s7 + $0x70] sm:$0xff]  ;;  %v3146_v43 = vld [vmem:[%s7745_s7 + $0x78] sm:$0xff] }
 0x974   : > { %4650 = vpow2.f32 %v3879_v20  ;;  %v4423_v20 = vld [vmem:[%s7742_s4 + $0x38] sm:$0xff]   ;;  %v4151_v35 = vpack.c.bf16 %v3146_v43, %v3145_v34  ;;  %v8473_v60 = vld [vmem:[#allocation18_spill] sm:$0xff] }
 0x975   : > { %4652 = vpow2.f32 %v3880_v28  ;;  %v8472_v33 = vld [vmem:[#allocation68_spill] sm:$0xff] }
 0x976   : > { %4654 = vtanh.f32 %v2814_v18  ;;  %v3115_v18 = vld [vmem:[%s7744_s6] sm:$0xff] }
 0x97a   : > { %v4647_v12 = vpop.eup %4646 }
 0x97b   : > { %v7502_v2 = vmul.f32 %v4647_v12, %v4645_v7  ;;  %v2968_v7 = vpack.c.bf16 %v8473_v60, %v8472_v33  ;;  %v8474_v12 = vld [vmem:[#allocation21_spill] sm:$0xff] }
 0x97c   : > { %v2969_v28 = vpack.c.bf16 %v7371_v24, %v8474_v12 }
 0x97d   : > { %v4649_v30 = vpop.eup %4648  ;;  %v2721_v58 = vpack.c.bf16 %v7502_v2, %v7502_v2 }
 0x97e   : > { %v4651_v10 = vpop.eup %4650  ;;  %v2819_v13 = vadd.f32 1.0, %v4649_v30  ;;  %v3116_v30 = vld [vmem:[%s7744_s6 + $0x8] sm:$0xff] }
 0x97f   : > { %2722 = vst [vmem:[#allocation3 + $0x4] sm:$0xf] %v2721_v58  ;;  %v2825_v32 = vadd.f32 1.0, %v4651_v10  ;;  %v4653_v61 = vpop.eup %4652  ;;  %v4155_v58 = vpack.c.bf16 %v3116_v30, %v3115_v18  ;;  %v3117_v10 = vld [vmem:[%s7744_s6 + $0x10] sm:$0xff] }
 0x980   : > { %4656 = vrcp.f32 %v2819_v13  ;;  %v4655_v59 = vpop.eup %4654  ;;  %v2832_v37 = vadd.f32 1.0, %v4653_v61  ;;  %v3118_v13 = vld [vmem:[%s7744_s6 + $0x18] sm:$0xff]  ;;  %v3119_v61 = vld [vmem:[%s7744_s6 + $0x20] sm:$0xff] }
 0x981   : > { %4658 = vrcp.f32 %v2825_v32  ;;  %v4159_v32 = vpack.c.bf16 %v3118_v13, %v3117_v10 }
 0x982   : > { %4660 = vrcp.f32 %v2832_v37 }
 0x98a   : > { %v4657_v19 = vpop.eup %4656 }
 0x98b   : > { %v4659_v57 = vpop.eup %4658  ;;  %v2836_v38 = vmul.f32 %v4657_v19, %v4655_v59  ;;  %v3120_v59 = vld [vmem:[%s7744_s6 + $0x28] sm:$0xff] }
 0x98c   : > { %v2835_v23 = vmul.f32 %v4659_v57, %v7376_v26  ;;  %v4661_v53 = vpop.eup %4660  ;;  %v4417_v26 = vld [vmem:[%s7742_s4 + $0x8] sm:$0xff]   ;;  %v4163_v19 = vpack.c.bf16 %v3120_v59, %v3119_v61  ;;  %v3121_v57 = vld [vmem:[%s7744_s6 + $0x30] sm:$0xff] }
 0x98e   : > { %v2837_v50 = vadd.f32 %v2836_v38, %v2835_v23  ;;  %v3122_v38 = vld [vmem:[%s7744_s6 + $0x38] sm:$0xff]  ;;  %v3123_v23 = vld [vmem:[%s7744_s6 + $0x40] sm:$0xff] }
 0x98f   : > { %v4167_v37 = vpack.c.bf16 %v3122_v38, %v3121_v57 }
 0x990   : > { %4662 = vtanh.f32 %v2837_v50  ;;  %v3124_v50 = vld [vmem:[%s7744_s6 + $0x48] sm:$0xff] }
 0x99a   : > { %v4663_v6 = vpop.eup %4662 }
 0x99b   : > { %v2839_v45 = vmul.f32 %v4663_v6, %v4661_v53  ;;  %v4171_v53 = vpack.c.bf16 %v3124_v50, %v3123_v23  ;;  %v3125_v6 = vld [vmem:[%s7744_s6 + $0x50] sm:$0xff] }
 0x99d   : > { %v2840_v48 = vpack.c.bf16 %v2839_v45, %v2839_v45  ;;  %v3126_v45 = vld [vmem:[%s7744_s6 + $0x58] sm:$0xff] }
 0x99f   : > { %2841 = vst [vmem:[#allocation3] sm:$0xf] %v2840_v48  ;;  %v4175_v48 = vpack.c.bf16 %v3126_v45, %v3125_v6 }
 0x9a6   : > { %v2842_v8 = vld [vmem:[#allocation3] sm:$0xff] }
 0x9a7   : > { %v3882_v47 = vcombine.high %v2842_v8, %v2842_v8  ;;  %v3881_v40 = vcombine.low %v2842_v8, %v2842_v8  ;;  %v3127_v8 = vld [vmem:[%s7744_s6 + $0x60] sm:$0xff] }
 0x9a8   : > { %v4179_v46 = vpack.c.bf16 %v3128_v41, %v3127_v8 }
 0x9a9   : > { %2882 = vmatprep.mubr.bf16.mxu0 %v3882_v47  ;;  %2923 = vmatprep.mubr.bf16.mxu1 %v3882_v47  ;;  %v3129_v47 = vld [vmem:[%s7744_s6 + $0x70] sm:$0xff] }
 0x9aa   : > { %2883 = vmatmul.mubr.bf16.vlgmr.msra.gmra.mrb[60].mxu0 %v3881_v40  ;;  %2924 = vmatmul.mubr.bf16.vlgmr.msra.gmra.mrb[60].mxu1 %v3881_v40  ;;  %v3130_v40 = vld [vmem:[%s7744_s6 + $0x78] sm:$0xff] }
 0x9ab   : > { %3977 = vmatpush3.bf16.msra.mxu0 %v7484_v27  ;;  %4126 = vmatpush3.bf16.msra.mxu1 %v7486_v21  ;;  %v3138_v27 = vld [vmem:[%s7745_s7 + $0x38] sm:$0xff] }
 0x9ac   : > { %3992 = vmatprep.mubr.bf16.mxu0 %v2967_v56  ;;  %4032 = vmatprep.mubr.f32.mxu1 %v8470_v62  ;;  %v4419_v21 = vld [vmem:[%s7742_s4 + $0x18] sm:$0xff]   ;;  %v4135_v55 = vpack.c.bf16 %v3138_v27, %v3137_v39 }
 0x9ad   : > { %3978 = vmatprep.subr.bf16.mxu0 %v4417_v26  ;;  %4128 = vmatprep.subr.bf16.mxu1 %v4127_v52 }
 0x9af   : > { %3979 = vmatpush3.bf16.msra.mxu0 %v4417_v26  ;;  %4130 = vmatpush3.bf16.msra.mxu1 %v4127_v52  ;;  %v4183_v26 = vpack.c.bf16 %v3130_v40, %v3129_v47 }
 0x9b0   : > { %3980 = vmatprep.subr.bf16.mxu0 %v4418_v31  ;;  %4132 = vmatprep.subr.bf16.mxu1 %v4131_v51 }
 0x9b3   : > { %3981 = vmatpush3.bf16.msra.mxu0 %v4418_v31  ;;  %4134 = vmatpush3.bf16.msra.mxu1 %v4131_v51 }
 0x9b4   : > { %3982 = vmatprep.subr.bf16.mxu0 %v4419_v21  ;;  %4136 = vmatprep.subr.bf16.mxu1 %v4135_v55 }
 0x9b7   : > { %3983 = vmatpush3.bf16.msra.mxu0 %v4419_v21  ;;  %4138 = vmatpush3.bf16.msra.mxu1 %v4135_v55 }
 0x9b8   : > { %3984 = vmatprep.subr.bf16.mxu0 %v4420_v63  ;;  %4140 = vmatprep.subr.bf16.mxu1 %v4139_v1 }
 0x9bb   : > { %3985 = vmatpush3.bf16.msra.mxu0 %v4420_v63  ;;  %4142 = vmatpush3.bf16.msra.mxu1 %v4139_v1 }
 0x9bc   : > { %3986 = vmatprep.subr.bf16.mxu0 %v4421_v11  ;;  %4144 = vmatprep.subr.bf16.mxu1 %v4143_v14 }
 0x9bf   : > { %3987 = vmatpush3.bf16.msra.mxu0 %v4421_v11  ;;  %4146 = vmatpush3.bf16.msra.mxu1 %v4143_v14 }
 0x9c0   : > { %3988 = vmatprep.subr.bf16.mxu0 %v4422_v22  ;;  %4148 = vmatprep.subr.bf16.mxu1 %v4147_v29 }
 0x9c3   : > { %3989 = vmatpush3.bf16.msra.mxu0 %v4422_v22  ;;  %4150 = vmatpush3.bf16.msra.mxu1 %v4147_v29 }
 0x9c4   : > { %3990 = vmatprep.subr.bf16.mxu0 %v4423_v20  ;;  %4152 = vmatprep.subr.bf16.mxu1 %v4151_v35 }
 0x9c7   : > { %3991 = vmatpush3.bf16.msra.mxu0 %v4423_v20  ;;  %4154 = vmatpush3.bf16.msra.mxu1 %v4151_v35 }
 0x9c8   : > { %4156 = vmatprep.subr.bf16.mxu1 %v4155_v58 }
 0x9ca   : > { %3993 = vmatmul.mubr.bf16.vlgmr.msra.gmra.mrb[64].mxu0 %v2968_v7  ;;  %4033 = vmatmul.mubr.f32.vlgmr.msra.gmra.mrb[64].mxu1 %v8471_v42 }
 0x9cb   : > { %3996 = vmatprep.mubr.bf16.mxu0 %v2969_v28  ;;  %4035 = vmatprep.mubr.f32.mxu1 %v8472_v33 }
 0x9cc   : > { %4158 = vmatpush3.bf16.msra.mxu1 %v4155_v58 }
 0x9cd   : > { %4160 = vmatprep.subr.bf16.mxu1 %v4159_v32 }
 0x9ce   : > { %4036 = vmatmul.mubr.f32.gmra.mrb[66].mxu1 %v8473_v60 }
 0x9cf   : > { %4038 = vmatprep.mubr.f32.mxu1 %v8474_v12 }
 0x9d0   : > { %4162 = vmatpush3.bf16.msra.mxu1 %v4159_v32 }
 0x9d1   : > { %4164 = vmatprep.subr.bf16.mxu1 %v4163_v19 }
 0x9d2   : > { %4039 = vmatmul.mubr.f32.gmra.mrb[68].mxu1 %v7371_v24 }
 0x9d3   : > { %4041 = vmatprep.mubr.f32.mxu1 %v7502_v2 }
 0x9d4   : > { %4166 = vmatpush3.bf16.msra.mxu1 %v4163_v19 }
 0x9d5   : > { %4168 = vmatprep.subr.bf16.mxu1 %v4167_v37 }
 0x9d8   : > { %4170 = vmatpush3.bf16.msra.mxu1 %v4167_v37 }
 0x9d9   : > { %4172 = vmatprep.subr.bf16.mxu1 %v4171_v53 }
 0x9dc   : > { %4174 = vmatpush3.bf16.msra.mxu1 %v4171_v53 }
 0x9dd   : > { %4176 = vmatprep.subr.bf16.mxu1 %v4175_v48 }
 0x9e0   : > { %4178 = vmatpush3.bf16.msra.mxu1 %v4175_v48 }
 0x9e1   : > { %4180 = vmatprep.subr.bf16.mxu1 %v4179_v46 }
 0x9e4   : > { %4182 = vmatpush3.bf16.msra.mxu1 %v4179_v46 }
 0x9e5   : > { %4184 = vmatprep.subr.bf16.mxu1 %v4183_v26 }
 0x9e8   : > { %4186 = vmatpush3.bf16.msra.mxu1 %v4183_v26 }
 0xa7d   : > { %v2884_v52 = vpop.f32.mrb[60].mxu0  ;;  %v2925_v5 = vpop.f32.mrb[60].mxu1 }
 0xa7e   : > { %v2885_v44 = vadd.f32 %v2884_v52, %v8466_v25  ;;  %v2886_v56 = vpop.f32.mrb[61].mxu0  ;;  %v2927_v31 = vpop.f32.mrb[61].mxu1  ;;  %v2926_v3 = vadd.f32 %v2925_v5, %v8469_v54 }
 0xa7f   : > { %v2887_v51 = vadd.f32 %v2886_v56, %v8467_v9  ;;  %v2888_v39 = vpop.f32.mrb[62].mxu0  ;;  %v2929_v27 = vpop.f32.mrb[62].mxu1  ;;  %v2928_v63 = vadd.f32 %v2927_v31, %v8468_v36  ;;  %v3886_v36 = vld [vmem:[%s7743_s5] ss:$0 sm:$0xff] }
 0xa80   : > { %v3883_v21 = vmul.f32 -1.442695, %v2885_v44  ;;  %v2889_v55 = vpop.f32.mrb[63].mxu0  ;;  %v2930_v17 = vpop.f32.mrb[63].mxu1  ;;  %v3503_v27 = vld [vmem:[%s7746_s8] sm:$0xff] }
 0xa81   : > { %v3884_v49 = vmul.f32 -1.442695, %v2887_v51  ;;  %v3885_v1 = vmul.f32 -1.442695, %v2928_v63  ;;  %v3505_v55 = vld [vmem:[%s7746_s8 + $0x10] sm:$0xff]  ;;  %v4931_v17 = vmov 0.0|0.0  }
 0xa82   : > { %4664 = vpow2.f32 %v3883_v21  ;;  %v3504_v21 = vld [vmem:[%s7746_s8 + $0x8] sm:$0xff]  ;;  %4187 = vmatprep.subr.bf16.mxu0 %v4931_v17  ;;  %v3506_v63 = vld [vmem:[%s7746_s8 + $0x18] sm:$0xff] }
 0xa83   : > { %4666 = vpow2.f32 %v3884_v49  ;;  %v4188_v49 = vpack.c.bf16 %v3504_v21, %v3503_v27 }
 0xa84   : > { %4668 = vpow2.f32 %v3885_v1  ;;  %v4191_v1 = vpack.c.bf16 %v3506_v63, %v3505_v55  ;;  %v3509_v55 = vld [vmem:[%s7746_s8 + $0x30] sm:$0xff] }
 0xa85   : > { %4670 = vtanh.f32 %v2926_v3  ;;  %4189 = vmatpush3.bf16.msra.mxu0 %v4188_v49  ;;  %v3507_v3 = vld [vmem:[%s7746_s8 + $0x20] sm:$0xff]  ;;  %v3510_v49 = vld [vmem:[%s7746_s8 + $0x38] sm:$0xff] }
 0xa86   : > { %4190 = vmatprep.subr.bf16.mxu0 %v4931_v17  ;;  %v4197_v63 = vpack.c.bf16 %v3510_v49, %v3509_v55 }
 0xa89   : > { %4192 = vmatpush3.bf16.msra.mxu0 %v4191_v1  ;;  %v3511_v1 = vld [vmem:[%s7746_s8 + $0x40] sm:$0xff] }
 0xa8a   : > { %4193 = vmatprep.subr.bf16.mxu0 %v4931_v17 }
 0xa8c   : > { %v4665_v4 = vpop.eup %4664 }
 0xa8d   : > { %v4667_v11 = vpop.eup %4666  ;;  %v2935_v25 = vadd.f32 1.0, %v4665_v4  ;;  %v3508_v4 = vld [vmem:[%s7746_s8 + $0x28] sm:$0xff] }
 0xa8e   : > { %v2941_v14 = vadd.f32 1.0, %v4667_v11  ;;  %v4669_v9 = vpop.eup %4668  ;;  %v4194_v11 = vpack.c.bf16 %v3508_v4, %v3507_v3  ;;  %v3512_v3 = vld [vmem:[%s7746_s8 + $0x48] sm:$0xff] }
 0xa8f   : > { %4672 = vrcp.f32 %v2935_v25  ;;  %v4671_v15 = vpop.eup %4670  ;;  %v2948_v34 = vadd.f32 1.0, %v4669_v9  ;;  %v4200_v4 = vpack.c.bf16 %v3512_v3, %v3511_v1 }
 0xa90   : > { %4674 = vrcp.f32 %v2941_v14  ;;  %4195 = vmatpush3.bf16.msra.mxu0 %v4194_v11  ;;  %v3513_v11 = vld [vmem:[%s7746_s8 + $0x50] sm:$0xff] }
 0xa91   : > { %4676 = vrcp.f32 %v2948_v34  ;;  %4196 = vmatprep.subr.bf16.mxu0 %v4931_v17 }
 0xa94   : > { %4198 = vmatpush3.bf16.msra.mxu0 %v4197_v63 }
 0xa95   : > { %4199 = vmatprep.subr.bf16.mxu0 %v4931_v17 }
 0xa98   : > { %4201 = vmatpush3.bf16.msra.mxu0 %v4200_v4 }
 0xa99   : > { %v4673_v16 = vpop.eup %4672  ;;  %4202 = vmatprep.subr.bf16.mxu0 %v4931_v17 }
 0xa9a   : > { %v4675_v22 = vpop.eup %4674  ;;  %v2952_v29 = vmul.f32 %v4673_v16, %v4671_v15 }
 0xa9b   : > { %v2951_v43 = vmul.f32 %v4675_v22, %v7497_v0  ;;  %v4677_v13 = vpop.eup %4676 }
 0xa9d   : > { %v2953_v54 = vadd.f32 %v2952_v29, %v2951_v43  ;;  %v3994_v20 = vpop.f32.mrb[64].mxu0 }
 0xa9e   : > { %v3076_v35 = vpop.f32.mrb[65].mxu0  ;;  %v3085_v58 = vadd.f32 %v3994_v20, %v3886_v36 }
 0xa9f   : > { %4678 = vtanh.f32 %v2953_v54  ;;  %v3077_v7 = vadd.f32 %v3886_v36, %v3076_v35  ;;  %v3995_v28 = vpop.f32.mrb[66].mxu0 }
 0xaa0   : > { %v3079_v18 = vpop.f32.mrb[67].mxu0  ;;  %v3088_v10 = vadd.f32 %v3995_v28, %v3886_v36 }
 0xaa1   : > { %v3080_v30 = vadd.f32 %v3886_v36, %v3079_v18  ;;  %4680 = vtanh.f32 %v3077_v7 }
 0xaa3   : > { %4682 = vtanh.f32 %v3080_v30 }
 0xaa4   : > { %4684 = vtanh.f32 %v3085_v58 }
 0xaa5   : > { %4686 = vtanh.f32 %v3088_v10 }
 0xaa9   : > { %v4679_v0 = vpop.eup %4678 }
 0xaaa   : > { %v7641_v32 = vmul.f32 %v4679_v0, %v4677_v13 }
 0xaab   : > { %v4681_v61 = vpop.eup %4680 }
 0xaac   : > { %v2956_v59 = vpack.c.bf16 %v7641_v32, %v7641_v32  ;;  %4042 = vmatmul.mubr.f32.gmra.mrb[70].mxu1 %v7641_v32  ;;  %v2970_v19 = vpack.c.bf16 %v7641_v32, %v7502_v2 }
 0xaad   : > { %4076 = vmatprep.mubr.f32.mxu1 %v4681_v61  ;;  %v4683_v57 = vpop.eup %4682 }
 0xaae   : > { %2957 = vst [vmem:[#allocation3 + $0x4] sm:$0xf] %v2956_v59  ;;  %3997 = vmatmul.mubr.bf16.gmra.mrb[68].mxu0 %v2970_v19  ;;  %v4685_v38 = vpop.eup %4684 }
 0xaaf   : > { %v4687_v37 = vpop.eup %4686 }
 0xab0   : > { %4077 = vmatmul.mubr.f32.vlgmr.msra.gmra.mrb[64].mxu1 %v4683_v57 }
 0xab1   : > { %4079 = vmatprep.mubr.f32.mxu1 %v4685_v38 }
 0xab4   : > { %4080 = vmatmul.mubr.f32.gmra.mrb[66].mxu1 %v4687_v37 }
 0xb81   : > { %v3998_v23 = vpop.f32.mrb[68].mxu0 }
 0xb82   : > { %v3092_v50 = vpop.f32.mrb[69].mxu0  ;;  %v3101_v48 = vadd.f32 %v3998_v23, %v3886_v36 }
 0xb83   : > { %v3093_v53 = vadd.f32 %v3886_v36, %v3092_v50  ;;  %v3999_v6 = vpop.f32.mrb[70].mxu0  ;;  %v4078_v45 = vpop.f32.mrb[64].mxu1 }
 0xb84   : > { %v3095_v8 = vpop.f32.mrb[71].mxu0  ;;  %v3318_v41 = vpop.f32.mrb[65].mxu1  ;;  %v3104_v40 = vadd.f32 %v3999_v6, %v3886_v36 }
 0xb85   : > { %4688 = vtanh.f32 %v3093_v53  ;;  %v3096_v46 = vadd.f32 %v3886_v36, %v3095_v8  ;;  %v3357_v47 = vmax.f32 %v3318_v41, %v4078_v45 }
 0xb87   : > { %4690 = vtanh.f32 %v3096_v46  ;;  %v4081_v26 = vpop.f32.mrb[66].mxu1 }
 0xb88   : > { %4692 = vtanh.f32 %v3101_v48  ;;  %v3328_v52 = vpop.f32.mrb[67].mxu1 }
 0xb89   : > { %v3358_v5 = vmax.f32 %v3357_v47, %v3328_v52  ;;  %4694 = vtanh.f32 %v3104_v40 }
 0xb8b   : > { %v3359_v44 = vmax.f32 %v3358_v5, %v4081_v26 }
 0xb8f   : > { %v4689_v56 = vpop.eup %4688 }
 0xb90   : > { %4082 = vmatprep.mubr.f32.mxu1 %v4689_v56 }
 0xb91   : > { %v4691_v31 = vpop.eup %4690 }
 0xb92   : > { %v4693_v51 = vpop.eup %4692  ;;  %4083 = vmatmul.mubr.f32.gmra.mrb[68].mxu1 %v4691_v31 }
 0xb93   : > { %4085 = vmatprep.mubr.f32.mxu1 %v4693_v51  ;;  %v4695_v39 = vpop.eup %4694 }
 0xb96   : > { %4086 = vmatmul.mubr.f32.gmra.mrb[70].mxu1 %v4695_v39 }
 0xc65   : > { %v4084_v25 = vpop.f32.mrb[68].mxu1 }
 0xc66   : > { %v3338_v14 = vpop.f32.mrb[69].mxu1 }
 0xc67   : > { %v3360_v9 = vmax.f32 %v3359_v44, %v3338_v14 }
 0xc69   : > { %v4087_v15 = vpop.f32.mrb[70].mxu1  ;;  %v3361_v16 = vmax.f32 %v3360_v9, %v4084_v25  ;;  %v3515_v9 = vld [vmem:[%s7746_s8 + $0x60] sm:$0xff] }
 0xc6a   : > { %v3348_v22 = vpop.f32.mrb[71].mxu1 }
 0xc6b   : > { %v3362_v29 = vmax.f32 %v3361_v16, %v3348_v22 }
 0xc6d   : > { %v3363_v34 = vmax.f32 %v3362_v29, %v4087_v15  ;;  %v3518_v29 = vld [vmem:[%s7746_s8 + $0x78] sm:$0xff] }
 0xc6f   : > { %v3364_v43 = vsub.f32 %v3318_v41, %v3363_v34  ;;  %v3367_v36 = vsub.f32 %v4078_v45, %v3363_v34  ;;  %v3370_v54 = vsub.f32 %v3328_v52, %v3363_v34  ;;  %v3373_v20 = vsub.f32 %v4081_v26, %v3363_v34 }
 0xc70   : > { %v3376_v35 = vsub.f32 %v3338_v14, %v3363_v34  ;;  %v3379_v7 = vsub.f32 %v4084_v25, %v3363_v34  ;;  %v3382_v28 = vsub.f32 %v3348_v22, %v3363_v34  ;;  %v3385_v18 = vsub.f32 %v4087_v15, %v3363_v34  ;;  %v3514_v25 = vld [vmem:[%s7746_s8 + $0x58] sm:$0xff]  ;;  %v3516_v15 = vld [vmem:[%s7746_s8 + $0x68] sm:$0xff]  ;;  %v3517_v22 = vld [vmem:[%s7746_s8 + $0x70] sm:$0xff] }
 0xc71   : > { %v3365_v30 = vmul.f32 1.442695, %v3364_v43  ;;  %v3368_v58 = vmul.f32 1.442695, %v3367_v36  ;;  %v3371_v10 = vmul.f32 1.442695, %v3370_v54  ;;  %v4203_v14 = vpack.c.bf16 %v3514_v25, %v3513_v11 }
 0xc72   : > { %v3374_v13 = vmul.f32 1.442695, %v3373_v20  ;;  %v3377_v0 = vmul.f32 1.442695, %v3376_v35  ;;  %v3380_v61 = vmul.f32 1.442695, %v3379_v7  ;;  %v4206_v16 = vpack.c.bf16 %v3516_v15, %v3515_v9 }
 0xc73   : > { %4696 = vpow2.f32 %v3365_v30  ;;  %v3383_v59 = vmul.f32 1.442695, %v3382_v28  ;;  %v3386_v19 = vmul.f32 1.442695, %v3385_v18  ;;  %4204 = vmatpush3.bf16.msra.mxu0 %v4203_v14  ;;  %v4209_v34 = vpack.c.bf16 %v3518_v29, %v3517_v22 }
 0xc74   : > { %4698 = vpow2.f32 %v3368_v58  ;;  %4205 = vmatprep.subr.bf16.mxu0 %v4931_v17  ;;  %v4935_v43 = vmov 0.0  }
 0xc75   : > { %4700 = vpow2.f32 %v3371_v10  ;;  %4120 = vmatprep.mubr.msk.f32.mxu0 %vm4934_vm0, %v4935_v43 }
 0xc76   : > { %4702 = vpow2.f32 %v3374_v13 }
 0xc77   : > { %4704 = vpow2.f32 %v3377_v0  ;;  %4207 = vmatpush3.bf16.msra.mxu0 %v4206_v16 }
 0xc78   : > { %4706 = vpow2.f32 %v3380_v61  ;;  %4208 = vmatprep.subr.bf16.mxu0 %v4931_v17 }
 0xc79   : > { %4708 = vpow2.f32 %v3383_v59 }
 0xc7a   : > { %4710 = vpow2.f32 %v3386_v19 }
 0xc7b   : > { %4210 = vmatpush3.bf16.msra.mxu0 %v4209_v34 }
 0xc7d   : > { %v4697_v57 = vpop.eup %4696 }
 0xc7e   : > { %v4699_v38 = vpop.eup %4698 }
 0xc7f   : > { %v3388_v37 = vadd.f32 %v4699_v38, %v4697_v57  ;;  %v4701_v23 = vpop.eup %4700 }
 0xc80   : > { %v4703_v53 = vpop.eup %4702 }
 0xc81   : > { %v3389_v50 = vadd.f32 %v4701_v23, %v3388_v37  ;;  %v4705_v45 = vpop.eup %4704 }
 0xc82   : > { %v4707_v8 = vpop.eup %4706 }
 0xc83   : > { %v3390_v6 = vadd.f32 %v4703_v53, %v3389_v50  ;;  %v4709_v46 = vpop.eup %4708 }
 0xc84   : > { %v4711_v40 = vpop.eup %4710 }
 0xc85   : > { %v3391_v48 = vadd.f32 %v4705_v45, %v3390_v6 }
 0xc87   : > { %v3392_v41 = vadd.f32 %v4707_v8, %v3391_v48 }
 0xc89   : > { %v3393_v47 = vadd.f32 %v4709_v46, %v3392_v41 }
 0xc8b   : > { %v3394_v26 = vadd.f32 %v4711_v40, %v3393_v47 }
 0xc8d   : > { %4712 = vrcp.f32 %v3394_v26 }
 0xc97   : > { %v4713_v52 = vpop.eup %4712 }
 0xc98   : > { %v3398_v5 = vmul.f32 %v4713_v52, %v4701_v23  ;;  %v7670_v44 = vmul.f32 %v4713_v52, %v4697_v57  ;;  %v3399_v56 = vmul.f32 %v4713_v52, %v4703_v53  ;;  %v3397_v31 = vmul.f32 %v4713_v52, %v4699_v38 }
 0xc99   : > { %v3401_v51 = vmul.f32 %v4713_v52, %v4707_v8  ;;  %v3400_v39 = vmul.f32 %v4713_v52, %v4705_v45  ;;  %v3403_v27 = vmul.f32 %v4713_v52, %v4711_v40  ;;  %v3402_v21 = vmul.f32 %v4713_v52, %v4709_v46  ;;  %v3895_v40 = vld [vmem:[#allocation4] ss:$0 sm:$0xff] }
 0xc9a   : > { %3421 = vperm.xlu1 %4255, %v3398_v5   ;;  %3407 = vperm.xlu0 %4254, %v7670_v44  }
 0xc9e   : > { %3428 = vperm.xlu1 %4255, %v3399_v56   ;;  %3414 = vperm.xlu0 %4254, %v3397_v31  }
 0xca2   : > { %3442 = vperm.xlu1 %4255, %v3401_v51   ;;  %3435 = vperm.xlu0 %4254, %v3400_v39  }
 0xca6   : > { %3455 = vperm.xlu1 %4255, %v3403_v27   ;;  %3449 = vperm.xlu0 %4254, %v3402_v21  }
 0xcaa   : > { %3469 = vrot.lane.b32.xlu1 %v3398_v5, %s4932_s26  ;;  %3466 = vrot.lane.b32.xlu0 %v3397_v31, %s4933_s27  ;;  %s3696_s26 = sshll.u32 %s8479_s9, 3 }
 0xcab   : > { %s479_s29 = scalar_lea.vmem %s7749_s11, %s3696_s26  ;;  %s475_s12 = scalar_lea.vmem %s7748_s10, %s3696_s26 }
 0xcae   : > { %3475 = vrot.lane.b32.xlu1 %v3400_v39, %s4936_s16  ;;  %3472 = vrot.lane.b32.xlu0 %v3399_v56, %s4937_s17 }
 0xcb2   : > { %3481 = vrot.lane.b32.xlu1 %v3402_v21, %s4938_s18  ;;  %3478 = vrot.lane.b32.xlu0 %v3401_v51, %s4939_s23 }
 0xcb6   : > { %3484 = vrot.lane.b32.xlu0 %v3403_v27, %s4940_s24 }
 0xd19   : > { %v3422_v36 = vpop.permute.xlu1 %3421  ;;  %v3408_v54 = vpop.permute.xlu0 %3407 }
 0xd1a   : > { %v3410_v7 = vmul.f32 %v3408_v54, %v8470_v62  ;;  %v3424_v18 = vmul.f32 %v3422_v36, %v8472_v33 }
 0xd1d   : > { %v3429_v20 = vpop.permute.xlu1 %3428  ;;  %v3415_v35 = vpop.permute.xlu0 %3414 }
 0xd1e   : > { %v3417_v28 = vmul.f32 %v3415_v35, %v8471_v42  ;;  %v3431_v10 = vmul.f32 %v3429_v20, %v8473_v60 }
 0xd20   : > { %v3459_v30 = vadd.f32 %v3417_v28, %v3410_v7 }
 0xd21   : > { %v3443_v17 = vpop.permute.xlu1 %3442  ;;  %v3436_v58 = vpop.permute.xlu0 %3435 }
 0xd22   : > { %v3460_v13 = vadd.f32 %v3459_v30, %v3424_v18  ;;  %v3438_v61 = vmul.f32 %v3436_v58, %v8474_v12  ;;  %v3445_v57 = vmul.f32 %v3443_v17, %v7371_v24 }
 0xd24   : > { %v3461_v0 = vadd.f32 %v3460_v13, %v3431_v10 }
 0xd25   : > { %v3456_v59 = vpop.permute.xlu1 %3455  ;;  %v3450_v19 = vpop.permute.xlu0 %3449 }
 0xd26   : > { %v3462_v38 = vadd.f32 %v3461_v0, %v3438_v61  ;;  %v3452_v42 = vmul.f32 %v3450_v19, %v7502_v2  ;;  %v3458_v60 = vmul.f32 %v3456_v59, %v7641_v32 }
 0xd28   : > { %v3463_v62 = vadd.f32 %v3462_v38, %v3445_v57 }
 0xd29   : > { %v3470_v33 = vpop.permute.xlu1 %3469  ;;  %v3467_v37 = vpop.permute.xlu0 %3466 }
 0xd2a   : > { %v3464_v23 = vadd.f32 %v3463_v62, %v3452_v42  ;;  %v3488_v12 = vsel %vm3487_vm1, %v7670_v44, %v3467_v37 }
 0xd2b   : > { %v3490_v53 = vsel %vm3489_vm2, %v3488_v12, %v3470_v33 }
 0xd2c   : > { %v3465_v50 = vadd.f32 %v3464_v23, %v3458_v60 }
 0xd2d   : > { %v3476_v24 = vpop.permute.xlu1 %3475  ;;  %v3473_v6 = vpop.permute.xlu0 %3472 }
 0xd2e   : > { %v3492_v45 = vsel %vm3491_vm3, %v3490_v53, %v3473_v6  ;;  %4121 = vmatmul.mubr.f32.vlgmr.msra.gmra.mrb[72].mxu0 %v3465_v50 }
 0xd2f   : > { %v3494_v2 = vsel %vm3493_vm4, %v3492_v45, %v3476_v24 }
 0xd31   : > { %v3479_v48 = vpop.permute.xlu0 %3478  ;;  %v3482_v32 = vpop.permute.xlu1 %3481 }
 0xd32   : > { %v3496_v8 = vsel %vm3495_vm5, %v3494_v2, %v3479_v48 }
 0xd33   : > { %v3498_v41 = vsel %vm3497_vm6, %v3496_v8, %v3482_v32 }
 0xd35   : > { %v3485_v46 = vpop.permute.xlu0 %3484 }
 0xd36   : > { %v3500_v47 = vsel %vm3499_vm7, %v3498_v41, %v3485_v46 }
 0xd37   : > { %3502 = vst.msk [vmem:[%s479_s29] sm:$0xff] %vm3501_vm8, %v3500_v47 }
 0xe01   : > { %v3592_v26 = vpop.f32.mrb[72].mxu0 }
 0xe02   : > { %v3593_v52 = vadd.f32 %v3895_v40, %v3592_v26  ;;  %v4122_v5 = vpop.f32.mrb[73].mxu0 }
 0xe04   : > { %3596 = vst.msk [vmem:[%s475_s12] sm:$0xff] %vm3487_vm1, %v3593_v52 }
 0xe05 PF: > { %p21_p9 = scmp.ge.s32.totalorder %s5021_s22, 4   ;;  %s8475_s19 = smov %s4924_s20 }
 0xe06   : > { %s8476_s20 = smov %s5030_s25  ;;  %s8477_s21 = smov %s5021_s22 }
 0xe07   :  { %23 = sbr.rel (!%p21_p9) target bundleno = 5 (0x5), region = 137 }

</bundles_post_ra>
